<compile_context>
chip_gen: v5e
topology: v5e:2x2
jax: 0.10.0
libtpu: 0.0.40
codegen_flags: <defaults>
</compile_context>

<pallas_src>
import functools

import jax
import jax.numpy as jnp
from jax.experimental import pallas as pl
from jax.experimental.pallas import tpu as pltpu

EPS = 1e-5
# PyTorch 'same' padding for stride 1: total = K-1, left = total//2, right = rest.
PAD1_L, PAD1_R = 31, 32          # K = 64
PAD2_L, PAD2_R = 7, 8            # K = 16
PAD3_L, PAD3_R = 1, 2            # K = 4
PAD_OFF = 16                     # tile-aligned interior offset of the padded scratch
SAME_PADS = [(PAD1_L, PAD1_R), (PAD2_L, PAD2_R), (PAD3_L, PAD3_R)]


# --------------------------------------------------------------------------- #
# Fused kernel: conv1 (im2col) -> conv2 -> conv3 -> mean+Linear, all in VMEM
# --------------------------------------------------------------------------- #
def fused_cnn_kernel(patches_ref, w1_ref, s1_ref, t1_ref,
                     w2_ref, s2_ref, t2_ref,
                     w3_ref, s3_ref, t3_ref,
                     lw_ref, lb_ref,
                     out_ref,
                     hpad_ref, acc_ref, *, B, L):
    """
    patches_ref : (B*L, 64)       bf16  layer-1 im2col patches (built in wrapper)
    w1_ref      : (64, 128)       bf16
    w2_ref      : (8, 256, 128)   bf16  tap-paired weights for K=16
    w3_ref      : (2, 256, 128)   bf16  tap-paired weights for K=4
    s*_ref,t*_ref: (1, 128)       f32   folded eval-BN scale / shift (conv bias absorbed)
    lw_ref      : (128, n)        f32   Linear weight (transposed)
    lb_ref      : (1, n)          f32
    out_ref     : (B, n)          f32
    hpad_ref    : (B, L+2*PAD_OFF, 128) f32 scratch — padded activation (reused L2/L3)
    acc_ref     : (B*L, 128)      f32 scratch — conv accumulator
    """
    C = 128

    def conv_pairs(w_ref, n_pairs, left):
        # out[t] = sum_k hpad[t+k] @ W[k]; taps (2p, 2p+1) fused into one
        # contraction-256 matmul against w_ref[p] = [W[2p]; W[2p+1]].
        acc_ref[...] = jnp.zeros_like(acc_ref)
        base = PAD_OFF - left
        for p in range(n_pairs):                                   # static unroll
            xa = hpad_ref[:, base + 2 * p:     base + 2 * p + L,     :]
            xb = hpad_ref[:, base + 2 * p + 1: base + 2 * p + 1 + L, :]
            xp = jnp.concatenate(
                [xa.reshape(B * L, C), xb.reshape(B * L, C)],
                axis=-1).astype(jnp.bfloat16)                      # (B*L, 2C)
            acc_ref[...] += jnp.dot(xp, w_ref[p],
                                    preferred_element_type=jnp.float32)
        return acc_ref[...]

    # ---- layer 1: Conv1d(1->128, K=64, 'same') as one im2col matmul -------- #
    y = jnp.dot(patches_ref[...], w1_ref[...], preferred_element_type=jnp.float32)
    h = jnp.maximum(y * s1_ref[...] + t1_ref[...], 0.0)            # (B*L, C) f32

    # ---- layer 2: Conv1d(128->128, K=16, 'same'), 8 tap pairs --------------- #
    hpad_ref[...] = jnp.zeros_like(hpad_ref)                       # zero pads once
    hpad_ref[:, PAD_OFF:PAD_OFF + L, :] = h.reshape(B, L, C)
    y = conv_pairs(w2_ref, n_pairs=8, left=PAD2_L)
    h = jnp.maximum(y * s2_ref[...] + t2_ref[...], 0.0)

    # ---- layer 3: Conv1d(128->128, K=4, 'same'), 2 tap pairs ---------------- #
    # (pad regions of hpad_ref are still zero; only the interior is rewritten)
    hpad_ref[:, PAD_OFF:PAD_OFF + L, :] = h.reshape(B, L, C)
    y = conv_pairs(w3_ref, n_pairs=2, left=PAD3_L)
    h = jnp.maximum(y * s3_ref[...] + t3_ref[...], 0.0)            # (B*L, C) f32

    # ---- head: mean over channels (torch dim=1) then Linear(L=128 -> n) ----- #
    m = jnp.mean(h.reshape(B, L, C), axis=-1)                      # (B, L)
    out_ref[...] = (jnp.dot(m, lw_ref[...], preferred_element_type=jnp.float32)
                    + lb_ref[...]).astype(out_ref.dtype)


# --------------------------------------------------------------------------- #
# Wrapper: parameter folding + single pallas_call (everything fits in VMEM)
# --------------------------------------------------------------------------- #
def _fold_bn(p):
    scale = p["gamma"] / jnp.sqrt(p["rvar"] + EPS)
    shift = p["beta"] + scale * (p["b"] - p["rmean"])
    return scale[None, :].astype(jnp.float32), shift[None, :].astype(jnp.float32)


@jax.jit
def cnn_forward(x, params):
    """Fused Pallas forward. x: (B, L) float32 with L == 128."""
    B, L = x.shape
    assert L == 128, "torch.mean over channels feeds Linear(128, n) => L must be 128"
    p1, p2, p3 = params["convs"]
    n_classes = params["lin_w"].shape[0]

    # layer-1 im2col patches: row (b, t) = 64-tap window of 'same'-padded x
    xpad = jnp.pad(x, ((0, 0), (PAD1_L, PAD1_R)))                  # (B, L+63)
    idx = jnp.arange(L)[:, None] + jnp.arange(64)[None, :]         # (L, 64)
    patches = xpad[:, idx].reshape(B * L, 64).astype(jnp.bfloat16)
    w1 = jnp.transpose(p1["w"][:, 0, :]).astype(jnp.bfloat16)      # (64, 128)
    s1, t1 = _fold_bn(p1)

    # layers 2/3: torch (Cout,Cin,K) -> (K,Cin,Cout) -> tap pairs (K/2, 2*Cin, Cout)
    w2 = jnp.transpose(p2["w"], (2, 1, 0)).reshape(8, 256, 128).astype(jnp.bfloat16)
    s2, t2 = _fold_bn(p2)
    w3 = jnp.transpose(p3["w"], (2, 1, 0)).reshape(2, 256, 128).astype(jnp.bfloat16)
    s3, t3 = _fold_bn(p3)

    lw = jnp.transpose(params["lin_w"]).astype(jnp.float32)        # (128, n)
    lb = params["lin_b"][None, :].astype(jnp.float32)

    vmem = pl.BlockSpec(memory_space=pltpu.MemorySpace.VMEM)
    return pl.pallas_call(
        functools.partial(fused_cnn_kernel, B=B, L=L),
        out_shape=jax.ShapeDtypeStruct((B, n_classes), jnp.float32),
        in_specs=[vmem] * 12,
        out_specs=vmem,
        scratch_shapes=[
            pltpu.VMEM((B, L + 2 * PAD_OFF, 128), jnp.float32),    # padded activation
            pltpu.VMEM((B * L, 128), jnp.float32),                 # conv accumulator
        ],
        compiler_params=pltpu.CompilerParams(vmem_limit_bytes=32 * 1024 * 1024),
    )(patches, w1, s1, t1, w2, s2, t2, w3, s3, t3, lw, lb)


# --------------------------------------------------------------------------- #
# Deterministic parameter init (shapes from the module's __init__)
# --------------------------------------------------------------------------- #
def init_params(key, n_classes=1):
    cfg = [(1, 128, 64), (128, 128, 16), (128, 128, 4)]            # (Cin, Cout, K)
    params = {"convs": []}
    for cin, cout, k in cfg:
        key, kw, kb, kg, kbt, km, kv = jax.random.split(key, 7)
        params["convs"].append(dict(
            w=jax.random.normal(kw, (cout, cin, k), jnp.float32) * 0.05,  # torch (O,I,K)
            b=jax.random.normal(kb, (cout,), jnp.float32) * 0.05,
            gamma=1.0 + 0.1 * jax.random.normal(kg, (cout,), jnp.float32),
            beta=0.1 * jax.random.normal(kbt, (cout,), jnp.float32),
            rmean=0.1 * jax.random.normal(km, (cout,), jnp.float32),
            rvar=jnp.abs(jax.random.normal(kv, (cout,), jnp.float32)) + 0.5,
        ))
    key, kw, kb = jax.random.split(key, 3)
    params["lin_w"] = jax.random.normal(kw, (n_classes, 128), jnp.float32) * 0.05
    params["lin_b"] = jax.random.normal(kb, (n_classes,), jnp.float32) * 0.05
    return params


# --------------------------------------------------------------------------- #
# Pure-JAX reference (f32, HIGHEST precision)
# --------------------------------------------------------------------------- #
def reference_forward(x, params):
    h = x[:, None, :]                                              # (B, 1, L)  NCL
    for p, (left, right) in zip(params["convs"], SAME_PADS):
        h = jax.lax.conv_general_dilated(
            h, p["w"], window_strides=(1,), padding=[(left, right)],
            dimension_numbers=("NCH", "OIH", "NCH"),
            precision=jax.lax.Precision.HIGHEST)
        h = h + p["b"][None, :, None]
        h = (h - p["rmean"][None, :, None]) / jnp.sqrt(p["rvar"][None, :, None] + EPS)
        h = h * p["gamma"][None, :, None] + p["beta"][None, :, None]
        h = jnp.maximum(h, 0.0)
    m = jnp.mean(h, axis=1)                                        # (B, L)
    return jnp.dot(m, params["lin_w"].T,
                   precision=jax.lax.Precision.HIGHEST) + params["lin_b"][None, :]


if __name__ == "__main__":
    key = jax.random.PRNGKey(0)
    pkey, xkey = jax.random.split(key)
    params = init_params(pkey, n_classes=1)

    B, L = 2, 128   # L must be 128: mean over channels -> (B, L) feeds Linear(128, 1)
    x = jax.random.normal(xkey, (B, L), jnp.float32)

    out = jax.block_until_ready(cnn_forward(x, params))
    ref = jax.block_until_ready(reference_forward(x, params))

    assert out.shape == (B, 1), out.shape
    # bf16 MXU operands (with f32 accumulation) vs. the f32 HIGHEST-precision reference.
    if not jnp.allclose(out, ref, atol=2e-2, rtol=2e-2):
        raise AssertionError(
            f"mismatch (max abs diff {jnp.max(jnp.abs(out - ref))}):\n{out}\nvs\n{ref}")
    print("KERNEL_OK")
</pallas_src>

<mosaic_0001>
module attributes {stable_mosaic.version = 11 : i64} {
  func.func @fused_cnn_kernel(%arg0: memref<256x64xbf16, #tpu.memory_space<vmem>>, %arg1: memref<64x128xbf16, #tpu.memory_space<vmem>>, %arg2: memref<1x128xf32, #tpu.memory_space<vmem>>, %arg3: memref<1x128xf32, #tpu.memory_space<vmem>>, %arg4: memref<8x256x128xbf16, #tpu.memory_space<vmem>>, %arg5: memref<1x128xf32, #tpu.memory_space<vmem>>, %arg6: memref<1x128xf32, #tpu.memory_space<vmem>>, %arg7: memref<2x256x128xbf16, #tpu.memory_space<vmem>>, %arg8: memref<1x128xf32, #tpu.memory_space<vmem>>, %arg9: memref<1x128xf32, #tpu.memory_space<vmem>>, %arg10: memref<128x1xf32, #tpu.memory_space<vmem>>, %arg11: memref<1x1xf32, #tpu.memory_space<vmem>>, %arg12: memref<2x1xf32, #tpu.memory_space<vmem>>, %arg13: memref<2x160x128xf32, #tpu.memory_space<vmem>>, %arg14: memref<256x128xf32, #tpu.memory_space<vmem>>) attributes {dimension_semantics = [], scalar_prefetch = 0 : i64, scratch_operands = 2 : i64, tpu.core_type = #tpu.core_type<tc>} {
    %c0 = arith.constant 0 : index
    %c0_0 = arith.constant 0 : index
    %0 = vector.load %arg0[%c0, %c0_0] : memref<256x64xbf16, #tpu.memory_space<vmem>>, vector<256x64xbf16>
    %c0_1 = arith.constant 0 : index
    %c0_2 = arith.constant 0 : index
    %1 = vector.load %arg1[%c0_1, %c0_2] : memref<64x128xbf16, #tpu.memory_space<vmem>>, vector<64x128xbf16>
    %cst = arith.constant dense<0.000000e+00> : vector<256x128xf32>
    %2 = tpu.matmul %0, %1, %cst {dimension_numbers = #tpu.dot_dimension_numbers<[1], [0], [0], [1], [0, 0, 1, 1], [], []>} : vector<256x64xbf16>, vector<64x128xbf16>, vector<256x128xf32> -> vector<256x128xf32>
    %c0_3 = arith.constant 0 : index
    %c0_4 = arith.constant 0 : index
    %3 = vector.load %arg2[%c0_3, %c0_4] : memref<1x128xf32, #tpu.memory_space<vmem>>, vector<1x128xf32>
    %4 = vector.broadcast %3 : vector<1x128xf32> to vector<256x128xf32>
    %5 = arith.mulf %2, %4 : vector<256x128xf32>
    %c0_5 = arith.constant 0 : index
    %c0_6 = arith.constant 0 : index
    %6 = vector.load %arg3[%c0_5, %c0_6] : memref<1x128xf32, #tpu.memory_space<vmem>>, vector<1x128xf32>
    %7 = vector.broadcast %6 : vector<1x128xf32> to vector<256x128xf32>
    %8 = arith.addf %5, %7 : vector<256x128xf32>
    %cst_7 = arith.constant 0.000000e+00 : f32
    %9 = vector.broadcast %cst_7 : f32 to vector<256x128xf32>
    %10 = arith.maximumf %8, %9 : vector<256x128xf32>
    %cst_8 = arith.constant 0.000000e+00 : f32
    %11 = vector.broadcast %cst_8 : f32 to vector<2x160x128xf32>
    %c0_9 = arith.constant 0 : index
    %c0_10 = arith.constant 0 : index
    %c0_11 = arith.constant 0 : index
    %12 = vector.load %arg13[%c0_9, %c0_10, %c0_11] : memref<2x160x128xf32, #tpu.memory_space<vmem>>, vector<2x160x128xf32>
    tpu.vector_store %arg13[%c0_9, %c0_10, %c0_11], %11 {strides = array<i32>} : memref<2x160x128xf32, #tpu.memory_space<vmem>>, vector<2x160x128xf32>,
    %13 = vector.shape_cast %10 : vector<256x128xf32> to vector<2x128x128xf32>
    %c0_12 = arith.constant 0 : index
    %c16 = arith.constant 16 : index
    %c0_13 = arith.constant 0 : index
    %14 = vector.load %arg13[%c0_12, %c16, %c0_13] : memref<2x160x128xf32, #tpu.memory_space<vmem>>, vector<2x128x128xf32>
    tpu.vector_store %arg13[%c0_12, %c16, %c0_13], %13 {strides = array<i32>} : memref<2x160x128xf32, #tpu.memory_space<vmem>>, vector<2x128x128xf32>,
    %cst_14 = arith.constant 0.000000e+00 : f32
    %15 = vector.broadcast %cst_14 : f32 to vector<256x128xf32>
    %c0_15 = arith.constant 0 : index
    %c0_16 = arith.constant 0 : index
    %16 = vector.load %arg14[%c0_15, %c0_16] : memref<256x128xf32, #tpu.memory_space<vmem>>, vector<256x128xf32>
    tpu.vector_store %arg14[%c0_15, %c0_16], %15 {strides = array<i32>} : memref<256x128xf32, #tpu.memory_space<vmem>>, vector<256x128xf32>,
    %c0_17 = arith.constant 0 : index
    %c9 = arith.constant 9 : index
    %c0_18 = arith.constant 0 : index
    %17 = vector.load %arg13[%c0_17, %c9, %c0_18] : memref<2x160x128xf32, #tpu.memory_space<vmem>>, vector<2x128x128xf32>
    %c0_19 = arith.constant 0 : index
    %c10 = arith.constant 10 : index
    %c0_20 = arith.constant 0 : index
    %18 = vector.load %arg13[%c0_19, %c10, %c0_20] : memref<2x160x128xf32, #tpu.memory_space<vmem>>, vector<2x128x128xf32>
    %19 = vector.shape_cast %17 : vector<2x128x128xf32> to vector<256x128xf32>
    %20 = vector.shape_cast %18 : vector<2x128x128xf32> to vector<256x128xf32>
    %21 = tpu.concatenate %19, %20 in 1 : vector<256x128xf32>, vector<256x128xf32> -> vector<256x256xf32>
    %22 = arith.truncf %21 : vector<256x256xf32> to vector<256x256xbf16>
    %c0_21 = arith.constant 0 : index
    %c0_22 = arith.constant 0 : index
    %23 = vector.load %arg14[%c0_21, %c0_22] : memref<256x128xf32, #tpu.memory_space<vmem>>, vector<256x128xf32>
    %c0_23 = arith.constant 0 : index
    %c0_24 = arith.constant 0 : index
    %c0_25 = arith.constant 0 : index
    %24 = vector.load %arg4[%c0_23, %c0_24, %c0_25] : memref<8x256x128xbf16, #tpu.memory_space<vmem>>, vector<1x256x128xbf16>
    %25 = vector.shape_cast %24 : vector<1x256x128xbf16> to vector<256x128xbf16>
    %cst_26 = arith.constant dense<0.000000e+00> : vector<256x128xf32>
    %26 = tpu.matmul %22, %25, %cst_26 {dimension_numbers = #tpu.dot_dimension_numbers<[1], [0], [0], [1], [0, 0, 1, 1], [], []>} : vector<256x256xbf16>, vector<256x128xbf16>, vector<256x128xf32> -> vector<256x128xf32>
    %27 = arith.addf %23, %26 : vector<256x128xf32>
    %c0_27 = arith.constant 0 : index
    %c0_28 = arith.constant 0 : index
    %28 = vector.load %arg14[%c0_27, %c0_28] : memref<256x128xf32, #tpu.memory_space<vmem>>, vector<256x128xf32>
    tpu.vector_store %arg14[%c0_27, %c0_28], %27 {strides = array<i32>} : memref<256x128xf32, #tpu.memory_space<vmem>>, vector<256x128xf32>,
    %c0_29 = arith.constant 0 : index
    %c11 = arith.constant 11 : index
    %c0_30 = arith.constant 0 : index
    %29 = vector.load %arg13[%c0_29, %c11, %c0_30] : memref<2x160x128xf32, #tpu.memory_space<vmem>>, vector<2x128x128xf32>
    %c0_31 = arith.constant 0 : index
    %c12 = arith.constant 12 : index
    %c0_32 = arith.constant 0 : index
    %30 = vector.load %arg13[%c0_31, %c12, %c0_32] : memref<2x160x128xf32, #tpu.memory_space<vmem>>, vector<2x128x128xf32>
    %31 = vector.shape_cast %29 : vector<2x128x128xf32> to vector<256x128xf32>
    %32 = vector.shape_cast %30 : vector<2x128x128xf32> to vector<256x128xf32>
    %33 = tpu.concatenate %31, %32 in 1 : vector<256x128xf32>, vector<256x128xf32> -> vector<256x256xf32>
    %34 = arith.truncf %33 : vector<256x256xf32> to vector<256x256xbf16>
    %c0_33 = arith.constant 0 : index
    %c0_34 = arith.constant 0 : index
    %35 = vector.load %arg14[%c0_33, %c0_34] : memref<256x128xf32, #tpu.memory_space<vmem>>, vector<256x128xf32>
    %c1 = arith.constant 1 : index
    %c0_35 = arith.constant 0 : index
    %c0_36 = arith.constant 0 : index
    %36 = vector.load %arg4[%c1, %c0_35, %c0_36] : memref<8x256x128xbf16, #tpu.memory_space<vmem>>, vector<1x256x128xbf16>
    %37 = vector.shape_cast %36 : vector<1x256x128xbf16> to vector<256x128xbf16>
    %cst_37 = arith.constant dense<0.000000e+00> : vector<256x128xf32>
    %38 = tpu.matmul %34, %37, %cst_37 {dimension_numbers = #tpu.dot_dimension_numbers<[1], [0], [0], [1], [0, 0, 1, 1], [], []>} : vector<256x256xbf16>, vector<256x128xbf16>, vector<256x128xf32> -> vector<256x128xf32>
    %39 = arith.addf %35, %38 : vector<256x128xf32>
    %c0_38 = arith.constant 0 : index
    %c0_39 = arith.constant 0 : index
    %40 = vector.load %arg14[%c0_38, %c0_39] : memref<256x128xf32, #tpu.memory_space<vmem>>, vector<256x128xf32>
    tpu.vector_store %arg14[%c0_38, %c0_39], %39 {strides = array<i32>} : memref<256x128xf32, #tpu.memory_space<vmem>>, vector<256x128xf32>,
    %c0_40 = arith.constant 0 : index
    %c13 = arith.constant 13 : index
    %c0_41 = arith.constant 0 : index
    %41 = vector.load %arg13[%c0_40, %c13, %c0_41] : memref<2x160x128xf32, #tpu.memory_space<vmem>>, vector<2x128x128xf32>
    %c0_42 = arith.constant 0 : index
    %c14 = arith.constant 14 : index
    %c0_43 = arith.constant 0 : index
    %42 = vector.load %arg13[%c0_42, %c14, %c0_43] : memref<2x160x128xf32, #tpu.memory_space<vmem>>, vector<2x128x128xf32>
    %43 = vector.shape_cast %41 : vector<2x128x128xf32> to vector<256x128xf32>
    %44 = vector.shape_cast %42 : vector<2x128x128xf32> to vector<256x128xf32>
    %45 = tpu.concatenate %43, %44 in 1 : vector<256x128xf32>, vector<256x128xf32> -> vector<256x256xf32>
    %46 = arith.truncf %45 : vector<256x256xf32> to vector<256x256xbf16>
    %c0_44 = arith.constant 0 : index
    %c0_45 = arith.constant 0 : index
    %47 = vector.load %arg14[%c0_44, %c0_45] : memref<256x128xf32, #tpu.memory_space<vmem>>, vector<256x128xf32>
    %c2 = arith.constant 2 : index
    %c0_46 = arith.constant 0 : index
    %c0_47 = arith.constant 0 : index
    %48 = vector.load %arg4[%c2, %c0_46, %c0_47] : memref<8x256x128xbf16, #tpu.memory_space<vmem>>, vector<1x256x128xbf16>
    %49 = vector.shape_cast %48 : vector<1x256x128xbf16> to vector<256x128xbf16>
    %cst_48 = arith.constant dense<0.000000e+00> : vector<256x128xf32>
    %50 = tpu.matmul %46, %49, %cst_48 {dimension_numbers = #tpu.dot_dimension_numbers<[1], [0], [0], [1], [0, 0, 1, 1], [], []>} : vector<256x256xbf16>, vector<256x128xbf16>, vector<256x128xf32> -> vector<256x128xf32>
    %51 = arith.addf %47, %50 : vector<256x128xf32>
    %c0_49 = arith.constant 0 : index
    %c0_50 = arith.constant 0 : index
    %52 = vector.load %arg14[%c0_49, %c0_50] : memref<256x128xf32, #tpu.memory_space<vmem>>, vector<256x128xf32>
    tpu.vector_store %arg14[%c0_49, %c0_50], %51 {strides = array<i32>} : memref<256x128xf32, #tpu.memory_space<vmem>>, vector<256x128xf32>,
    %c0_51 = arith.constant 0 : index
    %c15 = arith.constant 15 : index
    %c0_52 = arith.constant 0 : index
    %53 = vector.load %arg13[%c0_51, %c15, %c0_52] : memref<2x160x128xf32, #tpu.memory_space<vmem>>, vector<2x128x128xf32>
    %c0_53 = arith.constant 0 : index
    %c16_54 = arith.constant 16 : index
    %c0_55 = arith.constant 0 : index
    %54 = vector.load %arg13[%c0_53, %c16_54, %c0_55] : memref<2x160x128xf32, #tpu.memory_space<vmem>>, vector<2x128x128xf32>
    %55 = vector.shape_cast %53 : vector<2x128x128xf32> to vector<256x128xf32>
    %56 = vector.shape_cast %54 : vector<2x128x128xf32> to vector<256x128xf32>
    %57 = tpu.concatenate %55, %56 in 1 : vector<256x128xf32>, vector<256x128xf32> -> vector<256x256xf32>
    %58 = arith.truncf %57 : vector<256x256xf32> to vector<256x256xbf16>
    %c0_56 = arith.constant 0 : index
    %c0_57 = arith.constant 0 : index
    %59 = vector.load %arg14[%c0_56, %c0_57] : memref<256x128xf32, #tpu.memory_space<vmem>>, vector<256x128xf32>
    %c3 = arith.constant 3 : index
    %c0_58 = arith.constant 0 : index
    %c0_59 = arith.constant 0 : index
    %60 = vector.load %arg4[%c3, %c0_58, %c0_59] : memref<8x256x128xbf16, #tpu.memory_space<vmem>>, vector<1x256x128xbf16>
    %61 = vector.shape_cast %60 : vector<1x256x128xbf16> to vector<256x128xbf16>
    %cst_60 = arith.constant dense<0.000000e+00> : vector<256x128xf32>
    %62 = tpu.matmul %58, %61, %cst_60 {dimension_numbers = #tpu.dot_dimension_numbers<[1], [0], [0], [1], [0, 0, 1, 1], [], []>} : vector<256x256xbf16>, vector<256x128xbf16>, vector<256x128xf32> -> vector<256x128xf32>
    %63 = arith.addf %59, %62 : vector<256x128xf32>
    %c0_61 = arith.constant 0 : index
    %c0_62 = arith.constant 0 : index
    %64 = vector.load %arg14[%c0_61, %c0_62] : memref<256x128xf32, #tpu.memory_space<vmem>>, vector<256x128xf32>
    tpu.vector_store %arg14[%c0_61, %c0_62], %63 {strides = array<i32>} : memref<256x128xf32, #tpu.memory_space<vmem>>, vector<256x128xf32>,
    %c0_63 = arith.constant 0 : index
    %c17 = arith.constant 17 : index
    %c0_64 = arith.constant 0 : index
    %65 = vector.load %arg13[%c0_63, %c17, %c0_64] : memref<2x160x128xf32, #tpu.memory_space<vmem>>, vector<2x128x128xf32>
    %c0_65 = arith.constant 0 : index
    %c18 = arith.constant 18 : index
    %c0_66 = arith.constant 0 : index
    %66 = vector.load %arg13[%c0_65, %c18, %c0_66] : memref<2x160x128xf32, #tpu.memory_space<vmem>>, vector<2x128x128xf32>
    %67 = vector.shape_cast %65 : vector<2x128x128xf32> to vector<256x128xf32>
    %68 = vector.shape_cast %66 : vector<2x128x128xf32> to vector<256x128xf32>
    %69 = tpu.concatenate %67, %68 in 1 : vector<256x128xf32>, vector<256x128xf32> -> vector<256x256xf32>
    %70 = arith.truncf %69 : vector<256x256xf32> to vector<256x256xbf16>
    %c0_67 = arith.constant 0 : index
    %c0_68 = arith.constant 0 : index
    %71 = vector.load %arg14[%c0_67, %c0_68] : memref<256x128xf32, #tpu.memory_space<vmem>>, vector<256x128xf32>
    %c4 = arith.constant 4 : index
    %c0_69 = arith.constant 0 : index
    %c0_70 = arith.constant 0 : index
    %72 = vector.load %arg4[%c4, %c0_69, %c0_70] : memref<8x256x128xbf16, #tpu.memory_space<vmem>>, vector<1x256x128xbf16>
    %73 = vector.shape_cast %72 : vector<1x256x128xbf16> to vector<256x128xbf16>
    %cst_71 = arith.constant dense<0.000000e+00> : vector<256x128xf32>
    %74 = tpu.matmul %70, %73, %cst_71 {dimension_numbers = #tpu.dot_dimension_numbers<[1], [0], [0], [1], [0, 0, 1, 1], [], []>} : vector<256x256xbf16>, vector<256x128xbf16>, vector<256x128xf32> -> vector<256x128xf32>
    %75 = arith.addf %71, %74 : vector<256x128xf32>
    %c0_72 = arith.constant 0 : index
    %c0_73 = arith.constant 0 : index
    %76 = vector.load %arg14[%c0_72, %c0_73] : memref<256x128xf32, #tpu.memory_space<vmem>>, vector<256x128xf32>
    tpu.vector_store %arg14[%c0_72, %c0_73], %75 {strides = array<i32>} : memref<256x128xf32, #tpu.memory_space<vmem>>, vector<256x128xf32>,
    %c0_74 = arith.constant 0 : index
    %c19 = arith.constant 19 : index
    %c0_75 = arith.constant 0 : index
    %77 = vector.load %arg13[%c0_74, %c19, %c0_75] : memref<2x160x128xf32, #tpu.memory_space<vmem>>, vector<2x128x128xf32>
    %c0_76 = arith.constant 0 : index
    %c20 = arith.constant 20 : index
    %c0_77 = arith.constant 0 : index
    %78 = vector.load %arg13[%c0_76, %c20, %c0_77] : memref<2x160x128xf32, #tpu.memory_space<vmem>>, vector<2x128x128xf32>
    %79 = vector.shape_cast %77 : vector<2x128x128xf32> to vector<256x128xf32>
    %80 = vector.shape_cast %78 : vector<2x128x128xf32> to vector<256x128xf32>
    %81 = tpu.concatenate %79, %80 in 1 : vector<256x128xf32>, vector<256x128xf32> -> vector<256x256xf32>
    %82 = arith.truncf %81 : vector<256x256xf32> to vector<256x256xbf16>
    %c0_78 = arith.constant 0 : index
    %c0_79 = arith.constant 0 : index
    %83 = vector.load %arg14[%c0_78, %c0_79] : memref<256x128xf32, #tpu.memory_space<vmem>>, vector<256x128xf32>
    %c5 = arith.constant 5 : index
    %c0_80 = arith.constant 0 : index
    %c0_81 = arith.constant 0 : index
    %84 = vector.load %arg4[%c5, %c0_80, %c0_81] : memref<8x256x128xbf16, #tpu.memory_space<vmem>>, vector<1x256x128xbf16>
    %85 = vector.shape_cast %84 : vector<1x256x128xbf16> to vector<256x128xbf16>
    %cst_82 = arith.constant dense<0.000000e+00> : vector<256x128xf32>
    %86 = tpu.matmul %82, %85, %cst_82 {dimension_numbers = #tpu.dot_dimension_numbers<[1], [0], [0], [1], [0, 0, 1, 1], [], []>} : vector<256x256xbf16>, vector<256x128xbf16>, vector<256x128xf32> -> vector<256x128xf32>
    %87 = arith.addf %83, %86 : vector<256x128xf32>
    %c0_83 = arith.constant 0 : index
    %c0_84 = arith.constant 0 : index
    %88 = vector.load %arg14[%c0_83, %c0_84] : memref<256x128xf32, #tpu.memory_space<vmem>>, vector<256x128xf32>
    tpu.vector_store %arg14[%c0_83, %c0_84], %87 {strides = array<i32>} : memref<256x128xf32, #tpu.memory_space<vmem>>, vector<256x128xf32>,
    %c0_85 = arith.constant 0 : index
    %c21 = arith.constant 21 : index
    %c0_86 = arith.constant 0 : index
    %89 = vector.load %arg13[%c0_85, %c21, %c0_86] : memref<2x160x128xf32, #tpu.memory_space<vmem>>, vector<2x128x128xf32>
    %c0_87 = arith.constant 0 : index
    %c22 = arith.constant 22 : index
    %c0_88 = arith.constant 0 : index
    %90 = vector.load %arg13[%c0_87, %c22, %c0_88] : memref<2x160x128xf32, #tpu.memory_space<vmem>>, vector<2x128x128xf32>
    %91 = vector.shape_cast %89 : vector<2x128x128xf32> to vector<256x128xf32>
    %92 = vector.shape_cast %90 : vector<2x128x128xf32> to vector<256x128xf32>
    %93 = tpu.concatenate %91, %92 in 1 : vector<256x128xf32>, vector<256x128xf32> -> vector<256x256xf32>
    %94 = arith.truncf %93 : vector<256x256xf32> to vector<256x256xbf16>
    %c0_89 = arith.constant 0 : index
    %c0_90 = arith.constant 0 : index
    %95 = vector.load %arg14[%c0_89, %c0_90] : memref<256x128xf32, #tpu.memory_space<vmem>>, vector<256x128xf32>
    %c6 = arith.constant 6 : index
    %c0_91 = arith.constant 0 : index
    %c0_92 = arith.constant 0 : index
    %96 = vector.load %arg4[%c6, %c0_91, %c0_92] : memref<8x256x128xbf16, #tpu.memory_space<vmem>>, vector<1x256x128xbf16>
    %97 = vector.shape_cast %96 : vector<1x256x128xbf16> to vector<256x128xbf16>
    %cst_93 = arith.constant dense<0.000000e+00> : vector<256x128xf32>
    %98 = tpu.matmul %94, %97, %cst_93 {dimension_numbers = #tpu.dot_dimension_numbers<[1], [0], [0], [1], [0, 0, 1, 1], [], []>} : vector<256x256xbf16>, vector<256x128xbf16>, vector<256x128xf32> -> vector<256x128xf32>
    %99 = arith.addf %95, %98 : vector<256x128xf32>
    %c0_94 = arith.constant 0 : index
    %c0_95 = arith.constant 0 : index
    %100 = vector.load %arg14[%c0_94, %c0_95] : memref<256x128xf32, #tpu.memory_space<vmem>>, vector<256x128xf32>
    tpu.vector_store %arg14[%c0_94, %c0_95], %99 {strides = array<i32>} : memref<256x128xf32, #tpu.memory_space<vmem>>, vector<256x128xf32>,
    %c0_96 = arith.constant 0 : index
    %c23 = arith.constant 23 : index
    %c0_97 = arith.constant 0 : index
    %101 = vector.load %arg13[%c0_96, %c23, %c0_97] : memref<2x160x128xf32, #tpu.memory_space<vmem>>, vector<2x128x128xf32>
    %c0_98 = arith.constant 0 : index
    %c24 = arith.constant 24 : index
    %c0_99 = arith.constant 0 : index
    %102 = vector.load %arg13[%c0_98, %c24, %c0_99] : memref<2x160x128xf32, #tpu.memory_space<vmem>>, vector<2x128x128xf32>
    %103 = vector.shape_cast %101 : vector<2x128x128xf32> to vector<256x128xf32>
    %104 = vector.shape_cast %102 : vector<2x128x128xf32> to vector<256x128xf32>
    %105 = tpu.concatenate %103, %104 in 1 : vector<256x128xf32>, vector<256x128xf32> -> vector<256x256xf32>
    %106 = arith.truncf %105 : vector<256x256xf32> to vector<256x256xbf16>
    %c0_100 = arith.constant 0 : index
    %c0_101 = arith.constant 0 : index
    %107 = vector.load %arg14[%c0_100, %c0_101] : memref<256x128xf32, #tpu.memory_space<vmem>>, vector<256x128xf32>
    %c7 = arith.constant 7 : index
    %c0_102 = arith.constant 0 : index
    %c0_103 = arith.constant 0 : index
    %108 = vector.load %arg4[%c7, %c0_102, %c0_103] : memref<8x256x128xbf16, #tpu.memory_space<vmem>>, vector<1x256x128xbf16>
    %109 = vector.shape_cast %108 : vector<1x256x128xbf16> to vector<256x128xbf16>
    %cst_104 = arith.constant dense<0.000000e+00> : vector<256x128xf32>
    %110 = tpu.matmul %106, %109, %cst_104 {dimension_numbers = #tpu.dot_dimension_numbers<[1], [0], [0], [1], [0, 0, 1, 1], [], []>} : vector<256x256xbf16>, vector<256x128xbf16>, vector<256x128xf32> -> vector<256x128xf32>
    %111 = arith.addf %107, %110 : vector<256x128xf32>
    %c0_105 = arith.constant 0 : index
    %c0_106 = arith.constant 0 : index
    %112 = vector.load %arg14[%c0_105, %c0_106] : memref<256x128xf32, #tpu.memory_space<vmem>>, vector<256x128xf32>
    tpu.vector_store %arg14[%c0_105, %c0_106], %111 {strides = array<i32>} : memref<256x128xf32, #tpu.memory_space<vmem>>, vector<256x128xf32>,
    %c0_107 = arith.constant 0 : index
    %c0_108 = arith.constant 0 : index
    %113 = vector.load %arg14[%c0_107, %c0_108] : memref<256x128xf32, #tpu.memory_space<vmem>>, vector<256x128xf32>
    %c0_109 = arith.constant 0 : index
    %c0_110 = arith.constant 0 : index
    %114 = vector.load %arg5[%c0_109, %c0_110] : memref<1x128xf32, #tpu.memory_space<vmem>>, vector<1x128xf32>
    %115 = vector.broadcast %114 : vector<1x128xf32> to vector<256x128xf32>
    %116 = arith.mulf %113, %115 : vector<256x128xf32>
    %c0_111 = arith.constant 0 : index
    %c0_112 = arith.constant 0 : index
    %117 = vector.load %arg6[%c0_111, %c0_112] : memref<1x128xf32, #tpu.memory_space<vmem>>, vector<1x128xf32>
    %118 = vector.broadcast %117 : vector<1x128xf32> to vector<256x128xf32>
    %119 = arith.addf %116, %118 : vector<256x128xf32>
    %cst_113 = arith.constant 0.000000e+00 : f32
    %120 = vector.broadcast %cst_113 : f32 to vector<256x128xf32>
    %121 = arith.maximumf %119, %120 : vector<256x128xf32>
    %122 = vector.shape_cast %121 : vector<256x128xf32> to vector<2x128x128xf32>
    %c0_114 = arith.constant 0 : index
    %c16_115 = arith.constant 16 : index
    %c0_116 = arith.constant 0 : index
    %123 = vector.load %arg13[%c0_114, %c16_115, %c0_116] : memref<2x160x128xf32, #tpu.memory_space<vmem>>, vector<2x128x128xf32>
    tpu.vector_store %arg13[%c0_114, %c16_115, %c0_116], %122 {strides = array<i32>} : memref<2x160x128xf32, #tpu.memory_space<vmem>>, vector<2x128x128xf32>,
    %cst_117 = arith.constant 0.000000e+00 : f32
    %124 = vector.broadcast %cst_117 : f32 to vector<256x128xf32>
    %c0_118 = arith.constant 0 : index
    %c0_119 = arith.constant 0 : index
    %125 = vector.load %arg14[%c0_118, %c0_119] : memref<256x128xf32, #tpu.memory_space<vmem>>, vector<256x128xf32>
    tpu.vector_store %arg14[%c0_118, %c0_119], %124 {strides = array<i32>} : memref<256x128xf32, #tpu.memory_space<vmem>>, vector<256x128xf32>,
    %c0_120 = arith.constant 0 : index
    %c15_121 = arith.constant 15 : index
    %c0_122 = arith.constant 0 : index
    %126 = vector.load %arg13[%c0_120, %c15_121, %c0_122] : memref<2x160x128xf32, #tpu.memory_space<vmem>>, vector<2x128x128xf32>
    %c0_123 = arith.constant 0 : index
    %c16_124 = arith.constant 16 : index
    %c0_125 = arith.constant 0 : index
    %127 = vector.load %arg13[%c0_123, %c16_124, %c0_125] : memref<2x160x128xf32, #tpu.memory_space<vmem>>, vector<2x128x128xf32>
    %128 = vector.shape_cast %126 : vector<2x128x128xf32> to vector<256x128xf32>
    %129 = vector.shape_cast %127 : vector<2x128x128xf32> to vector<256x128xf32>
    %130 = tpu.concatenate %128, %129 in 1 : vector<256x128xf32>, vector<256x128xf32> -> vector<256x256xf32>
    %131 = arith.truncf %130 : vector<256x256xf32> to vector<256x256xbf16>
    %c0_126 = arith.constant 0 : index
    %c0_127 = arith.constant 0 : index
    %132 = vector.load %arg14[%c0_126, %c0_127] : memref<256x128xf32, #tpu.memory_space<vmem>>, vector<256x128xf32>
    %c0_128 = arith.constant 0 : index
    %c0_129 = arith.constant 0 : index
    %c0_130 = arith.constant 0 : index
    %133 = vector.load %arg7[%c0_128, %c0_129, %c0_130] : memref<2x256x128xbf16, #tpu.memory_space<vmem>>, vector<1x256x128xbf16>
    %134 = vector.shape_cast %133 : vector<1x256x128xbf16> to vector<256x128xbf16>
    %cst_131 = arith.constant dense<0.000000e+00> : vector<256x128xf32>
    %135 = tpu.matmul %131, %134, %cst_131 {dimension_numbers = #tpu.dot_dimension_numbers<[1], [0], [0], [1], [0, 0, 1, 1], [], []>} : vector<256x256xbf16>, vector<256x128xbf16>, vector<256x128xf32> -> vector<256x128xf32>
    %136 = arith.addf %132, %135 : vector<256x128xf32>
    %c0_132 = arith.constant 0 : index
    %c0_133 = arith.constant 0 : index
    %137 = vector.load %arg14[%c0_132, %c0_133] : memref<256x128xf32, #tpu.memory_space<vmem>>, vector<256x128xf32>
    tpu.vector_store %arg14[%c0_132, %c0_133], %136 {strides = array<i32>} : memref<256x128xf32, #tpu.memory_space<vmem>>, vector<256x128xf32>,
    %c0_134 = arith.constant 0 : index
    %c17_135 = arith.constant 17 : index
    %c0_136 = arith.constant 0 : index
    %138 = vector.load %arg13[%c0_134, %c17_135, %c0_136] : memref<2x160x128xf32, #tpu.memory_space<vmem>>, vector<2x128x128xf32>
    %c0_137 = arith.constant 0 : index
    %c18_138 = arith.constant 18 : index
    %c0_139 = arith.constant 0 : index
    %139 = vector.load %arg13[%c0_137, %c18_138, %c0_139] : memref<2x160x128xf32, #tpu.memory_space<vmem>>, vector<2x128x128xf32>
    %140 = vector.shape_cast %138 : vector<2x128x128xf32> to vector<256x128xf32>
    %141 = vector.shape_cast %139 : vector<2x128x128xf32> to vector<256x128xf32>
    %142 = tpu.concatenate %140, %141 in 1 : vector<256x128xf32>, vector<256x128xf32> -> vector<256x256xf32>
    %143 = arith.truncf %142 : vector<256x256xf32> to vector<256x256xbf16>
    %c0_140 = arith.constant 0 : index
    %c0_141 = arith.constant 0 : index
    %144 = vector.load %arg14[%c0_140, %c0_141] : memref<256x128xf32, #tpu.memory_space<vmem>>, vector<256x128xf32>
    %c1_142 = arith.constant 1 : index
    %c0_143 = arith.constant 0 : index
    %c0_144 = arith.constant 0 : index
    %145 = vector.load %arg7[%c1_142, %c0_143, %c0_144] : memref<2x256x128xbf16, #tpu.memory_space<vmem>>, vector<1x256x128xbf16>
    %146 = vector.shape_cast %145 : vector<1x256x128xbf16> to vector<256x128xbf16>
    %cst_145 = arith.constant dense<0.000000e+00> : vector<256x128xf32>
    %147 = tpu.matmul %143, %146, %cst_145 {dimension_numbers = #tpu.dot_dimension_numbers<[1], [0], [0], [1], [0, 0, 1, 1], [], []>} : vector<256x256xbf16>, vector<256x128xbf16>, vector<256x128xf32> -> vector<256x128xf32>
    %148 = arith.addf %144, %147 : vector<256x128xf32>
    %c0_146 = arith.constant 0 : index
    %c0_147 = arith.constant 0 : index
    %149 = vector.load %arg14[%c0_146, %c0_147] : memref<256x128xf32, #tpu.memory_space<vmem>>, vector<256x128xf32>
    tpu.vector_store %arg14[%c0_146, %c0_147], %148 {strides = array<i32>} : memref<256x128xf32, #tpu.memory_space<vmem>>, vector<256x128xf32>,
    %c0_148 = arith.constant 0 : index
    %c0_149 = arith.constant 0 : index
    %150 = vector.load %arg14[%c0_148, %c0_149] : memref<256x128xf32, #tpu.memory_space<vmem>>, vector<256x128xf32>
    %c0_150 = arith.constant 0 : index
    %c0_151 = arith.constant 0 : index
    %151 = vector.load %arg8[%c0_150, %c0_151] : memref<1x128xf32, #tpu.memory_space<vmem>>, vector<1x128xf32>
    %152 = vector.broadcast %151 : vector<1x128xf32> to vector<256x128xf32>
    %153 = arith.mulf %150, %152 : vector<256x128xf32>
    %c0_152 = arith.constant 0 : index
    %c0_153 = arith.constant 0 : index
    %154 = vector.load %arg9[%c0_152, %c0_153] : memref<1x128xf32, #tpu.memory_space<vmem>>, vector<1x128xf32>
    %155 = vector.broadcast %154 : vector<1x128xf32> to vector<256x128xf32>
    %156 = arith.addf %153, %155 : vector<256x128xf32>
    %cst_154 = arith.constant 0.000000e+00 : f32
    %157 = vector.broadcast %cst_154 : f32 to vector<256x128xf32>
    %158 = arith.maximumf %156, %157 : vector<256x128xf32>
    %159 = vector.shape_cast %158 : vector<256x128xf32> to vector<2x128x128xf32>
    %cst_155 = arith.constant dense<0.000000e+00> : vector<2x128xf32>
    %160 = vector.multi_reduction <add>, %159, %cst_155 [2] : vector<2x128x128xf32> to vector<2x128xf32>
    %cst_156 = arith.constant 1.280000e+02 : f32
    %161 = vector.broadcast %cst_156 : f32 to vector<2x128xf32>
    %162 = arith.divf %160, %161 : vector<2x128xf32>
    %c0_157 = arith.constant 0 : index
    %c0_158 = arith.constant 0 : index
    %163 = vector.load %arg10[%c0_157, %c0_158] : memref<128x1xf32, #tpu.memory_space<vmem>>, vector<128x1xf32>
    %cst_159 = arith.constant dense<0.000000e+00> : vector<2x1xf32>
    %164 = tpu.matmul %162, %163, %cst_159 {dimension_numbers = #tpu.dot_dimension_numbers<[1], [0], [0], [1], [0, 0, 1, 1], [], []>} : vector<2x128xf32>, vector<128x1xf32>, vector<2x1xf32> -> vector<2x1xf32>
    %c0_160 = arith.constant 0 : index
    %c0_161 = arith.constant 0 : index
    %165 = vector.load %arg11[%c0_160, %c0_161] : memref<1x1xf32, #tpu.memory_space<vmem>>, vector<1x1xf32>
    %166 = vector.broadcast %165 : vector<1x1xf32> to vector<2x1xf32>
    %167 = arith.addf %164, %166 : vector<2x1xf32>
    %c0_162 = arith.constant 0 : index
    %c0_163 = arith.constant 0 : index
    %168 = vector.load %arg12[%c0_162, %c0_163] : memref<2x1xf32, #tpu.memory_space<vmem>>, vector<2x1xf32>
    tpu.vector_store %arg12[%c0_162, %c0_163], %167 {strides = array<i32>} : memref<2x1xf32, #tpu.memory_space<vmem>>, vector<2x1xf32>,
    return
  }
}

</mosaic_0001>

<bundles_post_ra>
// kernel: cnn_forward.1
= control target key start
LH: loop header
LB: loop body
LE: loop exit
PB: predicated region body
PF: predicated region fallthrough
CT: control target
= control target key end

     0   :  { %vm188_vm0 = vcmask 523264   ;;  %v7336_v40 = vmov 0.0   ;;  %vm6018_vm2 = vcmask 130112   ;;  %vm6022_vm3 = vcmask 195712   ;;  %s8904_s1 = inlined_call_operand.vmem [shape: bf16[64,128], index: 1, kind: input, shape index: {}]   ;;  %s8905_s2 = inlined_call_operand.vmem [shape: f32[1,128], index: 2, kind: input, shape index: {}]   ;;  %s8906_s3 = inlined_call_operand.vmem [shape: f32[1,128], index: 3, kind: input, shape index: {}]   ;;  %s8907_s0 = inlined_call_operand.vmem [shape: bf16[256,64], index: 0, kind: input, shape index: {}]   ;;  %s8908_s4 = inlined_call_operand.vmem [shape: bf16[8,256,128], index: 4, kind: input, shape index: {}]   ;;  %s8909_s7 = inlined_call_operand.vmem [shape: bf16[2,256,128], index: 7, kind: input, shape index: {}]   ;;  %s8910_s5 = inlined_call_operand.vmem [shape: f32[1,128], index: 5, kind: input, shape index: {}]   ;;  %s8911_s6 = inlined_call_operand.vmem [shape: f32[1,128], index: 6, kind: input, shape index: {}]   ;;  %s8912_s8 = inlined_call_operand.vmem [shape: f32[1,128], index: 8, kind: input, shape index: {}]   ;;  %s8913_s9 = inlined_call_operand.vmem [shape: f32[1,128], index: 9, kind: input, shape index: {}]   ;;  %s8914_s10 = inlined_call_operand.vmem [shape: f32[128,1], index: 10, kind: input, shape index: {}]   ;;  %s8915_s11 = inlined_call_operand.<no memory space> [shape: f32[1,1], index: 11, kind: input, shape index: {}]   ;;  %s8916_s12 = inlined_call_operand.vmem [shape: f32[2,1], index: 12, kind: output, shape index: {}]  }
   0x1   :  { %v7147_v0 = vld [vmem:[%s8904_s1 + $0x18] sm:$0xff]  ;;  %v7146_v1 = vld [vmem:[%s8904_s1 + $0x10] sm:$0xff]  ;;  %v7145_v2 = vld [vmem:[%s8904_s1 + $0x8] sm:$0xff]  ;;  %430 = vst [vmem:[#allocation2] sm:$0xff] %v7336_v40  ;;  %vm6026_vm4 = vcmask 261312   ;;  %vm6030_vm5 = vcmask 326912  }
   0x2   :  { %241 = vmatpush.bf16.msra.mxu0 %v7147_v0  ;;  %7308 = vmatpush.bf16.msra.mxu1 %v7147_v0  ;;  %v7144_v3 = vld [vmem:[%s8904_s1] sm:$0xff]  ;;  %v7133_v5 = vld [vmem:[%s8907_s0 + $0x28] sm:$0xff]  ;;  %v7134_v8 = vld [vmem:[%s8907_s0 + $0x30] sm:$0xff]  ;;  %431 = vst [vmem:[#allocation2 + $0x8] sm:$0xff] %v7336_v40  ;;  %vm6034_vm6 = vcmask 392512   ;;  %vm6038_vm7 = vcmask 458112  }
   0x3   :  { %7309 = vmatpush.bf16.msra.mxu2 %v7147_v0  ;;  %7310 = vmatpush.bf16.msra.mxu3 %v7147_v0  ;;  %v7128_v4 = vld [vmem:[%s8907_s0] sm:$0xff]  ;;  %v7137_v6 = vld [vmem:[%s8907_s0 + $0x48] sm:$0xff]  ;;  %v7138_v9 = vld [vmem:[%s8907_s0 + $0x50] sm:$0xff]  ;;  %448 = vst [vmem:[#allocation2 + $0x90] sm:$0xff] %v7336_v40  ;;  %vm6042_vm8 = vcmask 523712   ;;  %vm6046_vm9 = vcmask 589312  }
   0x4   :  { %v7129_v7 = vld [vmem:[%s8907_s0 + $0x8] sm:$0xff]  ;;  %v7130_v10 = vld [vmem:[%s8907_s0 + $0x10] sm:$0xff]  ;;  %v7135_v11 = vld [vmem:[%s8907_s0 + $0x38] sm:$0xff]  ;;  %451 = vst [vmem:[#allocation2 + $0xa8] sm:$0xff] %v7336_v40  ;;  %vm6050_vm10 = vcmask 654912   ;;  %vm6054_vm11 = vcmask 720512  }
   0x5   :  { %v7163_v12 = vld [vmem:[%s8908_s4 + $0x78] sm:$0xff]  ;;  %v7162_v15 = vld [vmem:[%s8908_s4 + $0x70] sm:$0xff]  ;;  %v7161_v20 = vld [vmem:[%s8908_s4 + $0x68] sm:$0xff]  ;;  %468 = vst [vmem:[#allocation2 + $0x130] sm:$0xff] %v7336_v40  ;;  %vm6058_vm12 = vcmask 786112   ;;  %vm6062_vm13 = vcmask 851712  }
   0x6   :  { %242 = vmatpush.bf16.msra.mxu0 %v7146_v1  ;;  %7311 = vmatpush.bf16.msra.mxu1 %v7146_v1  ;;  %v7179_v13 = vld [vmem:[%s8908_s4 + $0xf8] sm:$0xff]  ;;  %v7178_v16 = vld [vmem:[%s8908_s4 + $0xf0] sm:$0xff]  ;;  %v7177_v21 = vld [vmem:[%s8908_s4 + $0xe8] sm:$0xff]  ;;  %vm6066_vm14 = vcmask 917312   ;;  %vm6070_vm15 = vcmask 982912  }
   0x7   :  { %7312 = vmatpush.bf16.msra.mxu2 %v7146_v1  ;;  %7313 = vmatpush.bf16.msra.mxu3 %v7146_v1  ;;  %v7139_v14 = vld [vmem:[%s8907_s0 + $0x58] sm:$0xff]  ;;  %v7142_v18 = vld [vmem:[%s8907_s0 + $0x70] sm:$0xff]  ;;  %v7153_v23 = vld [vmem:[%s8908_s4 + $0x28] sm:$0xff] }
   0x8   :  { %v7155_v17 = vld [vmem:[%s8908_s4 + $0x38] sm:$0xff]  ;;  %v7154_v19 = vld [vmem:[%s8908_s4 + $0x30] sm:$0xff]  ;;  %v7160_v25 = vld [vmem:[%s8908_s4 + $0x60] sm:$0xff] }
   0x9   :  { %v7171_v22 = vld [vmem:[%s8908_s4 + $0xb8] sm:$0xff]  ;;  %v7170_v24 = vld [vmem:[%s8908_s4 + $0xb0] sm:$0xff]  ;;  %v7176_v26 = vld [vmem:[%s8908_s4 + $0xe0] sm:$0xff] }
   0xa   :  { %243 = vmatpush.bf16.msra.mxu0 %v7145_v2  ;;  %7314 = vmatpush.bf16.msra.mxu1 %v7145_v2  ;;  %v7131_v27 = vld [vmem:[%s8907_s0 + $0x18] sm:$0xff]  ;;  %v7136_v28 = vld [vmem:[%s8907_s0 + $0x40] sm:$0xff]  ;;  %v7158_v35 = vld [vmem:[%s8908_s4 + $0x50] sm:$0xff] }
   0xb   :  { %7315 = vmatpush.bf16.msra.mxu2 %v7145_v2  ;;  %7316 = vmatpush.bf16.msra.mxu3 %v7145_v2  ;;  %v7152_v29 = vld [vmem:[%s8908_s4 + $0x20] sm:$0xff]  ;;  %v7159_v30 = vld [vmem:[%s8908_s4 + $0x58] sm:$0xff]  ;;  %v7141_v37 = vld [vmem:[%s8907_s0 + $0x68] sm:$0xff] }
   0xc   :  { %v7175_v31 = vld [vmem:[%s8908_s4 + $0xd8] sm:$0xff]  ;;  %v7140_v32 = vld [vmem:[%s8907_s0 + $0x60] sm:$0xff]  ;;  %v7169_v38 = vld [vmem:[%s8908_s4 + $0xa8] sm:$0xff] }
   0xd   :  { %v7143_v33 = vld [vmem:[%s8907_s0 + $0x78] sm:$0xff]  ;;  %v7132_v36 = vld [vmem:[%s8907_s0 + $0x20] sm:$0xff]  ;;  %v7174_v41 = vld [vmem:[%s8908_s4 + $0xd0] sm:$0xff] }
   0xe   :  { %244 = vmatpush.bf16.msra.mxu0 %v7144_v3  ;;  %7317 = vmatpush.bf16.msra.mxu1 %v7144_v3  ;;  %v7151_v34 = vld [vmem:[%s8908_s4 + $0x18] sm:$0xff]  ;;  %v7168_v39 = vld [vmem:[%s8908_s4 + $0xa0] sm:$0xff]  ;;  %v7157_v42 = vld [vmem:[%s8908_s4 + $0x48] sm:$0xff] }
   0xf   :  { %7318 = vmatpush.bf16.msra.mxu2 %v7144_v3  ;;  %7319 = vmatpush.bf16.msra.mxu3 %v7144_v3  ;;  %v7150_v43 = vld [vmem:[%s8908_s4 + $0x10] sm:$0xff]  ;;  %v7167_v44 = vld [vmem:[%s8908_s4 + $0x98] sm:$0xff]  ;;  %v7173_v46 = vld [vmem:[%s8908_s4 + $0xc8] sm:$0xff] }
  0x10   :  { %v7166_v45 = vld [vmem:[%s8908_s4 + $0x90] sm:$0xff]  ;;  %v7149_v47 = vld [vmem:[%s8908_s4 + $0x8] sm:$0xff]  ;;  %v7156_v48 = vld [vmem:[%s8908_s4 + $0x40] sm:$0xff] }
  0x11   :  { %6216 = vmatmul.msk.bf16.vlgmr.msra.gmra.mxu0 %vm188_vm0, %v7128_v4  ;;  %6221 = vmatmul.msk.bf16.vlgmr.msra.gmra.mxu1 %vm188_vm0, %v7133_v5  ;;  %v7165_v49 = vld [vmem:[%s8908_s4 + $0x88] sm:$0xff]  ;;  %v7164_v50 = vld [vmem:[%s8908_s4 + $0x80] sm:$0xff]  ;;  %v7195_v55 = vld [vmem:[%s8908_s4 + $0x178] sm:$0xff] }
  0x12   :  { %6225 = vmatmul.msk.bf16.vlgmr.msra.gmra.mxu2 %vm188_vm0, %v7137_v6  ;;  %1378 = vmatpush.bf16.msrb.mxu0 %v7179_v13  ;;  %v7172_v51 = vld [vmem:[%s8908_s4 + $0xc0] sm:$0xff]  ;;  %v7203_v56 = vld [vmem:[%s8908_s4 + $0x1b8] sm:$0xff] }
  0x13   :  { %879 = vmatpush.bf16.msrb.mxu2 %v7163_v12  ;;  %790 = vmatpush.bf16.msrb.mxu1 %v7155_v17  ;;  %v7148_v52 = vld [vmem:[%s8908_s4] sm:$0xff]  ;;  %v7187_v57 = vld [vmem:[%s8908_s4 + $0x138] sm:$0xff] }
  0x14   :  { %6230 = vmatmul.msk.bf16.vlgmr.msra.gmra.mxu3 %vm188_vm0, %v7142_v18  ;;  %v7578_v53 = vld [vmem:[%s8905_s2] ss:$0 sm:$0xff]  ;;  %v7211_v60 = vld [vmem:[%s8908_s4 + $0x1f8] sm:$0xff] }
  0x15   :  { %1289 = vmatpush.bf16.msrb.mxu3 %v7171_v22  ;;  %v7583_v54 = vld [vmem:[%s8906_s3] ss:$0 sm:$0xff] }
  0x16   :  { %1379 = vmatpush.bf16.msrb.mxu0 %v7178_v16 }
  0x17   :  { %880 = vmatpush.bf16.msrb.mxu2 %v7162_v15  ;;  %791 = vmatpush.bf16.msrb.mxu1 %v7154_v19 }
  0x19   :  { %1290 = vmatpush.bf16.msrb.mxu3 %v7170_v24 }
  0x1a   :  { %1380 = vmatpush.bf16.msrb.mxu0 %v7177_v21 }
  0x1b   :  { %881 = vmatpush.bf16.msrb.mxu2 %v7161_v20  ;;  %792 = vmatpush.bf16.msrb.mxu1 %v7153_v23 }
  0x1d   :  { %1291 = vmatpush.bf16.msrb.mxu3 %v7169_v38 }
  0x1e   :  { %1381 = vmatpush.bf16.msrb.mxu0 %v7176_v26 }
  0x1f   :  { %882 = vmatpush.bf16.msrb.mxu2 %v7160_v25  ;;  %793 = vmatpush.bf16.msrb.mxu1 %v7152_v29 }
  0x21   :  { %6217 = vmatmul.msk.bf16.gmra.mxu0 %vm188_vm0, %v7129_v7  ;;  %6222 = vmatmul.msk.bf16.gmra.mxu1 %vm188_vm0, %v7134_v8 }
  0x22   :  { %6226 = vmatmul.msk.bf16.gmra.mxu2 %vm188_vm0, %v7138_v9  ;;  %1382 = vmatpush.bf16.msrb.mxu0 %v7175_v31 }
  0x23   :  { %883 = vmatpush.bf16.msrb.mxu2 %v7159_v30  ;;  %794 = vmatpush.bf16.msrb.mxu1 %v7151_v34 }
  0x24   :  { %6231 = vmatmul.msk.bf16.gmra.mxu3 %vm188_vm0, %v7143_v33 }
  0x25   :  { %1292 = vmatpush.bf16.msrb.mxu3 %v7168_v39 }
  0x26   :  { %1383 = vmatpush.bf16.msrb.mxu0 %v7174_v41 }
  0x27   :  { %884 = vmatpush.bf16.msrb.mxu2 %v7158_v35  ;;  %795 = vmatpush.bf16.msrb.mxu1 %v7150_v43 }
  0x29   :  { %1293 = vmatpush.bf16.msrb.mxu3 %v7167_v44  ;;  %v7194_v44 = vld [vmem:[%s8908_s4 + $0x170] sm:$0xff] }
  0x2a   :  { %1384 = vmatpush.bf16.msrb.mxu0 %v7173_v46 }
  0x2b   :  { %885 = vmatpush.bf16.msrb.mxu2 %v7157_v42  ;;  %796 = vmatpush.bf16.msrb.mxu1 %v7149_v47 }
  0x2d   :  { %1294 = vmatpush.bf16.msrb.mxu3 %v7166_v45  ;;  %v7202_v45 = vld [vmem:[%s8908_s4 + $0x1b0] sm:$0xff] }
  0x2e   :  { %1385 = vmatpush.bf16.msrb.mxu0 %v7172_v51 }
  0x2f   :  { %886 = vmatpush.bf16.msrb.mxu2 %v7156_v48  ;;  %797 = vmatpush.bf16.msrb.mxu1 %v7148_v52 }
  0x31   :  { %6218 = vmatmul.msk.bf16.gmra.mxu0 %vm188_vm0, %v7130_v10  ;;  %6223 = vmatmul.msk.bf16.gmra.mxu1 %vm188_vm0, %v7135_v11 }
  0x32   :  { %6227 = vmatmul.msk.bf16.gmra.mxu2 %vm188_vm0, %v7139_v14  ;;  %1295 = vmatpush.bf16.msrb.mxu3 %v7165_v49  ;;  %v7186_v49 = vld [vmem:[%s8908_s4 + $0x130] sm:$0xff] }
  0x33   :  { %1877 = vmatpush.bf16.msra.mxu2 %v7195_v55  ;;  %1788 = vmatpush.bf16.msra.mxu1 %v7187_v57 }
  0x34   :  { %2376 = vmatpush.bf16.msra.mxu0 %v7211_v60 }
  0x36   :  { %1296 = vmatpush.bf16.msrb.mxu3 %v7164_v50  ;;  %v7210_v50 = vld [vmem:[%s8908_s4 + $0x1f0] sm:$0xff] }
  0x37   :  { %1878 = vmatpush.bf16.msra.mxu2 %v7194_v44  ;;  %1789 = vmatpush.bf16.msra.mxu1 %v7186_v49 }
  0x38   :  { %2377 = vmatpush.bf16.msra.mxu0 %v7210_v50 }
  0x3a   :  { %2287 = vmatpush.bf16.msra.mxu3 %v7203_v56 }
  0x3e   :  { %2288 = vmatpush.bf16.msra.mxu3 %v7202_v45 }
  0x41   :  { %6219 = vmatmul.msk.bf16.gmra.mxu0 %vm188_vm0, %v7131_v27  ;;  %6224 = vmatmul.msk.bf16.gmra.mxu1 %vm188_vm0, %v7136_v28 }
  0x42   :  { %6228 = vmatmul.msk.bf16.gmra.mxu2 %vm188_vm0, %v7140_v32 }
  0x51   :  { %6220 = vmatmul.msk.bf16.gmra.mxu0 %vm188_vm0, %v7132_v36 }
  0x52   :  { %6229 = vmatmul.msk.bf16.gmra.mxu2 %vm188_vm0, %v7141_v37  ;;  %vm6074_vm0 = vcmask 1048512  }
  0x8e   :  { %v246_v58 = vpop.f32.mrf.mxu0  ;;  %v271_v59 = vpop.f32.mrf.mxu1 }
  0x8f   :  { %v330_v61 = vmul.f32 %v7578_v53, %v246_v58  ;;  %v340_v62 = vmul.f32 %v7578_v53, %v271_v59 }
  0x91   :  { %v366_v63 = vadd.f32 %v7583_v54, %v330_v61  ;;  %v376_v0 = vadd.f32 %v7583_v54, %v340_v62 }
  0x93   :  { %v398_v1 = vmax.f32 %v366_v63, 0.0  ;;  %v408_v2 = vmax.f32 %v376_v0, 0.0 }
  0x95   :  { %470 = vst [vmem:[#allocation2 + $0x10] sm:$0xff] %v398_v1  ;;  %v291_v22 = vpop.f32.mrf.mxu2 }
  0x96   :  { %v248_v3 = vpop.f32.mrf.mxu0  ;;  %480 = vst [vmem:[#allocation2 + $0x60] sm:$0xff] %v408_v2  ;;  %v273_v4 = vpop.f32.mrf.mxu1  ;;  %v348_v31 = vmul.f32 %v7578_v53, %v291_v22 }
  0x97   :  { %v331_v5 = vmul.f32 %v7578_v53, %v248_v3  ;;  %v341_v6 = vmul.f32 %v7578_v53, %v273_v4 }
  0x98   :  { %v384_v37 = vadd.f32 %v7583_v54, %v348_v31 }
  0x99   :  { %v367_v7 = vadd.f32 %v7583_v54, %v331_v5  ;;  %v377_v8 = vadd.f32 %v7583_v54, %v341_v6 }
  0x9a   :  { %v416_v40 = vmax.f32 %v384_v37, 0.0 }
  0x9b   :  { %v399_v9 = vmax.f32 %v367_v7, 0.0  ;;  %v409_v10 = vmax.f32 %v377_v8, 0.0 }
  0x9c   :  { %v534_v18 = vld [vmem:[#allocation2 + $0x9] sm:$0xff]  ;;  %488 = vst [vmem:[#allocation2 + $0xc0] sm:$0xff] %v416_v40 }
  0x9d   :  { %471 = vst [vmem:[#allocation2 + $0x18] sm:$0xff] %v399_v9  ;;  %v566_v19 = vld [vmem:[#allocation2 + $0xa] sm:$0xff]  ;;  %v293_v43 = vpop.f32.mrf.mxu2 }
  0x9e   :  { %v251_v11 = vpop.f32.mrf.mxu0  ;;  %481 = vst [vmem:[#allocation2 + $0x68] sm:$0xff] %v409_v10  ;;  %v276_v12 = vpop.f32.mrf.mxu1  ;;  %v1032_v20 = vld [vmem:[#allocation2 + $0xb] sm:$0xff]  ;;  %v349_v46 = vmul.f32 %v7578_v53, %v293_v43 }
  0x9f   :  { %v332_v13 = vmul.f32 %v7578_v53, %v251_v11  ;;  %v342_v14 = vmul.f32 %v7578_v53, %v276_v12  ;;  %v1064_v29 = vld [vmem:[#allocation2 + $0xc] sm:$0xff] }
  0xa0   :  { %v385_v55 = vadd.f32 %v7583_v54, %v349_v46 }
  0xa1   :  { %v368_v15 = vadd.f32 %v7583_v54, %v332_v13  ;;  %v378_v16 = vadd.f32 %v7583_v54, %v342_v14 }
  0xa2   :  { %v417_v58 = vmax.f32 %v385_v55, 0.0  ;;  %v7193_v55 = vld [vmem:[%s8908_s4 + $0x168] sm:$0xff] }
  0xa3   :  { %v400_v17 = vmax.f32 %v368_v15, 0.0  ;;  %v410_v21 = vmax.f32 %v378_v16, 0.0  ;;  %1879 = vmatpush.bf16.msra.mxu2 %v7193_v55 }
  0xa4   :  { %v535_v23 = vld [vmem:[#allocation2 + $0x11] sm:$0xff]  ;;  %489 = vst [vmem:[#allocation2 + $0xc8] sm:$0xff] %v417_v58  ;;  %v316_v58 = vpop.f32.mrf.mxu3 }
  0xa5   :  { %v567_v24 = vld [vmem:[#allocation2 + $0x12] sm:$0xff]  ;;  %472 = vst [vmem:[#allocation2 + $0x20] sm:$0xff] %v400_v17  ;;  %v598_v26 = vpack.c.bf16 %v535_v23, %v534_v18  ;;  %v296_v0 = vpop.f32.mrf.mxu2 }
  0xa6   :  { %v1033_v25 = vld [vmem:[#allocation2 + $0x13] sm:$0xff]  ;;  %v599_v27 = vpack.c.bf16 %v567_v24, %v566_v19  ;;  %v253_v32 = vpop.f32.mrf.mxu0  ;;  %482 = vst [vmem:[#allocation2 + $0x70] sm:$0xff] %v410_v21  ;;  %v278_v34 = vpop.f32.mrf.mxu1  ;;  %v350_v9 = vmul.f32 %v7578_v53, %v296_v0 }
  0xa7   :  { %v1096_v28 = vpack.c.bf16 %v1033_v25, %v1032_v20  ;;  %v1065_v30 = vld [vmem:[#allocation2 + $0x14] sm:$0xff]  ;;  %v333_v35 = vmul.f32 %v7578_v53, %v253_v32  ;;  %798 = vmatmul.bf16.vlgmr.msrb.gmra.mxu1 %v598_v26  ;;  %v343_v36 = vmul.f32 %v7578_v53, %v278_v34 }
  0xa8   :  { %v1097_v33 = vpack.c.bf16 %v1065_v30, %v1064_v29  ;;  %887 = vmatmul.bf16.vlgmr.msrb.gmra.mxu2 %v599_v27  ;;  %v386_v15 = vadd.f32 %v7583_v54, %v350_v9 }
  0xa9   :  { %1297 = vmatmul.bf16.vlgmr.msrb.gmra.mxu3 %v1096_v28  ;;  %v369_v38 = vadd.f32 %v7583_v54, %v333_v35  ;;  %v379_v39 = vadd.f32 %v7583_v54, %v343_v36 }
  0xaa   :  { %1386 = vmatmul.bf16.vlgmr.msrb.gmra.mxu0 %v1097_v33  ;;  %v418_v18 = vmax.f32 %v386_v15, 0.0 }
  0xab   :  { %v401_v41 = vmax.f32 %v369_v38, 0.0  ;;  %v411_v42 = vmax.f32 %v379_v39, 0.0 }
  0xac   :  { %v536_v60 = vld [vmem:[#allocation2 + $0x19] sm:$0xff]  ;;  %490 = vst [vmem:[#allocation2 + $0xd0] sm:$0xff] %v418_v18 }
  0xad   :  { %473 = vst [vmem:[#allocation2 + $0x28] sm:$0xff] %v401_v41  ;;  %v568_v61 = vld [vmem:[#allocation2 + $0x1a] sm:$0xff]  ;;  %v298_v21 = vpop.f32.mrf.mxu2 }
  0xae   :  { %v256_v47 = vpop.f32.mrf.mxu0  ;;  %483 = vst [vmem:[#allocation2 + $0x78] sm:$0xff] %v411_v42  ;;  %v281_v48 = vpop.f32.mrf.mxu1  ;;  %v1034_v62 = vld [vmem:[#allocation2 + $0x1b] sm:$0xff]  ;;  %v351_v22 = vmul.f32 %v7578_v53, %v298_v21 }
  0xaf   :  { %v334_v51 = vmul.f32 %v7578_v53, %v256_v47  ;;  %v344_v52 = vmul.f32 %v7578_v53, %v281_v48  ;;  %v1066_v7 = vld [vmem:[#allocation2 + $0x1c] sm:$0xff] }
  0xb0   :  { %v387_v25 = vadd.f32 %v7583_v54, %v351_v22 }
  0xb1   :  { %v370_v56 = vadd.f32 %v7583_v54, %v334_v51  ;;  %v380_v57 = vadd.f32 %v7583_v54, %v344_v52 }
  0xb2   :  { %v419_v28 = vmax.f32 %v387_v25, 0.0 }
  0xb3   :  { %v402_v59 = vmax.f32 %v370_v56, 0.0  ;;  %v412_v63 = vmax.f32 %v380_v57, 0.0  ;;  %v7201_v56 = vld [vmem:[%s8908_s4 + $0x1a8] sm:$0xff] }
  0xb4   :  { %v537_v1 = vld [vmem:[#allocation2 + $0x21] sm:$0xff]  ;;  %491 = vst [vmem:[#allocation2 + $0xd8] sm:$0xff] %v419_v28  ;;  %2289 = vmatpush.bf16.msra.mxu3 %v7201_v56 }
  0xb5   :  { %v569_v2 = vld [vmem:[#allocation2 + $0x22] sm:$0xff]  ;;  %474 = vst [vmem:[#allocation2 + $0x30] sm:$0xff] %v402_v59  ;;  %v600_v4 = vpack.c.bf16 %v537_v1, %v536_v60  ;;  %v301_v36 = vpop.f32.mrf.mxu2 }
  0xb6   :  { %v1035_v3 = vld [vmem:[#allocation2 + $0x23] sm:$0xff]  ;;  %v601_v5 = vpack.c.bf16 %v569_v2, %v568_v61  ;;  %v258_v10 = vpop.f32.mrf.mxu0  ;;  %484 = vst [vmem:[#allocation2 + $0x80] sm:$0xff] %v412_v63  ;;  %v283_v12 = vpop.f32.mrf.mxu1  ;;  %v352_v40 = vmul.f32 %v7578_v53, %v301_v36 }
  0xb7   :  { %v1098_v6 = vpack.c.bf16 %v1035_v3, %v1034_v62  ;;  %v1067_v8 = vld [vmem:[#allocation2 + $0x24] sm:$0xff]  ;;  %v335_v13 = vmul.f32 %v7578_v53, %v258_v10  ;;  %803 = vmatmul.bf16.gmra.mxu1 %v600_v4  ;;  %v345_v14 = vmul.f32 %v7578_v53, %v283_v12  ;;  %v358_v62 = vmul.f32 %v7578_v53, %v316_v58 }
  0xb8   :  { %v1099_v11 = vpack.c.bf16 %v1067_v8, %v1066_v7  ;;  %892 = vmatmul.bf16.gmra.mxu2 %v601_v5  ;;  %v388_v49 = vadd.f32 %v7583_v54, %v352_v40  ;;  %v7185_v57 = vld [vmem:[%s8908_s4 + $0x128] sm:$0xff] }
  0xb9   :  { %1302 = vmatmul.bf16.gmra.mxu3 %v1098_v6  ;;  %v371_v16 = vadd.f32 %v7583_v54, %v335_v13  ;;  %v381_v17 = vadd.f32 %v7583_v54, %v345_v14  ;;  %v7209_v61 = vld [vmem:[%s8908_s4 + $0x1e8] sm:$0xff]  ;;  %1790 = vmatpush.bf16.msra.mxu1 %v7185_v57  ;;  %v394_v2 = vadd.f32 %v7583_v54, %v358_v62  ;;  %v7200_v62 = vld [vmem:[%s8908_s4 + $0x1a0] sm:$0xff] }
  0xba   :  { %1391 = vmatmul.bf16.gmra.mxu0 %v1099_v11  ;;  %v420_v52 = vmax.f32 %v388_v49, 0.0  ;;  %2290 = vmatpush.bf16.msra.mxu3 %v7200_v62 }
  0xbb   :  { %v403_v19 = vmax.f32 %v371_v16, 0.0  ;;  %v413_v20 = vmax.f32 %v381_v17, 0.0  ;;  %2378 = vmatpush.bf16.msra.mxu0 %v7209_v61  ;;  %v426_v4 = vmax.f32 %v394_v2, 0.0  ;;  %v7192_v61 = vld [vmem:[%s8908_s4 + $0x160] sm:$0xff] }
  0xbc   :  { %v538_v32 = vld [vmem:[#allocation2 + $0x29] sm:$0xff]  ;;  %492 = vst [vmem:[#allocation2 + $0xe0] sm:$0xff] %v420_v52  ;;  %v7208_v2 = vld [vmem:[%s8908_s4 + $0x1e0] sm:$0xff]  ;;  %1880 = vmatpush.bf16.msra.mxu2 %v7192_v61 }
  0xbd   :  { %475 = vst [vmem:[#allocation2 + $0x38] sm:$0xff] %v403_v19  ;;  %v570_v33 = vld [vmem:[#allocation2 + $0x2a] sm:$0xff]  ;;  %v303_v1 = vpop.f32.mrf.mxu2 }
  0xbe   :  { %v261_v23 = vpop.f32.mrf.mxu0  ;;  %485 = vst [vmem:[#allocation2 + $0x88] sm:$0xff] %v413_v20  ;;  %v286_v24 = vpop.f32.mrf.mxu1  ;;  %v1036_v34 = vld [vmem:[#allocation2 + $0x2b] sm:$0xff]  ;;  %v353_v3 = vmul.f32 %v7578_v53, %v303_v1 }
  0xbf   :  { %v336_v26 = vmul.f32 %v7578_v53, %v261_v23  ;;  %v346_v27 = vmul.f32 %v7578_v53, %v286_v24  ;;  %v1068_v44 = vld [vmem:[#allocation2 + $0x2c] sm:$0xff]  ;;  %498 = vst [vmem:[#allocation2 + $0x110] sm:$0xff] %v426_v4  ;;  %2379 = vmatpush.bf16.msra.mxu0 %v7208_v2 }
  0xc0   :  { %v389_v6 = vadd.f32 %v7583_v54, %v353_v3 }
  0xc1   :  { %v372_v29 = vadd.f32 %v7583_v54, %v336_v26  ;;  %v382_v30 = vadd.f32 %v7583_v54, %v346_v27 }
  0xc2   :  { %v421_v8 = vmax.f32 %v389_v6, 0.0 }
  0xc3   :  { %v404_v31 = vmax.f32 %v372_v29, 0.0  ;;  %v414_v35 = vmax.f32 %v382_v30, 0.0  ;;  %v318_v29 = vpop.f32.mrf.mxu3 }
  0xc4   :  { %v539_v37 = vld [vmem:[#allocation2 + $0x31] sm:$0xff]  ;;  %493 = vst [vmem:[#allocation2 + $0xe8] sm:$0xff] %v421_v8 }
  0xc5   :  { %v571_v38 = vld [vmem:[#allocation2 + $0x32] sm:$0xff]  ;;  %476 = vst [vmem:[#allocation2 + $0x40] sm:$0xff] %v404_v31  ;;  %v602_v41 = vpack.c.bf16 %v539_v37, %v538_v32  ;;  %v306_v14 = vpop.f32.mrf.mxu2  ;;  %v359_v31 = vmul.f32 %v7578_v53, %v318_v29 }
  0xc6   :  { %v1037_v39 = vld [vmem:[#allocation2 + $0x33] sm:$0xff]  ;;  %v603_v42 = vpack.c.bf16 %v571_v38, %v570_v33  ;;  %v263_v46 = vpop.f32.mrf.mxu0  ;;  %486 = vst [vmem:[#allocation2 + $0xb0] sm:$0xff] %v414_v35  ;;  %v288_v48 = vpop.f32.mrf.mxu1  ;;  %v354_v18 = vmul.f32 %v7578_v53, %v306_v14 }
  0xc7   :  { %v1100_v43 = vpack.c.bf16 %v1037_v39, %v1036_v34  ;;  %v1069_v45 = vld [vmem:[#allocation2 + $0x34] sm:$0xff]  ;;  %v337_v50 = vmul.f32 %v7578_v53, %v263_v46  ;;  %808 = vmatmul.bf16.gmra.mxu1 %v602_v41  ;;  %v347_v51 = vmul.f32 %v7578_v53, %v288_v48  ;;  %v395_v34 = vadd.f32 %v7583_v54, %v359_v31 }
  0xc8   :  { %v1101_v47 = vpack.c.bf16 %v1069_v45, %v1068_v44  ;;  %897 = vmatmul.bf16.gmra.mxu2 %v603_v42  ;;  %v390_v26 = vadd.f32 %v7583_v54, %v354_v18  ;;  %v7191_v31 = vld [vmem:[%s8908_s4 + $0x158] sm:$0xff] }
  0xc9   :  { %1307 = vmatmul.bf16.gmra.mxu3 %v1100_v43  ;;  %v373_v59 = vadd.f32 %v7583_v54, %v337_v50  ;;  %v383_v60 = vadd.f32 %v7583_v54, %v347_v51  ;;  %v427_v36 = vmax.f32 %v395_v34, 0.0  ;;  %1881 = vmatpush.bf16.msra.mxu2 %v7191_v31  ;;  %v7207_v34 = vld [vmem:[%s8908_s4 + $0x1d8] sm:$0xff] }
  0xca   :  { %1396 = vmatmul.bf16.gmra.mxu0 %v1101_v47  ;;  %v422_v28 = vmax.f32 %v390_v26, 0.0  ;;  %v1077_v26 = vld [vmem:[#allocation2 + $0x74] sm:$0xff] }
  0xcb   :  { %v405_v63 = vmax.f32 %v373_v59, 0.0  ;;  %v415_v0 = vmax.f32 %v383_v60, 0.0  ;;  %499 = vst [vmem:[#allocation2 + $0x118] sm:$0xff] %v427_v36  ;;  %v321_v39 = vpop.f32.mrf.mxu3  ;;  %2380 = vmatpush.bf16.msra.mxu0 %v7207_v34  ;;  %v549_v36 = vld [vmem:[#allocation2 + $0x81] sm:$0xff]  ;;  %v554_v34 = vld [vmem:[#allocation2 + $0xc9] sm:$0xff] }
  0xcc   :  { %v540_v11 = vld [vmem:[#allocation2 + $0x39] sm:$0xff]  ;;  %494 = vst [vmem:[#allocation2 + $0xf0] sm:$0xff] %v422_v28  ;;  %v360_v40 = vmul.f32 %v7578_v53, %v321_v39 }
  0xcd   :  { %477 = vst [vmem:[#allocation2 + $0x48] sm:$0xff] %v405_v63  ;;  %v572_v12 = vld [vmem:[#allocation2 + $0x3a] sm:$0xff]  ;;  %v308_v33 = vpop.f32.mrf.mxu2 }
  0xce   :  { %v266_v5 = vpop.f32.mrf.mxu0  ;;  %487 = vst [vmem:[#allocation2 + $0xb8] sm:$0xff] %v415_v0  ;;  %v1038_v13 = vld [vmem:[#allocation2 + $0x3b] sm:$0xff]  ;;  %v355_v35 = vmul.f32 %v7578_v53, %v308_v33  ;;  %v396_v45 = vadd.f32 %v7583_v54, %v360_v40  ;;  %v1047_v40 = vld [vmem:[#allocation2 + $0x83] sm:$0xff] }
  0xcf   :  { %v338_v7 = vmul.f32 %v7578_v53, %v266_v5  ;;  %v1070_v22 = vld [vmem:[#allocation2 + $0x3c] sm:$0xff] }
  0xd0   :  { %v391_v37 = vadd.f32 %v7583_v54, %v355_v35  ;;  %v428_v57 = vmax.f32 %v396_v45, 0.0  ;;  %v7184_v0 = vld [vmem:[%s8908_s4 + $0x120] sm:$0xff]  ;;  %v7183_v33 = vld [vmem:[%s8908_s4 + $0x118] sm:$0xff] }
  0xd1   :  { %v374_v9 = vadd.f32 %v7583_v54, %v338_v7  ;;  %1791 = vmatpush.bf16.msra.mxu1 %v7184_v0  ;;  %v548_v35 = vld [vmem:[#allocation2 + $0x79] sm:$0xff]  ;;  %v7198_v0 = vld [vmem:[%s8908_s4 + $0x190] sm:$0xff] }
  0xd2   :  { %v423_v38 = vmax.f32 %v391_v37, 0.0  ;;  %500 = vst [vmem:[#allocation2 + $0x120] sm:$0xff] %v428_v57  ;;  %v580_v37 = vld [vmem:[#allocation2 + $0x7a] sm:$0xff] }
  0xd3   :  { %v406_v10 = vmax.f32 %v374_v9, 0.0  ;;  %v323_v63 = vpop.f32.mrf.mxu3  ;;  %v545_v9 = vld [vmem:[#allocation2 + $0x61] sm:$0xff] }
  0xd4   :  { %v541_v15 = vld [vmem:[#allocation2 + $0x41] sm:$0xff]  ;;  %495 = vst [vmem:[#allocation2 + $0xf8] sm:$0xff] %v423_v38  ;;  %v361_v1 = vmul.f32 %v7578_v53, %v323_v63  ;;  %v7190_v63 = vld [vmem:[%s8908_s4 + $0x150] sm:$0xff] }
  0xd5   :  { %v573_v16 = vld [vmem:[#allocation2 + $0x42] sm:$0xff]  ;;  %478 = vst [vmem:[#allocation2 + $0x50] sm:$0xff] %v406_v10  ;;  %v604_v19 = vpack.c.bf16 %v541_v15, %v540_v11  ;;  %v311_v44 = vpop.f32.mrf.mxu2  ;;  %1792 = vmatpush.bf16.msra.mxu1 %v7183_v33  ;;  %1882 = vmatpush.bf16.msra.mxu2 %v7190_v63 }
  0xd6   :  { %v1039_v17 = vld [vmem:[#allocation2 + $0x43] sm:$0xff]  ;;  %v605_v20 = vpack.c.bf16 %v573_v16, %v572_v12  ;;  %v268_v24 = vpop.f32.mrf.mxu0  ;;  %v356_v49 = vmul.f32 %v7578_v53, %v311_v44  ;;  %v397_v4 = vadd.f32 %v7583_v54, %v361_v1  ;;  %v1046_v39 = vld [vmem:[#allocation2 + $0x7b] sm:$0xff] }
  0xd7   :  { %v1102_v21 = vpack.c.bf16 %v1039_v17, %v1038_v13  ;;  %v1071_v23 = vld [vmem:[#allocation2 + $0x44] sm:$0xff]  ;;  %v339_v27 = vmul.f32 %v7578_v53, %v268_v24  ;;  %813 = vmatmul.bf16.gmra.mxu1 %v604_v19  ;;  %v1045_v24 = vld [vmem:[#allocation2 + $0x73] sm:$0xff]  ;;  %v1110_v45 = vpack.c.bf16 %v1047_v40, %v1046_v39 }
  0xd8   :  { %v1103_v25 = vpack.c.bf16 %v1071_v23, %v1070_v22  ;;  %902 = vmatmul.bf16.gmra.mxu2 %v605_v20  ;;  %v392_v59 = vadd.f32 %v7583_v54, %v356_v49  ;;  %v429_v6 = vmax.f32 %v397_v4, 0.0  ;;  %v577_v10 = vld [vmem:[#allocation2 + $0x62] sm:$0xff]  ;;  %v579_v22 = vld [vmem:[#allocation2 + $0x72] sm:$0xff]  ;;  %v582_v49 = vld [vmem:[#allocation2 + $0xaa] sm:$0xff] }
  0xd9   :  { %1312 = vmatmul.bf16.gmra.mxu3 %v1102_v21  ;;  %v375_v30 = vadd.f32 %v7583_v54, %v339_v27  ;;  %v1043_v13 = vld [vmem:[#allocation2 + $0x63] sm:$0xff]  ;;  %v1044_v23 = vld [vmem:[#allocation2 + $0x6b] sm:$0xff] }
  0xda   :  { %1401 = vmatmul.bf16.gmra.mxu0 %v1103_v25  ;;  %v424_v60 = vmax.f32 %v392_v59, 0.0  ;;  %501 = vst [vmem:[#allocation2 + $0x128] sm:$0xff] %v429_v6  ;;  %v1075_v16 = vld [vmem:[#allocation2 + $0x64] sm:$0xff]  ;;  %v1076_v25 = vld [vmem:[#allocation2 + $0x6c] sm:$0xff]  ;;  %v1108_v29 = vpack.c.bf16 %v1045_v24, %v1044_v23 }
  0xdb   :  { %v407_v32 = vmax.f32 %v375_v30, 0.0  ;;  %v578_v21 = vld [vmem:[#allocation2 + $0x6a] sm:$0xff]  ;;  %v1109_v30 = vpack.c.bf16 %v1077_v26, %v1076_v25  ;;  %v581_v38 = vld [vmem:[#allocation2 + $0x82] sm:$0xff] }
  0xdc   :  { %v542_v41 = vld [vmem:[#allocation2 + $0x49] sm:$0xff]  ;;  %496 = vst [vmem:[#allocation2 + $0x100] sm:$0xff] %v424_v60  ;;  %v611_v28 = vpack.c.bf16 %v579_v22, %v578_v21  ;;  %v613_v44 = vpack.c.bf16 %v581_v38, %v580_v37  ;;  %v587_v38 = vld [vmem:[#allocation2 + $0xd2] sm:$0xff] }
  0xdd   :  { %479 = vst [vmem:[#allocation2 + $0x58] sm:$0xff] %v407_v32  ;;  %v574_v42 = vld [vmem:[#allocation2 + $0x4a] sm:$0xff]  ;;  %v313_v3 = vpop.f32.mrf.mxu2  ;;  %v7199_v32 = vld [vmem:[%s8908_s4 + $0x198] sm:$0xff] }
  0xde   :  { %v1040_v43 = vld [vmem:[#allocation2 + $0x4b] sm:$0xff]  ;;  %v357_v5 = vmul.f32 %v7578_v53, %v313_v3  ;;  %2291 = vmatpush.bf16.msra.mxu3 %v7199_v32 }
  0xdf   :  { %v1072_v55 = vld [vmem:[#allocation2 + $0x4c] sm:$0xff] }
  0xe0   :  { %v393_v7 = vadd.f32 %v7583_v54, %v357_v5  ;;  %v546_v53 = vld [vmem:[#allocation2 + $0x69] sm:$0xff]  ;;  %v547_v54 = vld [vmem:[#allocation2 + $0x71] sm:$0xff] }
  0xe1   :  { %v610_v27 = vpack.c.bf16 %v547_v54, %v546_v53  ;;  %v586_v37 = vld [vmem:[#allocation2 + $0xca] sm:$0xff] }
  0xe2   :  { %v425_v8 = vmax.f32 %v393_v7, 0.0  ;;  %2292 = vmatpush.bf16.msra.mxu3 %v7198_v0  ;;  %v1052_v39 = vld [vmem:[#allocation2 + $0xcb] sm:$0xff] }
  0xe3   :  { %v7181_v0 = vld [vmem:[%s8908_s4 + $0x108] sm:$0xff] }
  0xe4   :  { %v543_v46 = vld [vmem:[#allocation2 + $0x51] sm:$0xff]  ;;  %v544_v11 = vld [vmem:[#allocation2 + $0x59] sm:$0xff]  ;;  %497 = vst [vmem:[#allocation2 + $0x108] sm:$0xff] %v425_v8 }
  0xe5   :  { %v575_v47 = vld [vmem:[#allocation2 + $0x52] sm:$0xff]  ;;  %v606_v50 = vpack.c.bf16 %v543_v46, %v542_v41  ;;  %v576_v12 = vld [vmem:[#allocation2 + $0x5a] sm:$0xff]  ;;  %v608_v17 = vpack.c.bf16 %v545_v9, %v544_v11  ;;  %v585_v11 = vld [vmem:[#allocation2 + $0xc2] sm:$0xff] }
  0xe6   :  { %v1041_v48 = vld [vmem:[#allocation2 + $0x53] sm:$0xff]  ;;  %v607_v51 = vpack.c.bf16 %v575_v47, %v574_v42  ;;  %v1042_v14 = vld [vmem:[#allocation2 + $0x5b] sm:$0xff]  ;;  %v609_v18 = vpack.c.bf16 %v577_v10, %v576_v12  ;;  %v1079_v42 = vld [vmem:[#allocation2 + $0x84] sm:$0xff] }
  0xe7   :  { %v1104_v52 = vpack.c.bf16 %v1041_v48, %v1040_v43  ;;  %v1073_v56 = vld [vmem:[#allocation2 + $0x54] sm:$0xff]  ;;  %818 = vmatmul.bf16.gmra.mxu1 %v606_v50  ;;  %v1074_v15 = vld [vmem:[#allocation2 + $0x5c] sm:$0xff]  ;;  %v1106_v19 = vpack.c.bf16 %v1043_v13, %v1042_v14  ;;  %v612_v43 = vpack.c.bf16 %v549_v36, %v548_v35  ;;  %v550_v47 = vld [vmem:[#allocation2 + $0xa9] sm:$0xff] }
  0xe8   :  { %v1105_v58 = vpack.c.bf16 %v1073_v56, %v1072_v55  ;;  %907 = vmatmul.bf16.gmra.mxu2 %v607_v51  ;;  %v1107_v20 = vpack.c.bf16 %v1075_v16, %v1074_v15  ;;  %v1078_v41 = vld [vmem:[#allocation2 + $0x7c] sm:$0xff]  ;;  %v551_v48 = vld [vmem:[#allocation2 + $0xb1] sm:$0xff] }
  0xe9   :  { %1317 = vmatmul.bf16.gmra.mxu3 %v1104_v52  ;;  %v1111_v46 = vpack.c.bf16 %v1079_v42, %v1078_v41  ;;  %v583_v50 = vld [vmem:[#allocation2 + $0xb2] sm:$0xff]  ;;  %v614_v59 = vpack.c.bf16 %v551_v48, %v550_v47  ;;  %v553_v10 = vld [vmem:[#allocation2 + $0xc1] sm:$0xff] }
  0xea   :  { %1406 = vmatmul.bf16.gmra.mxu0 %v1105_v58  ;;  %v1048_v51 = vld [vmem:[#allocation2 + $0xab] sm:$0xff]  ;;  %v1049_v52 = vld [vmem:[#allocation2 + $0xb3] sm:$0xff]  ;;  %v615_v60 = vpack.c.bf16 %v583_v50, %v582_v49  ;;  %v1051_v15 = vld [vmem:[#allocation2 + $0xc3] sm:$0xff]  ;;  %v619_v49 = vpack.c.bf16 %v587_v38, %v586_v37 }
  0xeb   :  { %v1080_v55 = vld [vmem:[#allocation2 + $0xac] sm:$0xff]  ;;  %v1081_v56 = vld [vmem:[#allocation2 + $0xb4] sm:$0xff]  ;;  %v1112_v61 = vpack.c.bf16 %v1049_v52, %v1048_v51 }
  0xec   :  { %v1113_v62 = vpack.c.bf16 %v1081_v56, %v1080_v55  ;;  %v7182_v8 = vld [vmem:[%s8908_s4 + $0x110] sm:$0xff]  ;;  %v552_v13 = vld [vmem:[#allocation2 + $0xb9] sm:$0xff]  ;;  %v7189_v55 = vld [vmem:[%s8908_s4 + $0x148] sm:$0xff] }
  0xed   :  { %v7206_v9 = vld [vmem:[%s8908_s4 + $0x1d0] sm:$0xff]  ;;  %1793 = vmatpush.bf16.msra.mxu1 %v7182_v8  ;;  %v584_v14 = vld [vmem:[#allocation2 + $0xba] sm:$0xff]  ;;  %v616_v22 = vpack.c.bf16 %v553_v10, %v552_v13  ;;  %v7197_v56 = vld [vmem:[%s8908_s4 + $0x188] sm:$0xff]  ;;  %1883 = vmatpush.bf16.msra.mxu2 %v7189_v55 }
  0xee   :  { %2381 = vmatpush.bf16.msra.mxu0 %v7206_v9  ;;  %v617_v23 = vpack.c.bf16 %v585_v11, %v584_v14  ;;  %v555_v35 = vld [vmem:[#allocation2 + $0xd1] sm:$0xff]  ;;  %2293 = vmatpush.bf16.msra.mxu3 %v7197_v56  ;;  %v1054_v8 = vld [vmem:[#allocation2 + $0xdb] sm:$0xff]  ;;  %v1055_v11 = vld [vmem:[#allocation2 + $0xe3] sm:$0xff] }
  0xef   :  { %v1053_v42 = vld [vmem:[#allocation2 + $0xd3] sm:$0xff]  ;;  %v618_v48 = vpack.c.bf16 %v555_v35, %v554_v34  ;;  %v1087_v13 = vld [vmem:[#allocation2 + $0xe4] sm:$0xff] }
  0xf0   :  { %v1116_v51 = vpack.c.bf16 %v1053_v42, %v1052_v39  ;;  %v1056_v34 = vld [vmem:[#allocation2 + $0xeb] sm:$0xff]  ;;  %v1057_v37 = vld [vmem:[#allocation2 + $0xf3] sm:$0xff] }
  0xf1   :  { %1794 = vmatpush.bf16.msra.mxu1 %v7181_v0  ;;  %v1088_v38 = vld [vmem:[#allocation2 + $0xec] sm:$0xff]  ;;  %v1089_v39 = vld [vmem:[#allocation2 + $0xf4] sm:$0xff]  ;;  %v561_v0 = vld [vmem:[#allocation2 + $0x101] sm:$0xff] }
  0xf7   :  { %823 = vmatmul.bf16.gmra.mxu1 %v608_v17 }
  0xf8   :  { %912 = vmatmul.bf16.gmra.mxu2 %v609_v18  ;;  %v1050_v18 = vld [vmem:[#allocation2 + $0xbb] sm:$0xff] }
  0xf9   :  { %1322 = vmatmul.bf16.gmra.mxu3 %v1106_v19  ;;  %v1082_v19 = vld [vmem:[#allocation2 + $0xbc] sm:$0xff]  ;;  %v1114_v25 = vpack.c.bf16 %v1051_v15, %v1050_v18 }
  0xfa   :  { %1411 = vmatmul.bf16.gmra.mxu0 %v1107_v20  ;;  %v1083_v20 = vld [vmem:[#allocation2 + $0xc4] sm:$0xff] }
  0xfb   :  { %v1115_v26 = vpack.c.bf16 %v1083_v20, %v1082_v19  ;;  %v1118_v20 = vpack.c.bf16 %v1055_v11, %v1054_v8  ;;  %v1059_v8 = vld [vmem:[#allocation2 + $0x103] sm:$0xff] }
 0x107   :  { %828 = vmatmul.bf16.gmra.mxu1 %v610_v27 }
 0x108   :  { %917 = vmatmul.bf16.gmra.mxu2 %v611_v28 }
 0x109   :  { %1327 = vmatmul.bf16.gmra.mxu3 %v1108_v29 }
 0x10a   :  { %1416 = vmatmul.bf16.gmra.mxu0 %v1109_v30 }
 0x117   :  { %833 = vmatmul.bf16.gmra.mxu1 %v612_v43  ;;  %v1084_v43 = vld [vmem:[#allocation2 + $0xcc] sm:$0xff] }
 0x118   :  { %922 = vmatmul.bf16.gmra.mxu2 %v613_v44  ;;  %v1085_v44 = vld [vmem:[#allocation2 + $0xd4] sm:$0xff] }
 0x119   :  { %1332 = vmatmul.bf16.gmra.mxu3 %v1110_v45  ;;  %v1117_v52 = vpack.c.bf16 %v1085_v44, %v1084_v43 }
 0x11a   :  { %1421 = vmatmul.bf16.gmra.mxu0 %v1111_v46 }
 0x124   :  { %v799_v57 = vpop.f32.mrf.mxu1 }
 0x127   :  { %v1387_v58 = vpop.f32.mrf.mxu0  ;;  %838 = vmatmul.bf16.gmra.mxu1 %v614_v59 }
 0x128   :  { %927 = vmatmul.bf16.gmra.mxu2 %v615_v60 }
 0x129   :  { %1337 = vmatmul.bf16.gmra.mxu3 %v1112_v61 }
 0x12a   :  { %1426 = vmatmul.bf16.gmra.mxu0 %v1113_v62 }
 0x12b   :  { %v888_v1 = vpop.f32.mrf.mxu2 }
 0x12c   :  { %v889_v2 = vadd.f32 %v888_v1, %v799_v57  ;;  %v1298_v3 = vpop.f32.mrf.mxu3  ;;  %v801_v5 = vpop.f32.mrf.mxu1  ;;  %v7205_v1 = vld [vmem:[%s8908_s4 + $0x1c8] sm:$0xff] }
 0x12d   :  { %v1388_v4 = vadd.f32 %v1387_v58, %v1298_v3  ;;  %2382 = vmatpush.bf16.msra.mxu0 %v7205_v1  ;;  %v557_v3 = vld [vmem:[#allocation2 + $0xe1] sm:$0xff] }
 0x12f   :  { %v1389_v6 = vpop.f32.mrf.mxu0  ;;  %v7715_v7 = vadd.f32 %v1388_v4, %v889_v2  ;;  %v556_v2 = vld [vmem:[#allocation2 + $0xd9] sm:$0xff] }
 0x133   :  { %v890_v12 = vpop.f32.mrf.mxu2 }
 0x134   :  { %v891_v16 = vadd.f32 %v890_v12, %v801_v5  ;;  %v1300_v17 = vpop.f32.mrf.mxu3  ;;  %v804_v54 = vpop.f32.mrf.mxu1  ;;  %v588_v5 = vld [vmem:[#allocation2 + $0xda] sm:$0xff] }
 0x135   :  { %v1390_v53 = vadd.f32 %v1389_v6, %v1300_v17  ;;  %v589_v6 = vld [vmem:[#allocation2 + $0xe2] sm:$0xff]  ;;  %v620_v17 = vpack.c.bf16 %v557_v3, %v556_v2  ;;  %v592_v2 = vld [vmem:[#allocation2 + $0xfa] sm:$0xff] }
 0x136   :  { %v1086_v12 = vld [vmem:[#allocation2 + $0xdc] sm:$0xff]  ;;  %v621_v18 = vpack.c.bf16 %v589_v6, %v588_v5 }
 0x137   :  { %v1392_v21 = vpop.f32.mrf.mxu0  ;;  %v7723_v24 = vadd.f32 %v1390_v53, %v891_v16  ;;  %843 = vmatmul.bf16.gmra.mxu1 %v616_v22  ;;  %v1119_v53 = vpack.c.bf16 %v1087_v13, %v1086_v12  ;;  %v593_v3 = vld [vmem:[#allocation2 + $0x102] sm:$0xff] }
 0x138   :  { %932 = vmatmul.bf16.gmra.mxu2 %v617_v23 }
 0x139   :  { %1342 = vmatmul.bf16.gmra.mxu3 %v1114_v25 }
 0x13a   :  { %1431 = vmatmul.bf16.gmra.mxu0 %v1115_v26 }
 0x13b   :  { %v893_v27 = vpop.f32.mrf.mxu2 }
 0x13c   :  { %v894_v28 = vadd.f32 %v893_v27, %v804_v54  ;;  %v1303_v29 = vpop.f32.mrf.mxu3  ;;  %v806_v31 = vpop.f32.mrf.mxu1 }
 0x13d   :  { %v1393_v30 = vadd.f32 %v1392_v21, %v1303_v29  ;;  %v559_v29 = vld [vmem:[#allocation2 + $0xf1] sm:$0xff] }
 0x13f   :  { %v1394_v32 = vpop.f32.mrf.mxu0  ;;  %v7725_v33 = vadd.f32 %v1393_v30, %v894_v28  ;;  %v558_v28 = vld [vmem:[#allocation2 + $0xe9] sm:$0xff] }
 0x140   :  { %v622_v43 = vpack.c.bf16 %v559_v29, %v558_v28  ;;  %v563_v28 = vld [vmem:[#allocation2 + $0x111] sm:$0xff] }
 0x143   :  { %v895_v36 = vpop.f32.mrf.mxu2 }
 0x144   :  { %v896_v40 = vadd.f32 %v895_v36, %v806_v31  ;;  %v1305_v41 = vpop.f32.mrf.mxu3  ;;  %v809_v46 = vpop.f32.mrf.mxu1  ;;  %v590_v31 = vld [vmem:[#allocation2 + $0xea] sm:$0xff] }
 0x145   :  { %v1395_v45 = vadd.f32 %v1394_v32, %v1305_v41  ;;  %v591_v32 = vld [vmem:[#allocation2 + $0xf2] sm:$0xff] }
 0x146   :  { %v623_v44 = vpack.c.bf16 %v591_v32, %v590_v31  ;;  %v595_v31 = vld [vmem:[#allocation2 + $0x112] sm:$0xff] }
 0x147   :  { %v1397_v47 = vpop.f32.mrf.mxu0  ;;  %v7727_v50 = vadd.f32 %v1395_v45, %v896_v40  ;;  %848 = vmatmul.bf16.gmra.mxu1 %v618_v48  ;;  %v7188_v48 = vld [vmem:[%s8908_s4 + $0x140] sm:$0xff]  ;;  %v1060_v32 = vld [vmem:[#allocation2 + $0x10b] sm:$0xff] }
 0x148   :  { %937 = vmatmul.bf16.gmra.mxu2 %v619_v49  ;;  %v7196_v49 = vld [vmem:[%s8908_s4 + $0x180] sm:$0xff] }
 0x149   :  { %1347 = vmatmul.bf16.gmra.mxu3 %v1116_v51  ;;  %1884 = vmatpush.bf16.msra.mxu2 %v7188_v48  ;;  %v7227_v48 = vld [vmem:[%s8908_s4 + $0x278] sm:$0xff] }
 0x14a   :  { %1436 = vmatmul.bf16.gmra.mxu0 %v1117_v52  ;;  %2294 = vmatpush.bf16.msra.mxu3 %v7196_v49  ;;  %v7235_v49 = vld [vmem:[%s8908_s4 + $0x2b8] sm:$0xff] }
 0x14b   :  { %v898_v57 = vpop.f32.mrf.mxu2 }
 0x14c   :  { %v899_v58 = vadd.f32 %v898_v57, %v809_v46  ;;  %v1308_v59 = vpop.f32.mrf.mxu3  ;;  %v811_v61 = vpop.f32.mrf.mxu1  ;;  %v1120_v46 = vpack.c.bf16 %v1057_v37, %v1056_v34  ;;  %v1092_v37 = vld [vmem:[#allocation2 + $0x10c] sm:$0xff] }
 0x14d   :  { %v1398_v60 = vadd.f32 %v1397_v47, %v1308_v59  ;;  %v1121_v47 = vpack.c.bf16 %v1089_v39, %v1088_v38  ;;  %v1093_v38 = vld [vmem:[#allocation2 + $0x114] sm:$0xff]  ;;  %2875 = vmatpush.bf16.msrb.mxu2 %v7227_v48 }
 0x14e   :  { %3285 = vmatpush.bf16.msrb.mxu3 %v7235_v49  ;;  %v2062_v48 = vld [vmem:[#allocation2 + $0x10] sm:$0xff] }
 0x14f   :  { %v1399_v62 = vpop.f32.mrf.mxu0  ;;  %v7735_v63 = vadd.f32 %v1398_v60, %v899_v58  ;;  %v7180_v60 = vld [vmem:[%s8908_s4 + $0x100] sm:$0xff] }
 0x150   :  { %1795 = vmatpush.bf16.msra.mxu1 %v7180_v60 }
 0x153   :  { %v900_v4 = vpop.f32.mrf.mxu2 }
 0x154   :  { %v901_v9 = vadd.f32 %v900_v4, %v811_v61  ;;  %v1310_v10 = vpop.f32.mrf.mxu3  ;;  %v814_v15 = vpop.f32.mrf.mxu1  ;;  %v7204_v61 = vld [vmem:[%s8908_s4 + $0x1c0] sm:$0xff] }
 0x155   :  { %v1400_v14 = vadd.f32 %v1399_v62, %v1310_v10  ;;  %2383 = vmatpush.bf16.msra.mxu0 %v7204_v61  ;;  %v560_v62 = vld [vmem:[#allocation2 + $0xf9] sm:$0xff]  ;;  %v1091_v10 = vld [vmem:[#allocation2 + $0x104] sm:$0xff] }
 0x156   :  { %v1058_v4 = vld [vmem:[#allocation2 + $0xfb] sm:$0xff] }
 0x157   :  { %v1402_v16 = vpop.f32.mrf.mxu0  ;;  %v7743_v19 = vadd.f32 %v1400_v14, %v901_v9  ;;  %853 = vmatmul.bf16.gmra.mxu1 %v620_v17  ;;  %v1090_v9 = vld [vmem:[#allocation2 + $0xfc] sm:$0xff]  ;;  %v624_v14 = vpack.c.bf16 %v561_v0, %v560_v62  ;;  %v1122_v17 = vpack.c.bf16 %v1059_v8, %v1058_v4 }
 0x158   :  { %942 = vmatmul.bf16.gmra.mxu2 %v621_v18  ;;  %v1123_v18 = vpack.c.bf16 %v1091_v10, %v1090_v9  ;;  %v7219_v61 = vld [vmem:[%s8908_s4 + $0x238] sm:$0xff]  ;;  %v597_v4 = vld [vmem:[#allocation2 + $0x122] sm:$0xff] }
 0x159   :  { %1352 = vmatmul.bf16.gmra.mxu3 %v1118_v20  ;;  %v7243_v62 = vld [vmem:[%s8908_s4 + $0x2f8] sm:$0xff]  ;;  %2786 = vmatpush.bf16.msrb.mxu1 %v7219_v61  ;;  %v1063_v9 = vld [vmem:[#allocation2 + $0x123] sm:$0xff] }
 0x15a   :  { %1441 = vmatmul.bf16.gmra.mxu0 %v1119_v53  ;;  %v564_v0 = vld [vmem:[#allocation2 + $0x119] sm:$0xff] }
 0x15b   :  { %v903_v54 = vpop.f32.mrf.mxu2  ;;  %3374 = vmatpush.bf16.msrb.mxu0 %v7243_v62  ;;  %v1094_v10 = vld [vmem:[#allocation2 + $0x11c] sm:$0xff] }
 0x15c   :  { %v904_v21 = vadd.f32 %v903_v54, %v814_v15  ;;  %v1313_v22 = vpop.f32.mrf.mxu3  ;;  %v816_v25 = vpop.f32.mrf.mxu1  ;;  %v625_v15 = vpack.c.bf16 %v593_v3, %v592_v2  ;;  %v596_v3 = vld [vmem:[#allocation2 + $0x11a] sm:$0xff] }
 0x15d   :  { %v1403_v23 = vadd.f32 %v1402_v16, %v1313_v22 }
 0x15f   :  { %v1404_v26 = vpop.f32.mrf.mxu0  ;;  %v7745_v27 = vadd.f32 %v1403_v23, %v904_v21 }
 0x163   :  { %v905_v30 = vpop.f32.mrf.mxu2 }
 0x164   :  { %v906_v35 = vadd.f32 %v905_v30, %v816_v25  ;;  %v1315_v36 = vpop.f32.mrf.mxu3  ;;  %v819_v41 = vpop.f32.mrf.mxu1  ;;  %v594_v30 = vld [vmem:[#allocation2 + $0x10a] sm:$0xff] }
 0x165   :  { %v1405_v40 = vadd.f32 %v1404_v26, %v1315_v36  ;;  %v562_v26 = vld [vmem:[#allocation2 + $0x109] sm:$0xff]  ;;  %v1061_v36 = vld [vmem:[#allocation2 + $0x113] sm:$0xff] }
 0x167   :  { %v1407_v42 = vpop.f32.mrf.mxu0  ;;  %v7747_v45 = vadd.f32 %v1405_v40, %v906_v35  ;;  %858 = vmatmul.bf16.gmra.mxu1 %v622_v43  ;;  %v627_v43 = vpack.c.bf16 %v595_v31, %v594_v30  ;;  %v1532_v31 = vld [vmem:[#allocation2 + $0x15] sm:$0xff] }
 0x168   :  { %947 = vmatmul.bf16.gmra.mxu2 %v623_v44 }
 0x169   :  { %1357 = vmatmul.bf16.gmra.mxu3 %v1120_v46  ;;  %v1124_v46 = vpack.c.bf16 %v1061_v36, %v1060_v32  ;;  %v1564_v32 = vld [vmem:[#allocation2 + $0x16] sm:$0xff] }
 0x16a   :  { %1446 = vmatmul.bf16.gmra.mxu0 %v1121_v47  ;;  %v1125_v47 = vpack.c.bf16 %v1093_v38, %v1092_v37  ;;  %v2031_v36 = vld [vmem:[#allocation2 + $0x17] sm:$0xff] }
 0x16b   :  { %v908_v51 = vpop.f32.mrf.mxu2  ;;  %v2063_v37 = vld [vmem:[#allocation2 + $0x18] sm:$0xff] }
 0x16c   :  { %v909_v52 = vadd.f32 %v908_v51, %v819_v41  ;;  %v1318_v55 = vpop.f32.mrf.mxu3  ;;  %v821_v57 = vpop.f32.mrf.mxu1 }
 0x16d   :  { %v1408_v56 = vadd.f32 %v1407_v42, %v1318_v55  ;;  %v626_v42 = vpack.c.bf16 %v563_v28, %v562_v26 }
 0x16f   :  { %v1409_v58 = vpop.f32.mrf.mxu0  ;;  %v7755_v59 = vadd.f32 %v1408_v56, %v909_v52 }
 0x173   :  { %v910_v1 = vpop.f32.mrf.mxu2 }
 0x174   :  { %v911_v5 = vadd.f32 %v910_v1, %v821_v57  ;;  %v1320_v6 = vpop.f32.mrf.mxu3  ;;  %v824_v12 = vpop.f32.mrf.mxu1  ;;  %v565_v1 = vld [vmem:[#allocation2 + $0x121] sm:$0xff] }
 0x175   :  { %v1410_v11 = vadd.f32 %v1409_v58, %v1320_v6 }
 0x177   :  { %v1412_v13 = vpop.f32.mrf.mxu0  ;;  %v7763_v16 = vadd.f32 %v1410_v11, %v911_v5  ;;  %863 = vmatmul.bf16.gmra.mxu1 %v624_v14  ;;  %v1062_v5 = vld [vmem:[#allocation2 + $0x11b] sm:$0xff]  ;;  %v1095_v11 = vld [vmem:[#allocation2 + $0x124] sm:$0xff] }
 0x178   :  { %952 = vmatmul.bf16.gmra.mxu2 %v625_v15  ;;  %v628_v15 = vpack.c.bf16 %v565_v1, %v564_v0 }
 0x179   :  { %1362 = vmatmul.bf16.gmra.mxu3 %v1122_v17  ;;  %v629_v17 = vpack.c.bf16 %v597_v4, %v596_v3  ;;  %v7218_v3 = vld [vmem:[%s8908_s4 + $0x230] sm:$0xff] }
 0x17a   :  { %1451 = vmatmul.bf16.gmra.mxu0 %v1123_v18  ;;  %v7242_v4 = vld [vmem:[%s8908_s4 + $0x2f0] sm:$0xff]  ;;  %2787 = vmatpush.bf16.msrb.mxu1 %v7218_v3  ;;  %v7225_v3 = vld [vmem:[%s8908_s4 + $0x268] sm:$0xff] }
 0x17b   :  { %v913_v20 = vpop.f32.mrf.mxu2  ;;  %3375 = vmatpush.bf16.msrb.mxu0 %v7242_v4  ;;  %v7233_v4 = vld [vmem:[%s8908_s4 + $0x2a8] sm:$0xff] }
 0x17c   :  { %v914_v53 = vadd.f32 %v913_v20, %v824_v12  ;;  %v1323_v54 = vpop.f32.mrf.mxu3  ;;  %v826_v22 = vpop.f32.mrf.mxu1  ;;  %v1126_v20 = vpack.c.bf16 %v1063_v9, %v1062_v5 }
 0x17d   :  { %v1413_v21 = vadd.f32 %v1412_v13, %v1323_v54 }
 0x17f   :  { %v1414_v23 = vpop.f32.mrf.mxu0  ;;  %v7765_v25 = vadd.f32 %v1413_v21, %v914_v53  ;;  %v1127_v53 = vpack.c.bf16 %v1095_v11, %v1094_v10  ;;  %v2033_v11 = vld [vmem:[#allocation2 + $0x27] sm:$0xff] }
 0x183   :  { %v915_v29 = vpop.f32.mrf.mxu2 }
 0x184   :  { %v916_v34 = vadd.f32 %v915_v29, %v826_v22  ;;  %v1325_v35 = vpop.f32.mrf.mxu3  ;;  %v829_v40 = vpop.f32.mrf.mxu1 }
 0x185   :  { %v1415_v39 = vadd.f32 %v1414_v23, %v1325_v35 }
 0x187   :  { %v1417_v41 = vpop.f32.mrf.mxu0  ;;  %v7767_v44 = vadd.f32 %v1415_v39, %v916_v34  ;;  %868 = vmatmul.bf16.gmra.mxu1 %v626_v42 }
 0x188   :  { %957 = vmatmul.bf16.gmra.mxu2 %v627_v43 }
 0x189   :  { %1367 = vmatmul.bf16.gmra.mxu3 %v1124_v46 }
 0x18a   :  { %1456 = vmatmul.bf16.gmra.mxu0 %v1125_v47  ;;  %v2030_v47 = vld [vmem:[#allocation2 + $0xf] sm:$0xff] }
 0x18b   :  { %v918_v51 = vpop.f32.mrf.mxu2 }
 0x18c   :  { %v919_v52 = vadd.f32 %v918_v51, %v829_v40  ;;  %v1328_v55 = vpop.f32.mrf.mxu3  ;;  %v831_v57 = vpop.f32.mrf.mxu1  ;;  %v1531_v40 = vld [vmem:[#allocation2 + $0xd] sm:$0xff]  ;;  %v2094_v51 = vpack.c.bf16 %v2031_v36, %v2030_v47 }
 0x18d   :  { %v1418_v56 = vadd.f32 %v1417_v41, %v1328_v55  ;;  %v1563_v41 = vld [vmem:[#allocation2 + $0xe] sm:$0xff]  ;;  %v1595_v43 = vpack.c.bf16 %v1532_v31, %v1531_v40  ;;  %v1568_v40 = vld [vmem:[#allocation2 + $0x36] sm:$0xff] }
 0x18e   :  { %v1596_v46 = vpack.c.bf16 %v1564_v32, %v1563_v41  ;;  %v7226_v55 = vld [vmem:[%s8908_s4 + $0x270] sm:$0xff] }
 0x18f   :  { %v1419_v58 = vpop.f32.mrf.mxu0  ;;  %v7775_v60 = vadd.f32 %v1418_v56, %v919_v52  ;;  %v2095_v52 = vpack.c.bf16 %v2063_v37, %v2062_v48  ;;  %v7234_v56 = vld [vmem:[%s8908_s4 + $0x2b0] sm:$0xff]  ;;  %2876 = vmatpush.bf16.msrb.mxu2 %v7226_v55 }
 0x190   :  { %3286 = vmatpush.bf16.msrb.mxu3 %v7234_v56 }
 0x193   :  { %v920_v2 = vpop.f32.mrf.mxu2  ;;  %2877 = vmatpush.bf16.msrb.mxu2 %v7225_v3 }
 0x194   :  { %v921_v6 = vadd.f32 %v920_v2, %v831_v57  ;;  %v1330_v8 = vpop.f32.mrf.mxu3  ;;  %v834_v13 = vpop.f32.mrf.mxu1  ;;  %3287 = vmatpush.bf16.msrb.mxu3 %v7233_v4 }
 0x195   :  { %v1420_v12 = vadd.f32 %v1419_v58, %v1330_v8  ;;  %v1566_v8 = vld [vmem:[#allocation2 + $0x26] sm:$0xff] }
 0x197   :  { %v1422_v14 = vpop.f32.mrf.mxu0  ;;  %v7783_v18 = vadd.f32 %v1420_v12, %v921_v6  ;;  %873 = vmatmul.bf16.gmra.mxu1 %v628_v15  ;;  %v1534_v6 = vld [vmem:[#allocation2 + $0x25] sm:$0xff]  ;;  %v1533_v15 = vld [vmem:[#allocation2 + $0x1d] sm:$0xff] }
 0x198   :  { %962 = vmatmul.bf16.gmra.mxu2 %v629_v17  ;;  %v2065_v12 = vld [vmem:[#allocation2 + $0x28] sm:$0xff]  ;;  %v1565_v17 = vld [vmem:[#allocation2 + $0x1e] sm:$0xff] }
 0x199   :  { %1372 = vmatmul.bf16.gmra.mxu3 %v1126_v20 }
 0x19a   :  { %1461 = vmatmul.bf16.gmra.mxu0 %v1127_v53  ;;  %v1597_v53 = vpack.c.bf16 %v1534_v6, %v1533_v15 }
 0x19b   :  { %v923_v54 = vpop.f32.mrf.mxu2 }
 0x19c   :  { %v924_v21 = vadd.f32 %v923_v54, %v834_v13  ;;  %v1333_v22 = vpop.f32.mrf.mxu3  ;;  %v836_v26 = vpop.f32.mrf.mxu1  ;;  %v1598_v54 = vpack.c.bf16 %v1566_v8, %v1565_v17  ;;  %v1538_v17 = vld [vmem:[#allocation2 + $0x45] sm:$0xff] }
 0x19d   :  { %v1423_v23 = vadd.f32 %v1422_v14, %v1333_v22  ;;  %v2064_v22 = vld [vmem:[#allocation2 + $0x20] sm:$0xff] }
 0x19f   :  { %v1424_v28 = vpop.f32.mrf.mxu0  ;;  %v7785_v29 = vadd.f32 %v1423_v23, %v924_v21  ;;  %v2032_v21 = vld [vmem:[#allocation2 + $0x1f] sm:$0xff] }
 0x1a3   :  { %v925_v30 = vpop.f32.mrf.mxu2 }
 0x1a4   :  { %v926_v34 = vadd.f32 %v925_v30, %v836_v26  ;;  %v1335_v35 = vpop.f32.mrf.mxu3  ;;  %v839_v39 = vpop.f32.mrf.mxu1  ;;  %v2096_v26 = vpack.c.bf16 %v2033_v11, %v2032_v21  ;;  %v2037_v21 = vld [vmem:[#allocation2 + $0x47] sm:$0xff] }
 0x1a5   :  { %v1425_v38 = vadd.f32 %v1424_v28, %v1335_v35  ;;  %v2097_v28 = vpack.c.bf16 %v2065_v12, %v2064_v22  ;;  %v2069_v22 = vld [vmem:[#allocation2 + $0x48] sm:$0xff] }
 0x1a7   :  { %v1427_v42 = vpop.f32.mrf.mxu0  ;;  %v7787_v49 = vadd.f32 %v1425_v38, %v926_v34  ;;  %1796 = vmatmul.bf16.vlgmr.msra.gmra.mxu1 %v1595_v43  ;;  %v2035_v43 = vld [vmem:[#allocation2 + $0x37] sm:$0xff] }
 0x1a8   :  { %1885 = vmatmul.bf16.vlgmr.msra.gmra.mxu2 %v1596_v46  ;;  %v2067_v46 = vld [vmem:[#allocation2 + $0x38] sm:$0xff] }
 0x1a9   :  { %2295 = vmatmul.bf16.vlgmr.msra.gmra.mxu3 %v2094_v51  ;;  %v1535_v51 = vld [vmem:[#allocation2 + $0x2d] sm:$0xff] }
 0x1aa   :  { %2384 = vmatmul.bf16.vlgmr.msra.gmra.mxu0 %v2095_v52  ;;  %v1567_v52 = vld [vmem:[#allocation2 + $0x2e] sm:$0xff] }
 0x1ab   :  { %v928_v57 = vpop.f32.mrf.mxu2 }
 0x1ac   :  { %v929_v58 = vadd.f32 %v928_v57, %v839_v39  ;;  %v1338_v61 = vpop.f32.mrf.mxu3  ;;  %v841_v0 = vpop.f32.mrf.mxu1  ;;  %v1536_v39 = vld [vmem:[#allocation2 + $0x35] sm:$0xff]  ;;  %v1600_v57 = vpack.c.bf16 %v1568_v40, %v1567_v52 }
 0x1ad   :  { %v1428_v62 = vadd.f32 %v1427_v42, %v1338_v61  ;;  %v1599_v56 = vpack.c.bf16 %v1536_v39, %v1535_v51  ;;  %v2066_v61 = vld [vmem:[#allocation2 + $0x30] sm:$0xff] }
 0x1af   :  { %v1429_v1 = vpop.f32.mrf.mxu0  ;;  %v7795_v2 = vadd.f32 %v1428_v62, %v929_v58  ;;  %v2034_v58 = vld [vmem:[#allocation2 + $0x2f] sm:$0xff] }
 0x1b3   :  { %v930_v5 = vpop.f32.mrf.mxu2 }
 0x1b4   :  { %v931_v9 = vadd.f32 %v930_v5, %v841_v0  ;;  %v1340_v10 = vpop.f32.mrf.mxu3  ;;  %v844_v14 = vpop.f32.mrf.mxu1  ;;  %v2098_v0 = vpack.c.bf16 %v2035_v43, %v2034_v58 }
 0x1b5   :  { %v1430_v13 = vadd.f32 %v1429_v1, %v1340_v10  ;;  %v2099_v1 = vpack.c.bf16 %v2067_v46, %v2066_v61 }
 0x1b7   :  { %v1432_v20 = vpop.f32.mrf.mxu0  ;;  %v7803_v23 = vadd.f32 %v1430_v13, %v931_v9  ;;  %1801 = vmatmul.bf16.gmra.mxu1 %v1597_v53  ;;  %v7217_v13 = vld [vmem:[%s8908_s4 + $0x228] sm:$0xff] }
 0x1b8   :  { %1890 = vmatmul.bf16.gmra.mxu2 %v1598_v54  ;;  %2788 = vmatpush.bf16.msrb.mxu1 %v7217_v13  ;;  %v2070_v13 = vld [vmem:[#allocation2 + $0x50] sm:$0xff] }
 0x1b9   :  { %2300 = vmatmul.bf16.gmra.mxu3 %v2096_v26 }
 0x1ba   :  { %2389 = vmatmul.bf16.gmra.mxu0 %v2097_v28 }
 0x1bb   :  { %v933_v30 = vpop.f32.mrf.mxu2 }
 0x1bc   :  { %v934_v31 = vadd.f32 %v933_v30, %v844_v14  ;;  %v1343_v32 = vpop.f32.mrf.mxu3  ;;  %v846_v35 = vpop.f32.mrf.mxu1  ;;  %v7241_v14 = vld [vmem:[%s8908_s4 + $0x2e8] sm:$0xff]  ;;  %v1537_v30 = vld [vmem:[#allocation2 + $0x3d] sm:$0xff] }
 0x1bd   :  { %v1433_v34 = vadd.f32 %v1432_v20, %v1343_v32  ;;  %3376 = vmatpush.bf16.msrb.mxu0 %v7241_v14  ;;  %v1570_v20 = vld [vmem:[#allocation2 + $0x46] sm:$0xff] }
 0x1bf   :  { %v1434_v36 = vpop.f32.mrf.mxu0  ;;  %v7805_v37 = vadd.f32 %v1433_v34, %v934_v31  ;;  %v1569_v31 = vld [vmem:[#allocation2 + $0x3e] sm:$0xff]  ;;  %v1601_v34 = vpack.c.bf16 %v1538_v17, %v1537_v30 }
 0x1c3   :  { %v935_v38 = vpop.f32.mrf.mxu2 }
 0x1c4   :  { %v936_v41 = vadd.f32 %v935_v38, %v846_v35  ;;  %v1345_v42 = vpop.f32.mrf.mxu3  ;;  %v849_v48 = vpop.f32.mrf.mxu1  ;;  %v1602_v35 = vpack.c.bf16 %v1570_v20, %v1569_v31  ;;  %v2068_v38 = vld [vmem:[#allocation2 + $0x40] sm:$0xff] }
 0x1c5   :  { %v1435_v47 = vadd.f32 %v1434_v36, %v1345_v42  ;;  %v2036_v36 = vld [vmem:[#allocation2 + $0x3f] sm:$0xff] }
 0x1c6   :  { %v2100_v40 = vpack.c.bf16 %v2037_v21, %v2036_v36  ;;  %v7224_v20 = vld [vmem:[%s8908_s4 + $0x260] sm:$0xff] }
 0x1c7   :  { %v1437_v55 = vpop.f32.mrf.mxu0  ;;  %v7807_v62 = vadd.f32 %v1435_v47, %v936_v41  ;;  %1806 = vmatmul.bf16.gmra.mxu1 %v1599_v56  ;;  %v2101_v41 = vpack.c.bf16 %v2069_v22, %v2068_v38  ;;  %v1540_v56 = vld [vmem:[#allocation2 + $0x55] sm:$0xff]  ;;  %2878 = vmatpush.bf16.msrb.mxu2 %v7224_v20  ;;  %v1574_v36 = vld [vmem:[#allocation2 + $0x66] sm:$0xff] }
 0x1c8   :  { %1895 = vmatmul.bf16.gmra.mxu2 %v1600_v57  ;;  %v1572_v57 = vld [vmem:[#allocation2 + $0x56] sm:$0xff]  ;;  %v1575_v20 = vld [vmem:[#allocation2 + $0x6e] sm:$0xff] }
 0x1c9   :  { %2305 = vmatmul.bf16.gmra.mxu3 %v2098_v0  ;;  %v2039_v0 = vld [vmem:[#allocation2 + $0x57] sm:$0xff] }
 0x1ca   :  { %2394 = vmatmul.bf16.gmra.mxu0 %v2099_v1  ;;  %v2071_v1 = vld [vmem:[#allocation2 + $0x58] sm:$0xff] }
 0x1cb   :  { %v938_v5 = vpop.f32.mrf.mxu2  ;;  %v2103_v17 = vpack.c.bf16 %v2071_v1, %v2070_v13  ;;  %v1543_v13 = vld [vmem:[#allocation2 + $0x6d] sm:$0xff] }
 0x1cc   :  { %v939_v6 = vadd.f32 %v938_v5, %v849_v48  ;;  %v1348_v8 = vpop.f32.mrf.mxu3  ;;  %v851_v10 = vpop.f32.mrf.mxu1  ;;  %v1539_v5 = vld [vmem:[#allocation2 + $0x4d] sm:$0xff] }
 0x1cd   :  { %v1438_v9 = vadd.f32 %v1437_v55, %v1348_v8 }
 0x1cf   :  { %v1439_v11 = vpop.f32.mrf.mxu0  ;;  %v7815_v12 = vadd.f32 %v1438_v9, %v939_v6  ;;  %v1571_v6 = vld [vmem:[#allocation2 + $0x4e] sm:$0xff]  ;;  %v1603_v9 = vpack.c.bf16 %v1540_v56, %v1539_v5 }
 0x1d3   :  { %v940_v15 = vpop.f32.mrf.mxu2 }
 0x1d4   :  { %v941_v53 = vadd.f32 %v940_v15, %v851_v10  ;;  %v1350_v54 = vpop.f32.mrf.mxu3  ;;  %v854_v28 = vpop.f32.mrf.mxu1  ;;  %v1604_v10 = vpack.c.bf16 %v1572_v57, %v1571_v6 }
 0x1d5   :  { %v1440_v26 = vadd.f32 %v1439_v11, %v1350_v54  ;;  %v2038_v11 = vld [vmem:[#allocation2 + $0x4f] sm:$0xff] }
 0x1d6   :  { %v2102_v15 = vpack.c.bf16 %v2039_v0, %v2038_v11 }
 0x1d7   :  { %v1442_v32 = vpop.f32.mrf.mxu0  ;;  %v7823_v39 = vadd.f32 %v1440_v26, %v941_v53  ;;  %1811 = vmatmul.bf16.gmra.mxu1 %v1601_v34  ;;  %v7232_v53 = vld [vmem:[%s8908_s4 + $0x2a0] sm:$0xff] }
 0x1d8   :  { %1900 = vmatmul.bf16.gmra.mxu2 %v1602_v35  ;;  %3288 = vmatpush.bf16.msrb.mxu3 %v7232_v53  ;;  %v7240_v34 = vld [vmem:[%s8908_s4 + $0x2e0] sm:$0xff]  ;;  %v1576_v53 = vld [vmem:[#allocation2 + $0x76] sm:$0xff] }
 0x1d9   :  { %2310 = vmatmul.bf16.gmra.mxu3 %v2100_v40  ;;  %3377 = vmatpush.bf16.msrb.mxu0 %v7240_v34  ;;  %v1542_v35 = vld [vmem:[#allocation2 + $0x65] sm:$0xff]  ;;  %v1541_v40 = vld [vmem:[#allocation2 + $0x5d] sm:$0xff] }
 0x1da   :  { %2399 = vmatmul.bf16.gmra.mxu0 %v2101_v41  ;;  %v1573_v41 = vld [vmem:[#allocation2 + $0x5e] sm:$0xff] }
 0x1db   :  { %v943_v42 = vpop.f32.mrf.mxu2 }
 0x1dc   :  { %v944_v43 = vadd.f32 %v943_v42, %v854_v28  ;;  %v1353_v46 = vpop.f32.mrf.mxu3  ;;  %v856_v48 = vpop.f32.mrf.mxu1  ;;  %v2041_v42 = vld [vmem:[#allocation2 + $0x67] sm:$0xff] }
 0x1dd   :  { %v1443_v47 = vadd.f32 %v1442_v32, %v1353_v46  ;;  %v7216_v32 = vld [vmem:[%s8908_s4 + $0x220] sm:$0xff] }
 0x1de   :  { %2789 = vmatpush.bf16.msrb.mxu1 %v7216_v32 }
 0x1df   :  { %v1444_v51 = vpop.f32.mrf.mxu0  ;;  %v7825_v52 = vadd.f32 %v1443_v47, %v944_v43  ;;  %v2040_v47 = vld [vmem:[#allocation2 + $0x5f] sm:$0xff] }
 0x1e0   :  { %v2104_v1 = vpack.c.bf16 %v2041_v42, %v2040_v47 }
 0x1e3   :  { %v945_v55 = vpop.f32.mrf.mxu2 }
 0x1e4   :  { %v946_v58 = vadd.f32 %v945_v55, %v856_v48  ;;  %v1355_v61 = vpop.f32.mrf.mxu3  ;;  %v859_v4 = vpop.f32.mrf.mxu1  ;;  %v2072_v48 = vld [vmem:[#allocation2 + $0x60] sm:$0xff] }
 0x1e5   :  { %v1445_v3 = vadd.f32 %v1444_v51, %v1355_v61  ;;  %v2073_v51 = vld [vmem:[#allocation2 + $0x68] sm:$0xff]  ;;  %v1606_v61 = vpack.c.bf16 %v1574_v36, %v1573_v41 }
 0x1e7   :  { %v1447_v8 = vpop.f32.mrf.mxu0  ;;  %v7827_v14 = vadd.f32 %v1445_v3, %v946_v58  ;;  %1816 = vmatmul.bf16.gmra.mxu1 %v1603_v9  ;;  %v1605_v58 = vpack.c.bf16 %v1542_v35, %v1541_v40  ;;  %v2105_v3 = vpack.c.bf16 %v2073_v51, %v2072_v48 }
 0x1e8   :  { %1905 = vmatmul.bf16.gmra.mxu2 %v1604_v10 }
 0x1e9   :  { %2315 = vmatmul.bf16.gmra.mxu3 %v2102_v15  ;;  %v1544_v15 = vld [vmem:[#allocation2 + $0x75] sm:$0xff] }
 0x1ea   :  { %2404 = vmatmul.bf16.gmra.mxu0 %v2103_v17  ;;  %v1607_v36 = vpack.c.bf16 %v1544_v15, %v1543_v13  ;;  %v2045_v15 = vld [vmem:[#allocation2 + $0x87] sm:$0xff] }
 0x1eb   :  { %v948_v54 = vpop.f32.mrf.mxu2 }
 0x1ec   :  { %v949_v21 = vadd.f32 %v948_v54, %v859_v4  ;;  %v1358_v22 = vpop.f32.mrf.mxu3  ;;  %v861_v28 = vpop.f32.mrf.mxu1  ;;  %v2042_v54 = vld [vmem:[#allocation2 + $0x6f] sm:$0xff] }
 0x1ed   :  { %v1448_v26 = vadd.f32 %v1447_v8, %v1358_v22 }
 0x1ef   :  { %v1449_v30 = vpop.f32.mrf.mxu0  ;;  %v7835_v31 = vadd.f32 %v1448_v26, %v949_v21  ;;  %v2043_v26 = vld [vmem:[#allocation2 + $0x77] sm:$0xff] }
 0x1f0   :  { %v2106_v41 = vpack.c.bf16 %v2043_v26, %v2042_v54 }
 0x1f3   :  { %v950_v38 = vpop.f32.mrf.mxu2 }
 0x1f4   :  { %v951_v43 = vadd.f32 %v950_v38, %v861_v28  ;;  %v1360_v46 = vpop.f32.mrf.mxu3  ;;  %v864_v56 = vpop.f32.mrf.mxu1  ;;  %v2074_v28 = vld [vmem:[#allocation2 + $0x70] sm:$0xff]  ;;  %v1608_v38 = vpack.c.bf16 %v1576_v53, %v1575_v20  ;;  %v2077_v20 = vld [vmem:[#allocation2 + $0x88] sm:$0xff] }
 0x1f5   :  { %v1450_v55 = vadd.f32 %v1449_v30, %v1360_v46  ;;  %v2075_v30 = vld [vmem:[#allocation2 + $0x78] sm:$0xff] }
 0x1f6   :  { %v2107_v42 = vpack.c.bf16 %v2075_v30, %v2074_v28  ;;  %v7231_v46 = vld [vmem:[%s8908_s4 + $0x298] sm:$0xff] }
 0x1f7   :  { %v1452_v57 = vpop.f32.mrf.mxu0  ;;  %v7843_v0 = vadd.f32 %v1450_v55, %v951_v43  ;;  %1821 = vmatmul.bf16.gmra.mxu1 %v1605_v58  ;;  %v7223_v43 = vld [vmem:[%s8908_s4 + $0x258] sm:$0xff]  ;;  %3289 = vmatpush.bf16.msrb.mxu3 %v7231_v46  ;;  %v1547_v46 = vld [vmem:[#allocation2 + $0xad] sm:$0xff] }
 0x1f8   :  { %1910 = vmatmul.bf16.gmra.mxu2 %v1606_v61  ;;  %v7215_v61 = vld [vmem:[%s8908_s4 + $0x218] sm:$0xff] }
 0x1f9   :  { %2320 = vmatmul.bf16.gmra.mxu3 %v2104_v1  ;;  %2879 = vmatpush.bf16.msrb.mxu2 %v7223_v43  ;;  %v7239_v1 = vld [vmem:[%s8908_s4 + $0x2d8] sm:$0xff] }
 0x1fa   :  { %2409 = vmatmul.bf16.gmra.mxu0 %v2105_v3  ;;  %v1545_v3 = vld [vmem:[#allocation2 + $0x7d] sm:$0xff]  ;;  %2790 = vmatpush.bf16.msrb.mxu1 %v7215_v61 }
 0x1fb   :  { %v953_v4 = vpop.f32.mrf.mxu2  ;;  %3378 = vmatpush.bf16.msrb.mxu0 %v7239_v1  ;;  %v2047_v1 = vld [vmem:[#allocation2 + $0xb7] sm:$0xff] }
 0x1fc   :  { %v954_v5 = vadd.f32 %v953_v4, %v864_v56  ;;  %v1363_v6 = vpop.f32.mrf.mxu3  ;;  %v866_v9 = vpop.f32.mrf.mxu1  ;;  %v1546_v4 = vld [vmem:[#allocation2 + $0x85] sm:$0xff] }
 0x1fd   :  { %v1453_v8 = vadd.f32 %v1452_v57, %v1363_v6  ;;  %v1577_v6 = vld [vmem:[#allocation2 + $0x7e] sm:$0xff] }
 0x1ff   :  { %v1454_v10 = vpop.f32.mrf.mxu0  ;;  %v7845_v11 = vadd.f32 %v1453_v8, %v954_v5  ;;  %v1578_v8 = vld [vmem:[#allocation2 + $0x86] sm:$0xff] }
 0x200   :  { %v1610_v26 = vpack.c.bf16 %v1578_v8, %v1577_v6 }
 0x203   :  { %v955_v17 = vpop.f32.mrf.mxu2 }
 0x204   :  { %v956_v21 = vadd.f32 %v955_v17, %v866_v9  ;;  %v1365_v22 = vpop.f32.mrf.mxu3  ;;  %v869_v34 = vpop.f32.mrf.mxu1  ;;  %v2044_v9 = vld [vmem:[#allocation2 + $0x7f] sm:$0xff] }
 0x205   :  { %v1455_v32 = vadd.f32 %v1454_v10, %v1365_v22  ;;  %v2076_v17 = vld [vmem:[#allocation2 + $0x80] sm:$0xff]  ;;  %v1609_v22 = vpack.c.bf16 %v1546_v4, %v1545_v3  ;;  %v2108_v30 = vpack.c.bf16 %v2045_v15, %v2044_v9  ;;  %v2078_v3 = vld [vmem:[#allocation2 + $0xb0] sm:$0xff]  ;;  %v2079_v4 = vld [vmem:[#allocation2 + $0xb8] sm:$0xff] }
 0x207   :  { %v1457_v35 = vpop.f32.mrf.mxu0  ;;  %v7847_v40 = vadd.f32 %v1455_v32, %v956_v21  ;;  %1826 = vmatmul.bf16.gmra.mxu1 %v1607_v36  ;;  %v2109_v32 = vpack.c.bf16 %v2077_v20, %v2076_v17  ;;  %v2111_v17 = vpack.c.bf16 %v2079_v4, %v2078_v3  ;;  %v7222_v20 = vld [vmem:[%s8908_s4 + $0x250] sm:$0xff] }
 0x208   :  { %1915 = vmatmul.bf16.gmra.mxu2 %v1608_v38 }
 0x209   :  { %2325 = vmatmul.bf16.gmra.mxu3 %v2106_v41  ;;  %2880 = vmatpush.bf16.msrb.mxu2 %v7222_v20 }
 0x20a   :  { %2414 = vmatmul.bf16.gmra.mxu0 %v2107_v42 }
 0x20b   :  { %v958_v47 = vpop.f32.mrf.mxu2 }
 0x20c   :  { %v959_v48 = vadd.f32 %v958_v47, %v869_v34  ;;  %v1368_v51 = vpop.f32.mrf.mxu3  ;;  %v871_v56 = vpop.f32.mrf.mxu1  ;;  %v1548_v47 = vld [vmem:[#allocation2 + $0xb5] sm:$0xff] }
 0x20d   :  { %v1458_v55 = vadd.f32 %v1457_v35, %v1368_v51  ;;  %v1579_v51 = vld [vmem:[#allocation2 + $0xae] sm:$0xff]  ;;  %v1611_v9 = vpack.c.bf16 %v1548_v47, %v1547_v46  ;;  %v1581_v47 = vld [vmem:[#allocation2 + $0xbe] sm:$0xff] }
 0x20f   :  { %v1459_v57 = vpop.f32.mrf.mxu0  ;;  %v7855_v58 = vadd.f32 %v1458_v55, %v959_v48  ;;  %v1580_v55 = vld [vmem:[#allocation2 + $0xb6] sm:$0xff] }
 0x213   :  { %v960_v5 = vpop.f32.mrf.mxu2 }
 0x214   :  { %v961_v10 = vadd.f32 %v960_v5, %v871_v56  ;;  %v1370_v13 = vpop.f32.mrf.mxu3  ;;  %v874_v54 = vpop.f32.mrf.mxu1  ;;  %v2046_v56 = vld [vmem:[#allocation2 + $0xaf] sm:$0xff] }
 0x215   :  { %v1460_v53 = vadd.f32 %v1459_v57, %v1370_v13  ;;  %v2110_v15 = vpack.c.bf16 %v2047_v1, %v2046_v56  ;;  %v2049_v56 = vld [vmem:[#allocation2 + $0xc7] sm:$0xff] }
 0x217   :  { %v1462_v21 = vpop.f32.mrf.mxu0  ;;  %v7863_v28 = vadd.f32 %v1460_v53, %v961_v10  ;;  %1831 = vmatmul.bf16.gmra.mxu1 %v1609_v22  ;;  %v1612_v10 = vpack.c.bf16 %v1580_v55, %v1579_v51  ;;  %v7230_v53 = vld [vmem:[%s8908_s4 + $0x290] sm:$0xff]  ;;  %v2048_v51 = vld [vmem:[#allocation2 + $0xbf] sm:$0xff] }
 0x218   :  { %1920 = vmatmul.bf16.gmra.mxu2 %v1610_v26  ;;  %3290 = vmatpush.bf16.msrb.mxu3 %v7230_v53 }
 0x219   :  { %2330 = vmatmul.bf16.gmra.mxu3 %v2108_v30 }
 0x21a   :  { %2419 = vmatmul.bf16.gmra.mxu0 %v2109_v32 }
 0x21b   :  { %v963_v34 = vpop.f32.mrf.mxu2 }
 0x21c   :  { %v964_v35 = vadd.f32 %v963_v34, %v874_v54  ;;  %v1373_v36 = vpop.f32.mrf.mxu3  ;;  %v876_v41 = vpop.f32.mrf.mxu1 }
 0x21d   :  { %v1463_v38 = vadd.f32 %v1462_v21, %v1373_v36  ;;  %v7214_v36 = vld [vmem:[%s8908_s4 + $0x210] sm:$0xff] }
 0x21e   :  { %2791 = vmatpush.bf16.msrb.mxu1 %v7214_v36  ;;  %v1583_v36 = vld [vmem:[#allocation2 + $0xce] sm:$0xff] }
 0x21f   :  { %v1464_v42 = vpop.f32.mrf.mxu0  ;;  %v7865_v43 = vadd.f32 %v1463_v38, %v964_v35  ;;  %v7238_v38 = vld [vmem:[%s8908_s4 + $0x2d0] sm:$0xff] }
 0x220   :  { %3379 = vmatpush.bf16.msrb.mxu0 %v7238_v38  ;;  %v1584_v38 = vld [vmem:[#allocation2 + $0xd6] sm:$0xff] }
 0x223   :  { %v965_v48 = vpop.f32.mrf.mxu2 }
 0x224   :  { %v966_v57 = vadd.f32 %v965_v48, %v876_v41  ;;  %v1375_v61 = vpop.f32.mrf.mxu3  ;;  %v1797_v6 = vpop.f32.mrf.mxu1  ;;  %v1549_v41 = vld [vmem:[#allocation2 + $0xbd] sm:$0xff]  ;;  %v1582_v48 = vld [vmem:[#allocation2 + $0xc6] sm:$0xff] }
 0x225   :  { %v1465_v5 = vadd.f32 %v1464_v42, %v1375_v61  ;;  %v1550_v42 = vld [vmem:[#allocation2 + $0xc5] sm:$0xff] }
 0x226   :  { %v2081_v61 = vld [vmem:[#allocation2 + $0xc8] sm:$0xff] }
 0x227   :  { %v2385_v8 = vpop.f32.mrf.mxu0  ;;  %v7867_v13 = vadd.f32 %v1465_v5, %v966_v57  ;;  %1836 = vmatmul.bf16.gmra.mxu1 %v1611_v9  ;;  %v2080_v57 = vld [vmem:[#allocation2 + $0xc0] sm:$0xff]  ;;  %v2112_v9 = vpack.c.bf16 %v2049_v56, %v2048_v51  ;;  %v2083_v51 = vld [vmem:[#allocation2 + $0xd8] sm:$0xff] }
 0x228   :  { %1925 = vmatmul.bf16.gmra.mxu2 %v1612_v10  ;;  %v2113_v10 = vpack.c.bf16 %v2081_v61, %v2080_v57  ;;  %v1616_v61 = vpack.c.bf16 %v1584_v38, %v1583_v36  ;;  %v1586_v36 = vld [vmem:[#allocation2 + $0xe6] sm:$0xff] }
 0x229   :  { %2335 = vmatmul.bf16.gmra.mxu3 %v2110_v15  ;;  %v2052_v38 = vld [vmem:[#allocation2 + $0xdf] sm:$0xff] }
 0x22a   :  { %2424 = vmatmul.bf16.gmra.mxu0 %v2111_v17 }
 0x22b   :  { %v1886_v54 = vpop.f32.mrf.mxu2 }
 0x22c   :  { %v1887_v21 = vadd.f32 %v1886_v54, %v1797_v6  ;;  %v2296_v22 = vpop.f32.mrf.mxu3  ;;  %v1799_v30 = vpop.f32.mrf.mxu1  ;;  %v1613_v6 = vpack.c.bf16 %v1550_v42, %v1549_v41  ;;  %v2050_v41 = vld [vmem:[#allocation2 + $0xcf] sm:$0xff] }
 0x22d   :  { %v2386_v26 = vadd.f32 %v2385_v8, %v2296_v22  ;;  %v1614_v8 = vpack.c.bf16 %v1582_v48, %v1581_v47  ;;  %v2051_v47 = vld [vmem:[#allocation2 + $0xd7] sm:$0xff] }
 0x22e   :  { %v1966_v32 = vadd.f32 %v1887_v21, %v7715_v7  ;;  %v2082_v48 = vld [vmem:[#allocation2 + $0xd0] sm:$0xff] }
 0x22f   :  { %v2387_v34 = vpop.f32.mrf.mxu0 }
 0x230   :  { %v7876_v35 = vadd.f32 %v2386_v26, %v1966_v32  ;;  %v1552_v32 = vld [vmem:[#allocation2 + $0xd5] sm:$0xff] }
 0x233   :  { %v1888_v46 = vpop.f32.mrf.mxu2 }
 0x234   :  { %v1889_v7 = vadd.f32 %v1888_v46, %v1799_v30  ;;  %v2298_v55 = vpop.f32.mrf.mxu3  ;;  %v1802_v3 = vpop.f32.mrf.mxu1  ;;  %v1551_v30 = vld [vmem:[#allocation2 + $0xcd] sm:$0xff] }
 0x235   :  { %v2388_v1 = vadd.f32 %v2387_v34, %v2298_v55 }
 0x236   :  { %v1967_v4 = vadd.f32 %v1889_v7, %v7723_v24 }
 0x237   :  { %v2390_v5 = vpop.f32.mrf.mxu0  ;;  %1841 = vmatmul.bf16.gmra.mxu1 %v1613_v6  ;;  %v7229_v6 = vld [vmem:[%s8908_s4 + $0x288] sm:$0xff] }
 0x238   :  { %v7885_v15 = vadd.f32 %v2388_v1, %v1967_v4  ;;  %1930 = vmatmul.bf16.gmra.mxu2 %v1614_v8  ;;  %v2114_v1 = vpack.c.bf16 %v2051_v47, %v2050_v41  ;;  %3291 = vmatpush.bf16.msrb.mxu3 %v7229_v6  ;;  %v2085_v47 = vld [vmem:[#allocation2 + $0xe8] sm:$0xff] }
 0x239   :  { %2340 = vmatmul.bf16.gmra.mxu3 %v2112_v9 }
 0x23a   :  { %2429 = vmatmul.bf16.gmra.mxu0 %v2113_v10 }
 0x23b   :  { %v1891_v17 = vpop.f32.mrf.mxu2 }
 0x23c   :  { %v1892_v20 = vadd.f32 %v1891_v17, %v1802_v3  ;;  %v2301_v53 = vpop.f32.mrf.mxu3  ;;  %v1804_v21 = vpop.f32.mrf.mxu1  ;;  %v2115_v3 = vpack.c.bf16 %v2083_v51, %v2082_v48 }
 0x23d   :  { %v2391_v54 = vadd.f32 %v2390_v5, %v2301_v53  ;;  %v7221_v5 = vld [vmem:[%s8908_s4 + $0x248] sm:$0xff] }
 0x23e   :  { %v1968_v22 = vadd.f32 %v1892_v20, %v7725_v33  ;;  %v1615_v33 = vpack.c.bf16 %v1552_v32, %v1551_v30  ;;  %2881 = vmatpush.bf16.msrb.mxu2 %v7221_v5  ;;  %v1554_v30 = vld [vmem:[#allocation2 + $0xe5] sm:$0xff] }
 0x23f   :  { %v2392_v26 = vpop.f32.mrf.mxu0 }
 0x240   :  { %v7888_v24 = vadd.f32 %v2391_v54, %v1968_v22  ;;  %v7237_v22 = vld [vmem:[%s8908_s4 + $0x2c8] sm:$0xff] }
 0x241   :  { %3380 = vmatpush.bf16.msrb.mxu0 %v7237_v22  ;;  %v1588_v22 = vld [vmem:[#allocation2 + $0xf6] sm:$0xff] }
 0x243   :  { %v1893_v34 = vpop.f32.mrf.mxu2 }
 0x244   :  { %v1894_v42 = vadd.f32 %v1893_v34, %v1804_v21  ;;  %v2303_v46 = vpop.f32.mrf.mxu3  ;;  %v1807_v55 = vpop.f32.mrf.mxu1  ;;  %v7213_v21 = vld [vmem:[%s8908_s4 + $0x208] sm:$0xff]  ;;  %v1585_v34 = vld [vmem:[#allocation2 + $0xde] sm:$0xff] }
 0x245   :  { %v2393_v7 = vadd.f32 %v2392_v26, %v2303_v46  ;;  %v1553_v26 = vld [vmem:[#allocation2 + $0xdd] sm:$0xff]  ;;  %2792 = vmatpush.bf16.msrb.mxu1 %v7213_v21  ;;  %v1587_v21 = vld [vmem:[#allocation2 + $0xee] sm:$0xff] }
 0x246   :  { %v1969_v56 = vadd.f32 %v1894_v42, %v7727_v50  ;;  %v2053_v42 = vld [vmem:[#allocation2 + $0xe7] sm:$0xff] }
 0x247   :  { %v2395_v57 = vpop.f32.mrf.mxu0  ;;  %1846 = vmatmul.bf16.gmra.mxu1 %v1615_v33  ;;  %v2084_v46 = vld [vmem:[#allocation2 + $0xe0] sm:$0xff]  ;;  %v2116_v33 = vpack.c.bf16 %v2053_v42, %v2052_v38  ;;  %v2087_v38 = vld [vmem:[#allocation2 + $0xf8] sm:$0xff] }
 0x248   :  { %v7891_v4 = vadd.f32 %v2393_v7, %v1969_v56  ;;  %1935 = vmatmul.bf16.gmra.mxu2 %v1616_v61  ;;  %v1617_v56 = vpack.c.bf16 %v1554_v30, %v1553_v26  ;;  %v2117_v61 = vpack.c.bf16 %v2085_v47, %v2084_v46  ;;  %v2054_v26 = vld [vmem:[#allocation2 + $0xef] sm:$0xff]  ;;  %v1620_v47 = vpack.c.bf16 %v1588_v22, %v1587_v21  ;;  %v1590_v21 = vld [vmem:[#allocation2 + $0x106] sm:$0xff] }
 0x249   :  { %2345 = vmatmul.bf16.gmra.mxu3 %v2114_v1  ;;  %v2056_v22 = vld [vmem:[#allocation2 + $0xff] sm:$0xff] }
 0x24a   :  { %2434 = vmatmul.bf16.gmra.mxu0 %v2115_v3 }
 0x24b   :  { %v1896_v50 = vpop.f32.mrf.mxu2 }
 0x24c   :  { %v1897_v8 = vadd.f32 %v1896_v50, %v1807_v55  ;;  %v2306_v9 = vpop.f32.mrf.mxu3  ;;  %v1809_v17 = vpop.f32.mrf.mxu1 }
 0x24d   :  { %v2396_v10 = vadd.f32 %v2395_v57, %v2306_v9  ;;  %v1618_v57 = vpack.c.bf16 %v1586_v36, %v1585_v34  ;;  %v2055_v34 = vld [vmem:[#allocation2 + $0xf7] sm:$0xff] }
 0x24e   :  { %v1970_v20 = vadd.f32 %v1897_v8, %v7735_v63  ;;  %v2086_v36 = vld [vmem:[#allocation2 + $0xf0] sm:$0xff] }
 0x24f   :  { %v2397_v53 = vpop.f32.mrf.mxu0 }
 0x250   :  { %v7900_v54 = vadd.f32 %v2396_v10, %v1970_v20  ;;  %v1556_v20 = vld [vmem:[#allocation2 + $0xf5] sm:$0xff] }
 0x253   :  { %v1898_v32 = vpop.f32.mrf.mxu2 }
 0x254   :  { %v1899_v63 = vadd.f32 %v1898_v32, %v1809_v17  ;;  %v2308_v41 = vpop.f32.mrf.mxu3  ;;  %v1812_v51 = vpop.f32.mrf.mxu1  ;;  %v1555_v17 = vld [vmem:[#allocation2 + $0xed] sm:$0xff] }
 0x255   :  { %v2398_v48 = vadd.f32 %v2397_v53, %v2308_v41 }
 0x256   :  { %v1971_v7 = vadd.f32 %v1899_v63, %v7743_v19 }
 0x257   :  { %v2400_v55 = vpop.f32.mrf.mxu0  ;;  %1851 = vmatmul.bf16.gmra.mxu1 %v1617_v56  ;;  %v7228_v56 = vld [vmem:[%s8908_s4 + $0x280] sm:$0xff] }
 0x258   :  { %v7909_v1 = vadd.f32 %v2398_v48, %v1971_v7  ;;  %1940 = vmatmul.bf16.gmra.mxu2 %v1618_v57  ;;  %v2118_v48 = vpack.c.bf16 %v2055_v34, %v2054_v26  ;;  %3292 = vmatpush.bf16.msrb.mxu3 %v7228_v56  ;;  %v2089_v34 = vld [vmem:[#allocation2 + $0x108] sm:$0xff] }
 0x259   :  { %2350 = vmatmul.bf16.gmra.mxu3 %v2116_v33 }
 0x25a   :  { %2439 = vmatmul.bf16.gmra.mxu0 %v2117_v61 }
 0x25b   :  { %v1901_v3 = vpop.f32.mrf.mxu2 }
 0x25c   :  { %v1902_v5 = vadd.f32 %v1901_v3, %v1812_v51  ;;  %v2311_v6 = vpop.f32.mrf.mxu3  ;;  %v1814_v8 = vpop.f32.mrf.mxu1  ;;  %v2119_v51 = vpack.c.bf16 %v2087_v38, %v2086_v36 }
 0x25d   :  { %v2401_v50 = vadd.f32 %v2400_v55, %v2311_v6  ;;  %v7220_v55 = vld [vmem:[%s8908_s4 + $0x240] sm:$0xff] }
 0x25e   :  { %v1972_v9 = vadd.f32 %v1902_v5, %v7745_v27  ;;  %v1619_v27 = vpack.c.bf16 %v1556_v20, %v1555_v17  ;;  %2882 = vmatpush.bf16.msrb.mxu2 %v7220_v55  ;;  %v1558_v17 = vld [vmem:[#allocation2 + $0x105] sm:$0xff] }
 0x25f   :  { %v2402_v10 = vpop.f32.mrf.mxu0 }
 0x260   :  { %v7912_v19 = vadd.f32 %v2401_v50, %v1972_v9  ;;  %v7236_v9 = vld [vmem:[%s8908_s4 + $0x2c0] sm:$0xff] }
 0x261   :  { %3381 = vmatpush.bf16.msrb.mxu0 %v7236_v9  ;;  %v1592_v9 = vld [vmem:[#allocation2 + $0x116] sm:$0xff] }
 0x263   :  { %v1903_v53 = vpop.f32.mrf.mxu2 }
 0x264   :  { %v1904_v30 = vadd.f32 %v1903_v53, %v1814_v8  ;;  %v2313_v32 = vpop.f32.mrf.mxu3  ;;  %v1817_v41 = vpop.f32.mrf.mxu1  ;;  %v7212_v8 = vld [vmem:[%s8908_s4 + $0x200] sm:$0xff] }
 0x265   :  { %v2403_v63 = vadd.f32 %v2402_v10, %v2313_v32  ;;  %v1557_v10 = vld [vmem:[#allocation2 + $0xfd] sm:$0xff]  ;;  %2793 = vmatpush.bf16.msrb.mxu1 %v7212_v8  ;;  %v1591_v8 = vld [vmem:[#allocation2 + $0x10e] sm:$0xff] }
 0x266   :  { %v1973_v42 = vadd.f32 %v1904_v30, %v7747_v45  ;;  %v1589_v53 = vld [vmem:[#allocation2 + $0xfe] sm:$0xff]  ;;  %v2057_v30 = vld [vmem:[#allocation2 + $0x107] sm:$0xff] }
 0x267   :  { %v2405_v46 = vpop.f32.mrf.mxu0  ;;  %1856 = vmatmul.bf16.gmra.mxu1 %v1619_v27  ;;  %v2088_v32 = vld [vmem:[#allocation2 + $0x100] sm:$0xff]  ;;  %v2120_v27 = vpack.c.bf16 %v2057_v30, %v2056_v22  ;;  %v2091_v22 = vld [vmem:[#allocation2 + $0x118] sm:$0xff] }
 0x268   :  { %v7915_v7 = vadd.f32 %v2403_v63, %v1973_v42  ;;  %1945 = vmatmul.bf16.gmra.mxu2 %v1620_v47  ;;  %v1621_v42 = vpack.c.bf16 %v1558_v17, %v1557_v10  ;;  %v2121_v47 = vpack.c.bf16 %v2089_v34, %v2088_v32  ;;  %v2058_v10 = vld [vmem:[#allocation2 + $0x10f] sm:$0xff]  ;;  %v1624_v34 = vpack.c.bf16 %v1592_v9, %v1591_v8  ;;  %v1594_v8 = vld [vmem:[#allocation2 + $0x126] sm:$0xff] }
 0x269   :  { %2355 = vmatmul.bf16.gmra.mxu3 %v2118_v48  ;;  %v2060_v9 = vld [vmem:[#allocation2 + $0x11f] sm:$0xff] }
 0x26a   :  { %2444 = vmatmul.bf16.gmra.mxu0 %v2119_v51 }
 0x26b   :  { %v1906_v45 = vpop.f32.mrf.mxu2 }
 0x26c   :  { %v1907_v57 = vadd.f32 %v1906_v45, %v1817_v41  ;;  %v2316_v33 = vpop.f32.mrf.mxu3  ;;  %v1819_v3 = vpop.f32.mrf.mxu1 }
 0x26d   :  { %v2406_v61 = vadd.f32 %v2405_v46, %v2316_v33  ;;  %v1622_v46 = vpack.c.bf16 %v1590_v21, %v1589_v53  ;;  %v2059_v53 = vld [vmem:[#allocation2 + $0x117] sm:$0xff] }
 0x26e   :  { %v1974_v5 = vadd.f32 %v1907_v57, %v7755_v59  ;;  %v2090_v21 = vld [vmem:[#allocation2 + $0x110] sm:$0xff] }
 0x26f   :  { %v2407_v6 = vpop.f32.mrf.mxu0 }
 0x270   :  { %v7924_v50 = vadd.f32 %v2406_v61, %v1974_v5  ;;  %v1560_v5 = vld [vmem:[#allocation2 + $0x115] sm:$0xff] }
 0x273   :  { %v1908_v20 = vpop.f32.mrf.mxu2 }
 0x274   :  { %v1909_v59 = vadd.f32 %v1908_v20, %v1819_v3  ;;  %v2318_v26 = vpop.f32.mrf.mxu3  ;;  %v1822_v38 = vpop.f32.mrf.mxu1  ;;  %v1559_v3 = vld [vmem:[#allocation2 + $0x10d] sm:$0xff] }
 0x275   :  { %v2408_v36 = vadd.f32 %v2407_v6, %v2318_v26 }
 0x276   :  { %v1975_v63 = vadd.f32 %v1909_v59, %v7763_v16 }
 0x277   :  { %v2410_v41 = vpop.f32.mrf.mxu0  ;;  %1861 = vmatmul.bf16.gmra.mxu1 %v1621_v42  ;;  %v7267_v42 = vld [vmem:[%s8908_s4 + $0x3b8] sm:$0xff] }
 0x278   :  { %v7933_v48 = vadd.f32 %v2408_v36, %v1975_v63  ;;  %1950 = vmatmul.bf16.gmra.mxu2 %v1622_v46  ;;  %v2122_v36 = vpack.c.bf16 %v2059_v53, %v2058_v10  ;;  %4283 = vmatpush.bf16.msra.mxu3 %v7267_v42  ;;  %v2093_v53 = vld [vmem:[#allocation2 + $0x128] sm:$0xff] }
 0x279   :  { %2360 = vmatmul.bf16.gmra.mxu3 %v2120_v27 }
 0x27a   :  { %2449 = vmatmul.bf16.gmra.mxu0 %v2121_v47 }
 0x27b   :  { %v1911_v51 = vpop.f32.mrf.mxu2 }
 0x27c   :  { %v1912_v55 = vadd.f32 %v1911_v51, %v1822_v38  ;;  %v2321_v56 = vpop.f32.mrf.mxu3  ;;  %v1824_v57 = vpop.f32.mrf.mxu1  ;;  %v2123_v38 = vpack.c.bf16 %v2091_v22, %v2090_v21 }
 0x27d   :  { %v2411_v45 = vadd.f32 %v2410_v41, %v2321_v56  ;;  %v7259_v41 = vld [vmem:[%s8908_s4 + $0x378] sm:$0xff] }
 0x27e   :  { %v1976_v33 = vadd.f32 %v1912_v55, %v7765_v25  ;;  %v1623_v25 = vpack.c.bf16 %v1560_v5, %v1559_v3  ;;  %3873 = vmatpush.bf16.msra.mxu2 %v7259_v41  ;;  %v1562_v3 = vld [vmem:[#allocation2 + $0x125] sm:$0xff] }
 0x27f   :  { %v2412_v61 = vpop.f32.mrf.mxu0 }
 0x280   :  { %v7936_v16 = vadd.f32 %v2411_v45, %v1976_v33  ;;  %v7275_v33 = vld [vmem:[%s8908_s4 + $0x3f8] sm:$0xff] }
 0x281   :  { %4372 = vmatpush.bf16.msra.mxu0 %v7275_v33 }
 0x283   :  { %v1913_v6 = vpop.f32.mrf.mxu2 }
 0x284   :  { %v1914_v17 = vadd.f32 %v1913_v6, %v1824_v57  ;;  %v2323_v20 = vpop.f32.mrf.mxu3  ;;  %v1827_v26 = vpop.f32.mrf.mxu1  ;;  %v7251_v57 = vld [vmem:[%s8908_s4 + $0x338] sm:$0xff] }
 0x285   :  { %v2413_v59 = vadd.f32 %v2412_v61, %v2323_v20  ;;  %v1561_v61 = vld [vmem:[#allocation2 + $0x11d] sm:$0xff]  ;;  %3784 = vmatpush.bf16.msra.mxu1 %v7251_v57 }
 0x286   :  { %v1977_v30 = vadd.f32 %v1914_v17, %v7767_v44  ;;  %v1593_v6 = vld [vmem:[#allocation2 + $0x11e] sm:$0xff]  ;;  %v2061_v17 = vld [vmem:[#allocation2 + $0x127] sm:$0xff] }
 0x287   :  { %v2415_v32 = vpop.f32.mrf.mxu0  ;;  %1866 = vmatmul.bf16.gmra.mxu1 %v1623_v25  ;;  %v2092_v20 = vld [vmem:[#allocation2 + $0x120] sm:$0xff]  ;;  %v2124_v25 = vpack.c.bf16 %v2061_v17, %v2060_v9  ;;  %v2561_v9 = vld [vmem:[#allocation2 + $0x12] sm:$0xff] }
 0x288   :  { %v7939_v63 = vadd.f32 %v2413_v59, %v1977_v30  ;;  %1955 = vmatmul.bf16.gmra.mxu2 %v1624_v34  ;;  %v1625_v30 = vpack.c.bf16 %v1562_v3, %v1561_v61  ;;  %v2125_v34 = vpack.c.bf16 %v2093_v53, %v2092_v20  ;;  %v3029_v61 = vld [vmem:[#allocation2 + $0x1b] sm:$0xff] }
 0x289   :  { %2365 = vmatmul.bf16.gmra.mxu3 %v2122_v36  ;;  %v3061_v3 = vld [vmem:[#allocation2 + $0x1c] sm:$0xff]  ;;  %v3060_v53 = vld [vmem:[#allocation2 + $0x14] sm:$0xff] }
 0x28a   :  { %2454 = vmatmul.bf16.gmra.mxu0 %v2123_v38 }
 0x28b   :  { %v1916_v44 = vpop.f32.mrf.mxu2 }
 0x28c   :  { %v1917_v46 = vadd.f32 %v1916_v44, %v1827_v26  ;;  %v2326_v27 = vpop.f32.mrf.mxu3  ;;  %v1829_v51 = vpop.f32.mrf.mxu1 }
 0x28d   :  { %v2416_v47 = vadd.f32 %v2415_v32, %v2326_v27  ;;  %v1626_v32 = vpack.c.bf16 %v1594_v8, %v1593_v6  ;;  %v2529_v8 = vld [vmem:[#allocation2 + $0x11] sm:$0xff] }
 0x28e   :  { %v1978_v55 = vadd.f32 %v1917_v46, %v7775_v60 }
 0x28f   :  { %v2417_v56 = vpop.f32.mrf.mxu0 }
 0x290   :  { %v7948_v45 = vadd.f32 %v2416_v47, %v1978_v55  ;;  %v2530_v55 = vld [vmem:[#allocation2 + $0x19] sm:$0xff] }
 0x291   :  { %v2593_v17 = vpack.c.bf16 %v2530_v55, %v2529_v8  ;;  %v2564_v55 = vld [vmem:[#allocation2 + $0x2a] sm:$0xff] }
 0x293   :  { %v1918_v5 = vpop.f32.mrf.mxu2 }
 0x294   :  { %v1919_v60 = vadd.f32 %v1918_v5, %v1829_v51  ;;  %v2328_v10 = vpop.f32.mrf.mxu3  ;;  %v1832_v22 = vpop.f32.mrf.mxu1 }
 0x295   :  { %v2418_v21 = vadd.f32 %v2417_v56, %v2328_v10  ;;  %v2562_v56 = vld [vmem:[#allocation2 + $0x1a] sm:$0xff] }
 0x296   :  { %v1979_v59 = vadd.f32 %v1919_v60, %v7783_v18  ;;  %v2594_v20 = vpack.c.bf16 %v2562_v56, %v2561_v9 }
 0x297   :  { %v2420_v26 = vpop.f32.mrf.mxu0  ;;  %1871 = vmatmul.bf16.gmra.mxu1 %v1625_v30 }
 0x298   :  { %v7957_v36 = vadd.f32 %v2418_v21, %v1979_v59  ;;  %1960 = vmatmul.bf16.gmra.mxu2 %v1626_v32 }
 0x299   :  { %2370 = vmatmul.bf16.gmra.mxu3 %v2124_v25 }
 0x29a   :  { %2459 = vmatmul.bf16.gmra.mxu0 %v2125_v34 }
 0x29b   :  { %v1921_v38 = vpop.f32.mrf.mxu2 }
 0x29c   :  { %v1922_v41 = vadd.f32 %v1921_v38, %v1832_v22  ;;  %v2331_v42 = vpop.f32.mrf.mxu3  ;;  %v1834_v46 = vpop.f32.mrf.mxu1  ;;  %v3093_v22 = vpack.c.bf16 %v3061_v3, %v3060_v53 }
 0x29d   :  { %v2421_v44 = vadd.f32 %v2420_v26, %v2331_v42  ;;  %v7258_v26 = vld [vmem:[%s8908_s4 + $0x370] sm:$0xff] }
 0x29e   :  { %v1980_v27 = vadd.f32 %v1922_v41, %v7785_v29  ;;  %v3028_v29 = vld [vmem:[#allocation2 + $0x13] sm:$0xff]  ;;  %3874 = vmatpush.bf16.msra.mxu2 %v7258_v26 }
 0x29f   :  { %v2422_v47 = vpop.f32.mrf.mxu0  ;;  %v3092_v21 = vpack.c.bf16 %v3029_v61, %v3028_v29 }
 0x2a0   :  { %v7960_v18 = vadd.f32 %v2421_v44, %v1980_v27  ;;  %v7274_v27 = vld [vmem:[%s8908_s4 + $0x3f0] sm:$0xff] }
 0x2a1   :  { %4373 = vmatpush.bf16.msra.mxu0 %v7274_v27 }
 0x2a3   :  { %v1923_v51 = vpop.f32.mrf.mxu2 }
 0x2a4   :  { %v1924_v57 = vadd.f32 %v1923_v51, %v1834_v46  ;;  %v2333_v33 = vpop.f32.mrf.mxu3  ;;  %v1837_v6 = vpop.f32.mrf.mxu1  ;;  %v7250_v46 = vld [vmem:[%s8908_s4 + $0x330] sm:$0xff] }
 0x2a5   :  { %v2423_v5 = vadd.f32 %v2422_v47, %v2333_v33  ;;  %3785 = vmatpush.bf16.msra.mxu1 %v7250_v46  ;;  %v2532_v51 = vld [vmem:[#allocation2 + $0x29] sm:$0xff] }
 0x2a6   :  { %v1981_v60 = vadd.f32 %v1924_v57, %v7787_v49  ;;  %v7266_v49 = vld [vmem:[%s8908_s4 + $0x3b0] sm:$0xff] }
 0x2a7   :  { %v2425_v10 = vpop.f32.mrf.mxu0  ;;  %2794 = vmatmul.bf16.vlgmr.msrb.gmra.mxu1 %v2593_v17  ;;  %4284 = vmatpush.bf16.msra.mxu3 %v7266_v49  ;;  %v3031_v33 = vld [vmem:[#allocation2 + $0x2b] sm:$0xff]  ;;  %v3030_v17 = vld [vmem:[#allocation2 + $0x23] sm:$0xff] }
 0x2a8   :  { %v7963_v59 = vadd.f32 %v2423_v5, %v1981_v60  ;;  %2883 = vmatmul.bf16.vlgmr.msrb.gmra.mxu2 %v2594_v20  ;;  %v2531_v5 = vld [vmem:[#allocation2 + $0x21] sm:$0xff]  ;;  %v3094_v29 = vpack.c.bf16 %v3031_v33, %v3030_v17  ;;  %v2565_v33 = vld [vmem:[#allocation2 + $0x32] sm:$0xff] }
 0x2a9   :  { %3293 = vmatmul.bf16.vlgmr.msrb.gmra.mxu3 %v3092_v21  ;;  %v2595_v60 = vpack.c.bf16 %v2532_v51, %v2531_v5  ;;  %v3062_v20 = vld [vmem:[#allocation2 + $0x24] sm:$0xff]  ;;  %v3065_v51 = vld [vmem:[#allocation2 + $0x3c] sm:$0xff] }
 0x2aa   :  { %3382 = vmatmul.bf16.vlgmr.msrb.gmra.mxu0 %v3093_v22 }
 0x2ab   :  { %v1926_v30 = vpop.f32.mrf.mxu2 }
 0x2ac   :  { %v1927_v32 = vadd.f32 %v1926_v30, %v1837_v6  ;;  %v2336_v25 = vpop.f32.mrf.mxu3  ;;  %v1839_v38 = vpop.f32.mrf.mxu1  ;;  %v2563_v6 = vld [vmem:[#allocation2 + $0x22] sm:$0xff] }
 0x2ad   :  { %v2426_v34 = vadd.f32 %v2425_v10, %v2336_v25  ;;  %v2596_v10 = vpack.c.bf16 %v2564_v55, %v2563_v6  ;;  %v3064_v6 = vld [vmem:[#allocation2 + $0x34] sm:$0xff] }
 0x2ae   :  { %v1982_v41 = vadd.f32 %v1927_v32, %v7795_v2  ;;  %v3063_v2 = vld [vmem:[#allocation2 + $0x2c] sm:$0xff] }
 0x2af   :  { %v2427_v42 = vpop.f32.mrf.mxu0  ;;  %v3095_v53 = vpack.c.bf16 %v3063_v2, %v3062_v20 }
 0x2b0   :  { %v7972_v44 = vadd.f32 %v2426_v34, %v1982_v41  ;;  %v2534_v41 = vld [vmem:[#allocation2 + $0x39] sm:$0xff] }
 0x2b3   :  { %v1928_v47 = vpop.f32.mrf.mxu2 }
 0x2b4   :  { %v1929_v56 = vadd.f32 %v1928_v47, %v1839_v38  ;;  %v2338_v57 = vpop.f32.mrf.mxu3  ;;  %v1842_v3 = vpop.f32.mrf.mxu1  ;;  %v3033_v47 = vld [vmem:[#allocation2 + $0x3b] sm:$0xff] }
 0x2b5   :  { %v2428_v61 = vadd.f32 %v2427_v42, %v2338_v57  ;;  %v2566_v42 = vld [vmem:[#allocation2 + $0x3a] sm:$0xff]  ;;  %v2533_v57 = vld [vmem:[#allocation2 + $0x31] sm:$0xff] }
 0x2b6   :  { %v1983_v8 = vadd.f32 %v1929_v56, %v7803_v23  ;;  %v2598_v5 = vpack.c.bf16 %v2566_v42, %v2565_v33 }
 0x2b7   :  { %v2430_v9 = vpop.f32.mrf.mxu0  ;;  %2799 = vmatmul.bf16.gmra.mxu1 %v2595_v60 }
 0x2b8   :  { %v7981_v21 = vadd.f32 %v2428_v61, %v1983_v8  ;;  %2888 = vmatmul.bf16.gmra.mxu2 %v2596_v10  ;;  %v7257_v10 = vld [vmem:[%s8908_s4 + $0x368] sm:$0xff] }
 0x2b9   :  { %3298 = vmatmul.bf16.gmra.mxu3 %v3094_v29  ;;  %3875 = vmatpush.bf16.msra.mxu2 %v7257_v10 }
 0x2ba   :  { %3387 = vmatmul.bf16.gmra.mxu0 %v3095_v53 }
 0x2bb   :  { %v1931_v22 = vpop.f32.mrf.mxu2 }
 0x2bc   :  { %v1932_v26 = vadd.f32 %v1931_v22, %v1842_v3  ;;  %v2341_v49 = vpop.f32.mrf.mxu3  ;;  %v1844_v32 = vpop.f32.mrf.mxu1  ;;  %v2597_v3 = vpack.c.bf16 %v2534_v41, %v2533_v57  ;;  %v2568_v41 = vld [vmem:[#allocation2 + $0x4a] sm:$0xff] }
 0x2bd   :  { %v2431_v30 = vadd.f32 %v2430_v9, %v2341_v49  ;;  %v3097_v9 = vpack.c.bf16 %v3065_v51, %v3064_v6 }
 0x2be   :  { %v1984_v23 = vadd.f32 %v1932_v26, %v7805_v37  ;;  %v3032_v37 = vld [vmem:[#allocation2 + $0x33] sm:$0xff] }
 0x2bf   :  { %v2432_v25 = vpop.f32.mrf.mxu0  ;;  %v3096_v8 = vpack.c.bf16 %v3033_v47, %v3032_v37 }
 0x2c0   :  { %v7984_v34 = vadd.f32 %v2431_v30, %v1984_v23  ;;  %v7273_v23 = vld [vmem:[%s8908_s4 + $0x3e8] sm:$0xff] }
 0x2c1   :  { %4374 = vmatpush.bf16.msra.mxu0 %v7273_v23  ;;  %v2570_v23 = vld [vmem:[#allocation2 + $0x5a] sm:$0xff] }
 0x2c3   :  { %v1933_v38 = vpop.f32.mrf.mxu2 }
 0x2c4   :  { %v1934_v46 = vadd.f32 %v1933_v38, %v1844_v32  ;;  %v2343_v27 = vpop.f32.mrf.mxu3  ;;  %v1847_v56 = vpop.f32.mrf.mxu1  ;;  %v7249_v32 = vld [vmem:[%s8908_s4 + $0x328] sm:$0xff] }
 0x2c5   :  { %v2433_v55 = vadd.f32 %v2432_v25, %v2343_v27  ;;  %3786 = vmatpush.bf16.msra.mxu1 %v7249_v32  ;;  %v2536_v38 = vld [vmem:[#allocation2 + $0x49] sm:$0xff]  ;;  %v2569_v32 = vld [vmem:[#allocation2 + $0x52] sm:$0xff] }
 0x2c6   :  { %v1985_v2 = vadd.f32 %v1934_v46, %v7807_v62  ;;  %v7265_v62 = vld [vmem:[%s8908_s4 + $0x3a8] sm:$0xff] }
 0x2c7   :  { %v2435_v61 = vpop.f32.mrf.mxu0  ;;  %2804 = vmatmul.bf16.gmra.mxu1 %v2597_v3  ;;  %4285 = vmatpush.bf16.msra.mxu3 %v7265_v62  ;;  %v3035_v27 = vld [vmem:[#allocation2 + $0x4b] sm:$0xff]  ;;  %v3034_v3 = vld [vmem:[#allocation2 + $0x43] sm:$0xff] }
 0x2c8   :  { %v7987_v60 = vadd.f32 %v2433_v55, %v1985_v2  ;;  %2893 = vmatmul.bf16.gmra.mxu2 %v2598_v5  ;;  %v2535_v55 = vld [vmem:[#allocation2 + $0x41] sm:$0xff]  ;;  %v3098_v37 = vpack.c.bf16 %v3035_v27, %v3034_v3 }
 0x2c9   :  { %3303 = vmatmul.bf16.gmra.mxu3 %v3096_v8  ;;  %v2599_v2 = vpack.c.bf16 %v2536_v38, %v2535_v55  ;;  %v3066_v5 = vld [vmem:[#allocation2 + $0x44] sm:$0xff]  ;;  %v3069_v27 = vld [vmem:[#allocation2 + $0x5c] sm:$0xff] }
 0x2ca   :  { %3392 = vmatmul.bf16.gmra.mxu0 %v3097_v9  ;;  %v7264_v3 = vld [vmem:[%s8908_s4 + $0x3a0] sm:$0xff] }
 0x2cb   :  { %v1936_v17 = vpop.f32.mrf.mxu2  ;;  %4286 = vmatpush.bf16.msra.mxu3 %v7264_v3 }
 0x2cc   :  { %v1937_v20 = vadd.f32 %v1936_v17, %v1847_v56  ;;  %v2346_v29 = vpop.f32.mrf.mxu3  ;;  %v1849_v22 = vpop.f32.mrf.mxu1  ;;  %v2567_v56 = vld [vmem:[#allocation2 + $0x42] sm:$0xff] }
 0x2cd   :  { %v2436_v53 = vadd.f32 %v2435_v61, %v2346_v29  ;;  %v2600_v61 = vpack.c.bf16 %v2568_v41, %v2567_v56  ;;  %v2602_v56 = vpack.c.bf16 %v2570_v23, %v2569_v32  ;;  %v2572_v32 = vld [vmem:[#allocation2 + $0x6a] sm:$0xff] }
 0x2ce   :  { %v1986_v26 = vadd.f32 %v1937_v20, %v7815_v12  ;;  %v3067_v12 = vld [vmem:[#allocation2 + $0x4c] sm:$0xff]  ;;  %v3038_v23 = vld [vmem:[#allocation2 + $0x63] sm:$0xff] }
 0x2cf   :  { %v2437_v49 = vpop.f32.mrf.mxu0  ;;  %v3099_v6 = vpack.c.bf16 %v3067_v12, %v3066_v5 }
 0x2d0   :  { %v7996_v30 = vadd.f32 %v2436_v53, %v1986_v26  ;;  %v2538_v26 = vld [vmem:[#allocation2 + $0x59] sm:$0xff] }
 0x2d3   :  { %v1938_v25 = vpop.f32.mrf.mxu2 }
 0x2d4   :  { %v1939_v42 = vadd.f32 %v1938_v25, %v1849_v22  ;;  %v2348_v46 = vpop.f32.mrf.mxu3  ;;  %v1852_v51 = vpop.f32.mrf.mxu1  ;;  %v2537_v22 = vld [vmem:[#allocation2 + $0x51] sm:$0xff] }
 0x2d5   :  { %v2438_v47 = vadd.f32 %v2437_v49, %v2348_v46  ;;  %v3036_v25 = vld [vmem:[#allocation2 + $0x53] sm:$0xff] }
 0x2d6   :  { %v1987_v57 = vadd.f32 %v1939_v42, %v7823_v39  ;;  %v3037_v42 = vld [vmem:[#allocation2 + $0x5b] sm:$0xff] }
 0x2d7   :  { %v2440_v33 = vpop.f32.mrf.mxu0  ;;  %2809 = vmatmul.bf16.gmra.mxu1 %v2599_v2  ;;  %v3068_v46 = vld [vmem:[#allocation2 + $0x54] sm:$0xff] }
 0x2d8   :  { %v8005_v8 = vadd.f32 %v2438_v47, %v1987_v57  ;;  %2898 = vmatmul.bf16.gmra.mxu2 %v2600_v61  ;;  %v3100_v57 = vpack.c.bf16 %v3037_v42, %v3036_v25  ;;  %v7256_v61 = vld [vmem:[%s8908_s4 + $0x360] sm:$0xff]  ;;  %v3071_v42 = vld [vmem:[#allocation2 + $0x6c] sm:$0xff] }
 0x2d9   :  { %3308 = vmatmul.bf16.gmra.mxu3 %v3098_v37  ;;  %3876 = vmatpush.bf16.msra.mxu2 %v7256_v61 }
 0x2da   :  { %3397 = vmatmul.bf16.gmra.mxu0 %v3099_v6 }
 0x2db   :  { %v1941_v9 = vpop.f32.mrf.mxu2 }
 0x2dc   :  { %v1942_v10 = vadd.f32 %v1941_v9, %v1852_v51  ;;  %v2351_v62 = vpop.f32.mrf.mxu3  ;;  %v1854_v20 = vpop.f32.mrf.mxu1 }
 0x2dd   :  { %v2441_v17 = vadd.f32 %v2440_v33, %v2351_v62  ;;  %v3101_v33 = vpack.c.bf16 %v3069_v27, %v3068_v46 }
 0x2de   :  { %v1988_v39 = vadd.f32 %v1942_v10, %v7825_v52  ;;  %v2601_v52 = vpack.c.bf16 %v2538_v26, %v2537_v22  ;;  %v2540_v22 = vld [vmem:[#allocation2 + $0x69] sm:$0xff] }
 0x2df   :  { %v2442_v29 = vpop.f32.mrf.mxu0 }
 0x2e0   :  { %v8008_v53 = vadd.f32 %v2441_v17, %v1988_v39  ;;  %v7272_v39 = vld [vmem:[%s8908_s4 + $0x3e0] sm:$0xff] }
 0x2e1   :  { %4375 = vmatpush.bf16.msra.mxu0 %v7272_v39  ;;  %v2574_v39 = vld [vmem:[#allocation2 + $0x7a] sm:$0xff] }
 0x2e3   :  { %v1943_v49 = vpop.f32.mrf.mxu2 }
 0x2e4   :  { %v1944_v38 = vadd.f32 %v1943_v49, %v1854_v20  ;;  %v2353_v41 = vpop.f32.mrf.mxu3  ;;  %v1857_v47 = vpop.f32.mrf.mxu1  ;;  %v7248_v20 = vld [vmem:[%s8908_s4 + $0x320] sm:$0xff] }
 0x2e5   :  { %v2443_v12 = vadd.f32 %v2442_v29, %v2353_v41  ;;  %v2539_v29 = vld [vmem:[#allocation2 + $0x61] sm:$0xff]  ;;  %3787 = vmatpush.bf16.msra.mxu1 %v7248_v20  ;;  %v2573_v20 = vld [vmem:[#allocation2 + $0x72] sm:$0xff] }
 0x2e6   :  { %v1989_v51 = vadd.f32 %v1944_v38, %v7827_v14  ;;  %v2571_v49 = vld [vmem:[#allocation2 + $0x62] sm:$0xff]  ;;  %v3039_v38 = vld [vmem:[#allocation2 + $0x6b] sm:$0xff] }
 0x2e7   :  { %v2445_v55 = vpop.f32.mrf.mxu0  ;;  %2814 = vmatmul.bf16.gmra.mxu1 %v2601_v52  ;;  %v3070_v41 = vld [vmem:[#allocation2 + $0x64] sm:$0xff]  ;;  %v3102_v52 = vpack.c.bf16 %v3039_v38, %v3038_v23  ;;  %v3073_v23 = vld [vmem:[#allocation2 + $0x7c] sm:$0xff] }
 0x2e8   :  { %v8011_v2 = vadd.f32 %v2443_v12, %v1989_v51  ;;  %2903 = vmatmul.bf16.gmra.mxu2 %v2602_v56  ;;  %v2603_v51 = vpack.c.bf16 %v2540_v22, %v2539_v29  ;;  %v3103_v56 = vpack.c.bf16 %v3071_v42, %v3070_v41  ;;  %v3040_v29 = vld [vmem:[#allocation2 + $0x73] sm:$0xff]  ;;  %v2606_v42 = vpack.c.bf16 %v2574_v39, %v2573_v20  ;;  %v2576_v20 = vld [vmem:[#allocation2 + $0x8a] sm:$0xff] }
 0x2e9   :  { %3313 = vmatmul.bf16.gmra.mxu3 %v3100_v57  ;;  %v3042_v39 = vld [vmem:[#allocation2 + $0x83] sm:$0xff] }
 0x2ea   :  { %3402 = vmatmul.bf16.gmra.mxu0 %v3101_v33 }
 0x2eb   :  { %v1946_v14 = vpop.f32.mrf.mxu2 }
 0x2ec   :  { %v1947_v5 = vadd.f32 %v1946_v14, %v1857_v47  ;;  %v2356_v37 = vpop.f32.mrf.mxu3  ;;  %v1859_v9 = vpop.f32.mrf.mxu1 }
 0x2ed   :  { %v2446_v6 = vadd.f32 %v2445_v55, %v2356_v37  ;;  %v2604_v55 = vpack.c.bf16 %v2572_v32, %v2571_v49  ;;  %v3041_v49 = vld [vmem:[#allocation2 + $0x7b] sm:$0xff] }
 0x2ee   :  { %v1990_v10 = vadd.f32 %v1947_v5, %v7835_v31  ;;  %v3072_v32 = vld [vmem:[#allocation2 + $0x74] sm:$0xff] }
 0x2ef   :  { %v2447_v62 = vpop.f32.mrf.mxu0 }
 0x2f0   :  { %v8020_v17 = vadd.f32 %v2446_v6, %v1990_v10  ;;  %v2542_v10 = vld [vmem:[#allocation2 + $0x79] sm:$0xff] }
 0x2f3   :  { %v1948_v26 = vpop.f32.mrf.mxu2 }
 0x2f4   :  { %v1949_v31 = vadd.f32 %v1948_v26, %v1859_v9  ;;  %v2358_v25 = vpop.f32.mrf.mxu3  ;;  %v1862_v27 = vpop.f32.mrf.mxu1  ;;  %v2541_v9 = vld [vmem:[#allocation2 + $0x71] sm:$0xff] }
 0x2f5   :  { %v2448_v46 = vadd.f32 %v2447_v62, %v2358_v25 }
 0x2f6   :  { %v1991_v12 = vadd.f32 %v1949_v31, %v7843_v0 }
 0x2f7   :  { %v2450_v47 = vpop.f32.mrf.mxu0  ;;  %2819 = vmatmul.bf16.gmra.mxu1 %v2603_v51  ;;  %v7263_v51 = vld [vmem:[%s8908_s4 + $0x398] sm:$0xff] }
 0x2f8   :  { %v8029_v57 = vadd.f32 %v2448_v46, %v1991_v12  ;;  %2908 = vmatmul.bf16.gmra.mxu2 %v2604_v55  ;;  %v3104_v46 = vpack.c.bf16 %v3041_v49, %v3040_v29  ;;  %4287 = vmatpush.bf16.msra.mxu3 %v7263_v51  ;;  %v3075_v49 = vld [vmem:[#allocation2 + $0x8c] sm:$0xff] }
 0x2f9   :  { %3318 = vmatmul.bf16.gmra.mxu3 %v3102_v52 }
 0x2fa   :  { %3407 = vmatmul.bf16.gmra.mxu0 %v3103_v56 }
 0x2fb   :  { %v1951_v33 = vpop.f32.mrf.mxu2 }
 0x2fc   :  { %v1952_v61 = vadd.f32 %v1951_v33, %v1862_v27  ;;  %v2361_v3 = vpop.f32.mrf.mxu3  ;;  %v1864_v5 = vpop.f32.mrf.mxu1  ;;  %v3105_v27 = vpack.c.bf16 %v3073_v23, %v3072_v32 }
 0x2fd   :  { %v2451_v14 = vadd.f32 %v2450_v47, %v2361_v3  ;;  %v7255_v47 = vld [vmem:[%s8908_s4 + $0x358] sm:$0xff] }
 0x2fe   :  { %v1992_v37 = vadd.f32 %v1952_v61, %v7845_v11  ;;  %v2605_v11 = vpack.c.bf16 %v2542_v10, %v2541_v9  ;;  %3877 = vmatpush.bf16.msra.mxu2 %v7255_v47  ;;  %v2544_v9 = vld [vmem:[#allocation2 + $0x89] sm:$0xff] }
 0x2ff   :  { %v2452_v6 = vpop.f32.mrf.mxu0 }
 0x300   :  { %v8032_v0 = vadd.f32 %v2451_v14, %v1992_v37  ;;  %v7271_v37 = vld [vmem:[%s8908_s4 + $0x3d8] sm:$0xff] }
 0x301   :  { %4376 = vmatpush.bf16.msra.mxu0 %v7271_v37  ;;  %v2578_v37 = vld [vmem:[#allocation2 + $0xba] sm:$0xff] }
 0x303   :  { %v1953_v62 = vpop.f32.mrf.mxu2 }
 0x304   :  { %v1954_v22 = vadd.f32 %v1953_v62, %v1864_v5  ;;  %v2363_v26 = vpop.f32.mrf.mxu3  ;;  %v1867_v25 = vpop.f32.mrf.mxu1  ;;  %v7247_v5 = vld [vmem:[%s8908_s4 + $0x318] sm:$0xff]  ;;  %v2575_v62 = vld [vmem:[#allocation2 + $0x82] sm:$0xff] }
 0x305   :  { %v2453_v31 = vadd.f32 %v2452_v6, %v2363_v26  ;;  %v2543_v6 = vld [vmem:[#allocation2 + $0x81] sm:$0xff]  ;;  %3788 = vmatpush.bf16.msra.mxu1 %v7247_v5  ;;  %v2577_v5 = vld [vmem:[#allocation2 + $0xb2] sm:$0xff] }
 0x306   :  { %v1993_v38 = vadd.f32 %v1954_v22, %v7847_v40  ;;  %v3043_v22 = vld [vmem:[#allocation2 + $0x8b] sm:$0xff] }
 0x307   :  { %v2455_v41 = vpop.f32.mrf.mxu0  ;;  %2824 = vmatmul.bf16.gmra.mxu1 %v2605_v11  ;;  %v3074_v26 = vld [vmem:[#allocation2 + $0x84] sm:$0xff]  ;;  %v3106_v11 = vpack.c.bf16 %v3043_v22, %v3042_v39  ;;  %v3077_v39 = vld [vmem:[#allocation2 + $0xbc] sm:$0xff] }
 0x308   :  { %v8035_v12 = vadd.f32 %v2453_v31, %v1993_v38  ;;  %2913 = vmatmul.bf16.gmra.mxu2 %v2606_v42  ;;  %v2607_v38 = vpack.c.bf16 %v2544_v9, %v2543_v6  ;;  %v3107_v42 = vpack.c.bf16 %v3075_v49, %v3074_v26  ;;  %v3044_v6 = vld [vmem:[#allocation2 + $0xb3] sm:$0xff]  ;;  %v2610_v49 = vpack.c.bf16 %v2578_v37, %v2577_v5  ;;  %v2580_v5 = vld [vmem:[#allocation2 + $0xca] sm:$0xff] }
 0x309   :  { %3323 = vmatmul.bf16.gmra.mxu3 %v3104_v46  ;;  %v3046_v37 = vld [vmem:[#allocation2 + $0xc3] sm:$0xff] }
 0x30a   :  { %3412 = vmatmul.bf16.gmra.mxu0 %v3105_v27 }
 0x30b   :  { %v1956_v40 = vpop.f32.mrf.mxu2 }
 0x30c   :  { %v1957_v55 = vadd.f32 %v1956_v40, %v1867_v25  ;;  %v2366_v52 = vpop.f32.mrf.mxu3  ;;  %v1869_v33 = vpop.f32.mrf.mxu1 }
 0x30d   :  { %v2456_v56 = vadd.f32 %v2455_v41, %v2366_v52  ;;  %v2608_v41 = vpack.c.bf16 %v2576_v20, %v2575_v62  ;;  %v3045_v62 = vld [vmem:[#allocation2 + $0xbb] sm:$0xff] }
 0x30e   :  { %v1994_v61 = vadd.f32 %v1957_v55, %v7855_v58  ;;  %v3076_v20 = vld [vmem:[#allocation2 + $0xb4] sm:$0xff] }
 0x30f   :  { %v2457_v3 = vpop.f32.mrf.mxu0 }
 0x310   :  { %v8044_v14 = vadd.f32 %v2456_v56, %v1994_v61  ;;  %v2546_v61 = vld [vmem:[#allocation2 + $0xb9] sm:$0xff] }
 0x313   :  { %v1958_v10 = vpop.f32.mrf.mxu2 }
 0x314   :  { %v1959_v58 = vadd.f32 %v1958_v10, %v1869_v33  ;;  %v2368_v29 = vpop.f32.mrf.mxu3  ;;  %v1872_v23 = vpop.f32.mrf.mxu1  ;;  %v2545_v33 = vld [vmem:[#allocation2 + $0xb1] sm:$0xff] }
 0x315   :  { %v2458_v32 = vadd.f32 %v2457_v3, %v2368_v29 }
 0x316   :  { %v1995_v31 = vadd.f32 %v1959_v58, %v7863_v28 }
 0x317   :  { %v2460_v25 = vpop.f32.mrf.mxu0  ;;  %2829 = vmatmul.bf16.gmra.mxu1 %v2607_v38  ;;  %v7262_v38 = vld [vmem:[%s8908_s4 + $0x390] sm:$0xff] }
 0x318   :  { %v8053_v46 = vadd.f32 %v2458_v32, %v1995_v31  ;;  %2918 = vmatmul.bf16.gmra.mxu2 %v2608_v41  ;;  %v3108_v32 = vpack.c.bf16 %v3045_v62, %v3044_v6  ;;  %4288 = vmatpush.bf16.msra.mxu3 %v7262_v38  ;;  %v3079_v62 = vld [vmem:[#allocation2 + $0xcc] sm:$0xff] }
 0x319   :  { %3328 = vmatmul.bf16.gmra.mxu3 %v3106_v11 }
 0x31a   :  { %3417 = vmatmul.bf16.gmra.mxu0 %v3107_v42 }
 0x31b   :  { %v1961_v27 = vpop.f32.mrf.mxu2 }
 0x31c   :  { %v1962_v47 = vadd.f32 %v1961_v27, %v1872_v23  ;;  %v2371_v51 = vpop.f32.mrf.mxu3  ;;  %v1874_v55 = vpop.f32.mrf.mxu1  ;;  %v3109_v23 = vpack.c.bf16 %v3077_v39, %v3076_v20 }
 0x31d   :  { %v2461_v40 = vadd.f32 %v2460_v25, %v2371_v51  ;;  %v7254_v25 = vld [vmem:[%s8908_s4 + $0x350] sm:$0xff] }
 0x31e   :  { %v1996_v52 = vadd.f32 %v1962_v47, %v7865_v43  ;;  %v2609_v43 = vpack.c.bf16 %v2546_v61, %v2545_v33  ;;  %3878 = vmatpush.bf16.msra.mxu2 %v7254_v25  ;;  %v2548_v33 = vld [vmem:[#allocation2 + $0xc9] sm:$0xff] }
 0x31f   :  { %v2462_v56 = vpop.f32.mrf.mxu0 }
 0x320   :  { %v8056_v28 = vadd.f32 %v2461_v40, %v1996_v52  ;;  %v7270_v52 = vld [vmem:[%s8908_s4 + $0x3d0] sm:$0xff] }
 0x321   :  { %4377 = vmatpush.bf16.msra.mxu0 %v7270_v52  ;;  %v2582_v52 = vld [vmem:[#allocation2 + $0xda] sm:$0xff] }
 0x323   :  { %v1963_v3 = vpop.f32.mrf.mxu2 }
 0x324   :  { %v1964_v9 = vadd.f32 %v1963_v3, %v1874_v55  ;;  %v2373_v10 = vpop.f32.mrf.mxu3  ;;  %v2795_v29 = vpop.f32.mrf.mxu1  ;;  %v7246_v55 = vld [vmem:[%s8908_s4 + $0x310] sm:$0xff]  ;;  %v2579_v3 = vld [vmem:[#allocation2 + $0xc2] sm:$0xff] }
 0x325   :  { %v2463_v58 = vadd.f32 %v2462_v56, %v2373_v10  ;;  %v2547_v56 = vld [vmem:[#allocation2 + $0xc1] sm:$0xff]  ;;  %3789 = vmatpush.bf16.msra.mxu1 %v7246_v55  ;;  %v2581_v55 = vld [vmem:[#allocation2 + $0xd2] sm:$0xff] }
 0x326   :  { %v1997_v22 = vadd.f32 %v1964_v9, %v7867_v13  ;;  %v3047_v9 = vld [vmem:[#allocation2 + $0xcb] sm:$0xff] }
 0x327   :  { %v3383_v26 = vpop.f32.mrf.mxu0  ;;  %2834 = vmatmul.bf16.gmra.mxu1 %v2609_v43  ;;  %v3078_v10 = vld [vmem:[#allocation2 + $0xc4] sm:$0xff]  ;;  %v3110_v43 = vpack.c.bf16 %v3047_v9, %v3046_v37  ;;  %v3081_v37 = vld [vmem:[#allocation2 + $0xdc] sm:$0xff] }
 0x328   :  { %v8059_v31 = vadd.f32 %v2463_v58, %v1997_v22  ;;  %2923 = vmatmul.bf16.gmra.mxu2 %v2610_v49  ;;  %v2611_v22 = vpack.c.bf16 %v2548_v33, %v2547_v56  ;;  %v3111_v49 = vpack.c.bf16 %v3079_v62, %v3078_v10  ;;  %v3048_v56 = vld [vmem:[#allocation2 + $0xd3] sm:$0xff]  ;;  %v2614_v62 = vpack.c.bf16 %v2582_v52, %v2581_v55  ;;  %v2584_v55 = vld [vmem:[#allocation2 + $0xea] sm:$0xff] }
 0x329   :  { %3333 = vmatmul.bf16.gmra.mxu3 %v3108_v32  ;;  %v3050_v52 = vld [vmem:[#allocation2 + $0xe3] sm:$0xff] }
 0x32a   :  { %3422 = vmatmul.bf16.gmra.mxu0 %v3109_v23 }
 0x32b   :  { %v2884_v13 = vpop.f32.mrf.mxu2 }
 0x32c   :  { %v2885_v41 = vadd.f32 %v2884_v13, %v2795_v29  ;;  %v3294_v11 = vpop.f32.mrf.mxu3  ;;  %v2797_v27 = vpop.f32.mrf.mxu1 }
 0x32d   :  { %v3384_v42 = vadd.f32 %v3383_v26, %v3294_v11  ;;  %v2612_v26 = vpack.c.bf16 %v2580_v5, %v2579_v3  ;;  %v3049_v3 = vld [vmem:[#allocation2 + $0xdb] sm:$0xff] }
 0x32e   :  { %v2964_v47 = vadd.f32 %v2885_v41, %v7876_v35  ;;  %v3080_v5 = vld [vmem:[#allocation2 + $0xd4] sm:$0xff] }
 0x32f   :  { %v3385_v51 = vpop.f32.mrf.mxu0 }
 0x330   :  { %v8068_v40 = vadd.f32 %v3384_v42, %v2964_v47  ;;  %v2550_v47 = vld [vmem:[#allocation2 + $0xd9] sm:$0xff] }
 0x333   :  { %v2886_v61 = vpop.f32.mrf.mxu2 }
 0x334   :  { %v2887_v35 = vadd.f32 %v2886_v61, %v2797_v27  ;;  %v3296_v6 = vpop.f32.mrf.mxu3  ;;  %v2800_v39 = vpop.f32.mrf.mxu1  ;;  %v2549_v27 = vld [vmem:[#allocation2 + $0xd1] sm:$0xff] }
 0x335   :  { %v3386_v20 = vadd.f32 %v3385_v51, %v3296_v6 }
 0x336   :  { %v2965_v58 = vadd.f32 %v2887_v35, %v7885_v15 }
 0x337   :  { %v3388_v29 = vpop.f32.mrf.mxu0  ;;  %2839 = vmatmul.bf16.gmra.mxu1 %v2611_v22  ;;  %v7261_v22 = vld [vmem:[%s8908_s4 + $0x388] sm:$0xff] }
 0x338   :  { %v8077_v32 = vadd.f32 %v3386_v20, %v2965_v58  ;;  %2928 = vmatmul.bf16.gmra.mxu2 %v2612_v26  ;;  %v3112_v20 = vpack.c.bf16 %v3049_v3, %v3048_v56  ;;  %4289 = vmatpush.bf16.msra.mxu3 %v7261_v22  ;;  %v3083_v3 = vld [vmem:[#allocation2 + $0xec] sm:$0xff] }
 0x339   :  { %3338 = vmatmul.bf16.gmra.mxu3 %v3110_v43 }
 0x33a   :  { %3427 = vmatmul.bf16.gmra.mxu0 %v3111_v49 }
 0x33b   :  { %v2889_v23 = vpop.f32.mrf.mxu2 }
 0x33c   :  { %v2890_v25 = vadd.f32 %v2889_v23, %v2800_v39  ;;  %v3299_v38 = vpop.f32.mrf.mxu3  ;;  %v2802_v41 = vpop.f32.mrf.mxu1  ;;  %v3113_v39 = vpack.c.bf16 %v3081_v37, %v3080_v5 }
 0x33d   :  { %v3389_v13 = vadd.f32 %v3388_v29, %v3299_v38  ;;  %v7253_v29 = vld [vmem:[%s8908_s4 + $0x348] sm:$0xff] }
 0x33e   :  { %v2966_v11 = vadd.f32 %v2890_v25, %v7888_v24  ;;  %v2613_v24 = vpack.c.bf16 %v2550_v47, %v2549_v27  ;;  %3879 = vmatpush.bf16.msra.mxu2 %v7253_v29  ;;  %v2552_v27 = vld [vmem:[#allocation2 + $0xe9] sm:$0xff] }
 0x33f   :  { %v3390_v42 = vpop.f32.mrf.mxu0 }
 0x340   :  { %v8080_v15 = vadd.f32 %v3389_v13, %v2966_v11  ;;  %v7269_v11 = vld [vmem:[%s8908_s4 + $0x3c8] sm:$0xff] }
 0x341   :  { %4378 = vmatpush.bf16.msra.mxu0 %v7269_v11  ;;  %v2586_v11 = vld [vmem:[#allocation2 + $0xfa] sm:$0xff] }
 0x343   :  { %v2891_v51 = vpop.f32.mrf.mxu2 }
 0x344   :  { %v2892_v33 = vadd.f32 %v2891_v51, %v2802_v41  ;;  %v3301_v61 = vpop.f32.mrf.mxu3  ;;  %v2805_v6 = vpop.f32.mrf.mxu1  ;;  %v7245_v41 = vld [vmem:[%s8908_s4 + $0x308] sm:$0xff] }
 0x345   :  { %v3391_v35 = vadd.f32 %v3390_v42, %v3301_v61  ;;  %v2551_v42 = vld [vmem:[#allocation2 + $0xe1] sm:$0xff]  ;;  %3790 = vmatpush.bf16.msra.mxu1 %v7245_v41  ;;  %v2585_v41 = vld [vmem:[#allocation2 + $0xf2] sm:$0xff] }
 0x346   :  { %v2967_v9 = vadd.f32 %v2892_v33, %v7891_v4  ;;  %v2583_v51 = vld [vmem:[#allocation2 + $0xe2] sm:$0xff]  ;;  %v3051_v33 = vld [vmem:[#allocation2 + $0xeb] sm:$0xff] }
 0x347   :  { %v3393_v10 = vpop.f32.mrf.mxu0  ;;  %2844 = vmatmul.bf16.gmra.mxu1 %v2613_v24  ;;  %v3082_v61 = vld [vmem:[#allocation2 + $0xe4] sm:$0xff]  ;;  %v3114_v24 = vpack.c.bf16 %v3051_v33, %v3050_v52  ;;  %v3085_v52 = vld [vmem:[#allocation2 + $0xfc] sm:$0xff] }
 0x348   :  { %v8083_v58 = vadd.f32 %v3391_v35, %v2967_v9  ;;  %2933 = vmatmul.bf16.gmra.mxu2 %v2614_v62  ;;  %v2615_v9 = vpack.c.bf16 %v2552_v27, %v2551_v42  ;;  %v3115_v62 = vpack.c.bf16 %v3083_v3, %v3082_v61  ;;  %v3052_v42 = vld [vmem:[#allocation2 + $0xf3] sm:$0xff]  ;;  %v2618_v3 = vpack.c.bf16 %v2586_v11, %v2585_v41  ;;  %v2588_v41 = vld [vmem:[#allocation2 + $0x10a] sm:$0xff] }
 0x349   :  { %3343 = vmatmul.bf16.gmra.mxu3 %v3112_v20  ;;  %v3054_v11 = vld [vmem:[#allocation2 + $0x103] sm:$0xff] }
 0x34a   :  { %3432 = vmatmul.bf16.gmra.mxu0 %v3113_v39 }
 0x34b   :  { %v2894_v4 = vpop.f32.mrf.mxu2 }
 0x34c   :  { %v2895_v26 = vadd.f32 %v2894_v4, %v2805_v6  ;;  %v3304_v43 = vpop.f32.mrf.mxu3  ;;  %v2807_v23 = vpop.f32.mrf.mxu1 }
 0x34d   :  { %v3394_v49 = vadd.f32 %v3393_v10, %v3304_v43  ;;  %v2616_v10 = vpack.c.bf16 %v2584_v55, %v2583_v51  ;;  %v3053_v51 = vld [vmem:[#allocation2 + $0xfb] sm:$0xff] }
 0x34e   :  { %v2968_v25 = vadd.f32 %v2895_v26, %v7900_v54  ;;  %v3084_v55 = vld [vmem:[#allocation2 + $0xf4] sm:$0xff] }
 0x34f   :  { %v3395_v38 = vpop.f32.mrf.mxu0 }
 0x350   :  { %v8092_v13 = vadd.f32 %v3394_v49, %v2968_v25  ;;  %v2554_v25 = vld [vmem:[#allocation2 + $0xf9] sm:$0xff] }
 0x353   :  { %v2896_v47 = vpop.f32.mrf.mxu2 }
 0x354   :  { %v2897_v54 = vadd.f32 %v2896_v47, %v2807_v23  ;;  %v3306_v56 = vpop.f32.mrf.mxu3  ;;  %v2810_v37 = vpop.f32.mrf.mxu1  ;;  %v2553_v23 = vld [vmem:[#allocation2 + $0xf1] sm:$0xff] }
 0x355   :  { %v3396_v5 = vadd.f32 %v3395_v38, %v3306_v56 }
 0x356   :  { %v2969_v35 = vadd.f32 %v2897_v54, %v7909_v1 }
 0x357   :  { %v3398_v6 = vpop.f32.mrf.mxu0  ;;  %2849 = vmatmul.bf16.gmra.mxu1 %v2615_v9  ;;  %v7260_v9 = vld [vmem:[%s8908_s4 + $0x380] sm:$0xff] }
 0x358   :  { %v8101_v20 = vadd.f32 %v3396_v5, %v2969_v35  ;;  %2938 = vmatmul.bf16.gmra.mxu2 %v2616_v10  ;;  %v3116_v5 = vpack.c.bf16 %v3053_v51, %v3052_v42  ;;  %4290 = vmatpush.bf16.msra.mxu3 %v7260_v9  ;;  %v3087_v51 = vld [vmem:[#allocation2 + $0x10c] sm:$0xff] }
 0x359   :  { %3348 = vmatmul.bf16.gmra.mxu3 %v3114_v24 }
 0x35a   :  { %3437 = vmatmul.bf16.gmra.mxu0 %v3115_v62 }
 0x35b   :  { %v2899_v39 = vpop.f32.mrf.mxu2 }
 0x35c   :  { %v2900_v29 = vadd.f32 %v2899_v39, %v2810_v37  ;;  %v3309_v22 = vpop.f32.mrf.mxu3  ;;  %v2812_v26 = vpop.f32.mrf.mxu1  ;;  %v3117_v37 = vpack.c.bf16 %v3085_v52, %v3084_v55 }
 0x35d   :  { %v3399_v4 = vadd.f32 %v3398_v6, %v3309_v22  ;;  %v7252_v6 = vld [vmem:[%s8908_s4 + $0x340] sm:$0xff] }
 0x35e   :  { %v2970_v43 = vadd.f32 %v2900_v29, %v7912_v19  ;;  %v2617_v19 = vpack.c.bf16 %v2554_v25, %v2553_v23  ;;  %3880 = vmatpush.bf16.msra.mxu2 %v7252_v6  ;;  %v2556_v23 = vld [vmem:[#allocation2 + $0x109] sm:$0xff] }
 0x35f   :  { %v3400_v49 = vpop.f32.mrf.mxu0 }
 0x360   :  { %v8104_v1 = vadd.f32 %v3399_v4, %v2970_v43  ;;  %v7268_v43 = vld [vmem:[%s8908_s4 + $0x3c0] sm:$0xff] }
 0x361   :  { %4379 = vmatpush.bf16.msra.mxu0 %v7268_v43  ;;  %v2590_v43 = vld [vmem:[#allocation2 + $0x11a] sm:$0xff] }
 0x363   :  { %v2901_v38 = vpop.f32.mrf.mxu2 }
 0x364   :  { %v2902_v27 = vadd.f32 %v2901_v38, %v2812_v26  ;;  %v3311_v47 = vpop.f32.mrf.mxu3  ;;  %v2815_v56 = vpop.f32.mrf.mxu1  ;;  %v7244_v26 = vld [vmem:[%s8908_s4 + $0x300] sm:$0xff] }
 0x365   :  { %v3401_v54 = vadd.f32 %v3400_v49, %v3311_v47  ;;  %v2555_v49 = vld [vmem:[#allocation2 + $0x101] sm:$0xff]  ;;  %3791 = vmatpush.bf16.msra.mxu1 %v7244_v26  ;;  %v2589_v26 = vld [vmem:[#allocation2 + $0x112] sm:$0xff] }
 0x366   :  { %v2971_v33 = vadd.f32 %v2902_v27, %v7915_v7  ;;  %v2587_v38 = vld [vmem:[#allocation2 + $0x102] sm:$0xff]  ;;  %v3055_v27 = vld [vmem:[#allocation2 + $0x10b] sm:$0xff] }
 0x367   :  { %v3403_v61 = vpop.f32.mrf.mxu0  ;;  %2854 = vmatmul.bf16.gmra.mxu1 %v2617_v19  ;;  %v3086_v47 = vld [vmem:[#allocation2 + $0x104] sm:$0xff]  ;;  %v3118_v19 = vpack.c.bf16 %v3055_v27, %v3054_v11  ;;  %v3089_v11 = vld [vmem:[#allocation2 + $0x11c] sm:$0xff] }
 0x368   :  { %v8107_v35 = vadd.f32 %v3401_v54, %v2971_v33  ;;  %2943 = vmatmul.bf16.gmra.mxu2 %v2618_v3  ;;  %v2619_v33 = vpack.c.bf16 %v2556_v23, %v2555_v49  ;;  %v3119_v3 = vpack.c.bf16 %v3087_v51, %v3086_v47  ;;  %v3056_v49 = vld [vmem:[#allocation2 + $0x113] sm:$0xff]  ;;  %v2622_v51 = vpack.c.bf16 %v2590_v43, %v2589_v26  ;;  %v2592_v26 = vld [vmem:[#allocation2 + $0x12a] sm:$0xff] }
 0x369   :  { %3353 = vmatmul.bf16.gmra.mxu3 %v3116_v5  ;;  %v3058_v43 = vld [vmem:[#allocation2 + $0x123] sm:$0xff] }
 0x36a   :  { %3442 = vmatmul.bf16.gmra.mxu0 %v3117_v37 }
 0x36b   :  { %v2904_v7 = vpop.f32.mrf.mxu2 }
 0x36c   :  { %v2905_v10 = vadd.f32 %v2904_v7, %v2815_v56  ;;  %v3314_v24 = vpop.f32.mrf.mxu3  ;;  %v2817_v39 = vpop.f32.mrf.mxu1 }
 0x36d   :  { %v3404_v62 = vadd.f32 %v3403_v61, %v3314_v24  ;;  %v2620_v61 = vpack.c.bf16 %v2588_v41, %v2587_v38  ;;  %v3057_v38 = vld [vmem:[#allocation2 + $0x11b] sm:$0xff] }
 0x36e   :  { %v2972_v29 = vadd.f32 %v2905_v10, %v7924_v50  ;;  %v3088_v41 = vld [vmem:[#allocation2 + $0x114] sm:$0xff] }
 0x36f   :  { %v3405_v22 = vpop.f32.mrf.mxu0 }
 0x370   :  { %v8116_v4 = vadd.f32 %v3404_v62, %v2972_v29  ;;  %v2558_v29 = vld [vmem:[#allocation2 + $0x119] sm:$0xff] }
 0x373   :  { %v2906_v25 = vpop.f32.mrf.mxu2 }
 0x374   :  { %v2907_v50 = vadd.f32 %v2906_v25, %v2817_v39  ;;  %v3316_v42 = vpop.f32.mrf.mxu3  ;;  %v2820_v52 = vpop.f32.mrf.mxu1  ;;  %v2557_v39 = vld [vmem:[#allocation2 + $0x111] sm:$0xff] }
 0x375   :  { %v3406_v55 = vadd.f32 %v3405_v22, %v3316_v42 }
 0x376   :  { %v2973_v54 = vadd.f32 %v2907_v50, %v7933_v48 }
 0x377   :  { %v3408_v56 = vpop.f32.mrf.mxu0  ;;  %2859 = vmatmul.bf16.gmra.mxu1 %v2619_v33  ;;  %v7299_v33 = vld [vmem:[%s8909_s7 + $0xb8] sm:$0xff] }
 0x378   :  { %v8125_v5 = vadd.f32 %v3406_v55, %v2973_v54  ;;  %2948 = vmatmul.bf16.gmra.mxu2 %v2620_v61  ;;  %v3120_v55 = vpack.c.bf16 %v3057_v38, %v3056_v49  ;;  %5480 = vmatpush.bf16.msrb.mxu3 %v7299_v33  ;;  %v3091_v38 = vld [vmem:[#allocation2 + $0x12c] sm:$0xff] }
 0x379   :  { %3358 = vmatmul.bf16.gmra.mxu3 %v3118_v19 }
 0x37a   :  { %3447 = vmatmul.bf16.gmra.mxu0 %v3119_v3 }
 0x37b   :  { %v2909_v37 = vpop.f32.mrf.mxu2 }
 0x37c   :  { %v2910_v6 = vadd.f32 %v2909_v37, %v2820_v52  ;;  %v3319_v9 = vpop.f32.mrf.mxu3  ;;  %v2822_v10 = vpop.f32.mrf.mxu1  ;;  %v3121_v52 = vpack.c.bf16 %v3089_v11, %v3088_v41 }
 0x37d   :  { %v3409_v7 = vadd.f32 %v3408_v56, %v3319_v9  ;;  %v7291_v56 = vld [vmem:[%s8909_s7 + $0x78] sm:$0xff] }
 0x37e   :  { %v2974_v24 = vadd.f32 %v2910_v6, %v7936_v16  ;;  %v2621_v16 = vpack.c.bf16 %v2558_v29, %v2557_v39  ;;  %5070 = vmatpush.bf16.msrb.mxu2 %v7291_v56  ;;  %v2560_v39 = vld [vmem:[#allocation2 + $0x129] sm:$0xff] }
 0x37f   :  { %v3410_v62 = vpop.f32.mrf.mxu0 }
 0x380   :  { %v8128_v48 = vadd.f32 %v3409_v7, %v2974_v24  ;;  %v7307_v24 = vld [vmem:[%s8909_s7 + $0xf8] sm:$0xff] }
 0x381   :  { %5569 = vmatpush.bf16.msrb.mxu0 %v7307_v24 }
 0x383   :  { %v2911_v22 = vpop.f32.mrf.mxu2 }
 0x384   :  { %v2912_v23 = vadd.f32 %v2911_v22, %v2822_v10  ;;  %v3321_v25 = vpop.f32.mrf.mxu3  ;;  %v2825_v42 = vpop.f32.mrf.mxu1  ;;  %v7283_v10 = vld [vmem:[%s8909_s7 + $0x38] sm:$0xff]  ;;  %v2591_v22 = vld [vmem:[#allocation2 + $0x122] sm:$0xff] }
 0x385   :  { %v3411_v50 = vadd.f32 %v3410_v62, %v3321_v25  ;;  %v2559_v62 = vld [vmem:[#allocation2 + $0x121] sm:$0xff]  ;;  %4981 = vmatpush.bf16.msrb.mxu1 %v7283_v10 }
 0x386   :  { %v2975_v27 = vadd.f32 %v2912_v23, %v7939_v63  ;;  %v3059_v23 = vld [vmem:[#allocation2 + $0x12b] sm:$0xff] }
 0x387   :  { %v3413_v47 = vpop.f32.mrf.mxu0  ;;  %2864 = vmatmul.bf16.gmra.mxu1 %v2621_v16  ;;  %v3090_v25 = vld [vmem:[#allocation2 + $0x124] sm:$0xff]  ;;  %v3122_v16 = vpack.c.bf16 %v3059_v23, %v3058_v43  ;;  %v3559_v43 = vld [vmem:[#allocation2 + $0x16] sm:$0xff] }
 0x388   :  { %v8131_v54 = vadd.f32 %v3411_v50, %v2975_v27  ;;  %2953 = vmatmul.bf16.gmra.mxu2 %v2622_v51  ;;  %v2623_v27 = vpack.c.bf16 %v2560_v39, %v2559_v62  ;;  %v3123_v51 = vpack.c.bf16 %v3091_v38, %v3090_v25  ;;  %v4027_v62 = vld [vmem:[#allocation2 + $0x1f] sm:$0xff] }
 0x389   :  { %3363 = vmatmul.bf16.gmra.mxu3 %v3120_v55  ;;  %v4059_v39 = vld [vmem:[#allocation2 + $0x20] sm:$0xff]  ;;  %v4058_v38 = vld [vmem:[#allocation2 + $0x18] sm:$0xff] }
 0x38a   :  { %3452 = vmatmul.bf16.gmra.mxu0 %v3121_v52 }
 0x38b   :  { %v2914_v63 = vpop.f32.mrf.mxu2 }
 0x38c   :  { %v2915_v61 = vadd.f32 %v2914_v63, %v2825_v42  ;;  %v3324_v19 = vpop.f32.mrf.mxu3  ;;  %v2827_v37 = vpop.f32.mrf.mxu1 }
 0x38d   :  { %v3414_v3 = vadd.f32 %v3413_v47, %v3324_v19  ;;  %v2624_v47 = vpack.c.bf16 %v2592_v26, %v2591_v22  ;;  %v3527_v26 = vld [vmem:[#allocation2 + $0x15] sm:$0xff] }
 0x38e   :  { %v2976_v6 = vadd.f32 %v2915_v61, %v7948_v45 }
 0x38f   :  { %v3415_v9 = vpop.f32.mrf.mxu0 }
 0x390   :  { %v8140_v7 = vadd.f32 %v3414_v3, %v2976_v6  ;;  %v3528_v6 = vld [vmem:[#allocation2 + $0x1d] sm:$0xff] }
 0x391   :  { %v3591_v23 = vpack.c.bf16 %v3528_v6, %v3527_v26  ;;  %v3562_v6 = vld [vmem:[#allocation2 + $0x2e] sm:$0xff] }
 0x393   :  { %v2916_v29 = vpop.f32.mrf.mxu2 }
 0x394   :  { %v2917_v45 = vadd.f32 %v2916_v29, %v2827_v37  ;;  %v3326_v49 = vpop.f32.mrf.mxu3  ;;  %v2830_v11 = vpop.f32.mrf.mxu1 }
 0x395   :  { %v3416_v41 = vadd.f32 %v3415_v9, %v3326_v49  ;;  %v3560_v9 = vld [vmem:[#allocation2 + $0x1e] sm:$0xff] }
 0x396   :  { %v2977_v50 = vadd.f32 %v2917_v45, %v7957_v36  ;;  %v3592_v25 = vpack.c.bf16 %v3560_v9, %v3559_v43 }
 0x397   :  { %v3418_v42 = vpop.f32.mrf.mxu0  ;;  %2869 = vmatmul.bf16.gmra.mxu1 %v2623_v27 }
 0x398   :  { %v8149_v55 = vadd.f32 %v3416_v41, %v2977_v50  ;;  %2958 = vmatmul.bf16.gmra.mxu2 %v2624_v47 }
 0x399   :  { %3368 = vmatmul.bf16.gmra.mxu3 %v3122_v16 }
 0x39a   :  { %3457 = vmatmul.bf16.gmra.mxu0 %v3123_v51 }
 0x39b   :  { %v2919_v52 = vpop.f32.mrf.mxu2 }
 0x39c   :  { %v2920_v56 = vadd.f32 %v2919_v52, %v2830_v11  ;;  %v3329_v33 = vpop.f32.mrf.mxu3  ;;  %v2832_v61 = vpop.f32.mrf.mxu1  ;;  %v4091_v11 = vpack.c.bf16 %v4059_v39, %v4058_v38 }
 0x39d   :  { %v3419_v63 = vadd.f32 %v3418_v42, %v3329_v33  ;;  %v7290_v42 = vld [vmem:[%s8909_s7 + $0x70] sm:$0xff] }
 0x39e   :  { %v2978_v19 = vadd.f32 %v2920_v56, %v7960_v18  ;;  %v4026_v18 = vld [vmem:[#allocation2 + $0x17] sm:$0xff]  ;;  %5071 = vmatpush.bf16.msrb.mxu2 %v7290_v42 }
 0x39f   :  { %v3420_v3 = vpop.f32.mrf.mxu0  ;;  %v4090_v41 = vpack.c.bf16 %v4027_v62, %v4026_v18 }
 0x3a0   :  { %v8152_v36 = vadd.f32 %v3419_v63, %v2978_v19  ;;  %v7306_v19 = vld [vmem:[%s8909_s7 + $0xf0] sm:$0xff] }
 0x3a1   :  { %5570 = vmatpush.bf16.msrb.mxu0 %v7306_v19 }
 0x3a3   :  { %v2921_v37 = vpop.f32.mrf.mxu2 }
 0x3a4   :  { %v2922_v10 = vadd.f32 %v2921_v37, %v2832_v61  ;;  %v3331_v24 = vpop.f32.mrf.mxu3  ;;  %v2835_v22 = vpop.f32.mrf.mxu1  ;;  %v7282_v61 = vld [vmem:[%s8909_s7 + $0x30] sm:$0xff] }
 0x3a5   :  { %v3421_v29 = vadd.f32 %v3420_v3, %v3331_v24  ;;  %4982 = vmatpush.bf16.msrb.mxu1 %v7282_v61  ;;  %v3530_v37 = vld [vmem:[#allocation2 + $0x2d] sm:$0xff] }
 0x3a6   :  { %v2979_v45 = vadd.f32 %v2922_v10, %v7963_v59  ;;  %v7298_v59 = vld [vmem:[%s8909_s7 + $0xb0] sm:$0xff] }
 0x3a7   :  { %v3423_v49 = vpop.f32.mrf.mxu0  ;;  %3792 = vmatmul.bf16.vlgmr.msra.gmra.mxu1 %v3591_v23  ;;  %5481 = vmatpush.bf16.msrb.mxu3 %v7298_v59  ;;  %v4029_v24 = vld [vmem:[#allocation2 + $0x2f] sm:$0xff]  ;;  %v4028_v23 = vld [vmem:[#allocation2 + $0x27] sm:$0xff] }
 0x3a8   :  { %v8155_v50 = vadd.f32 %v3421_v29, %v2979_v45  ;;  %3881 = vmatmul.bf16.vlgmr.msra.gmra.mxu2 %v3592_v25  ;;  %v3529_v29 = vld [vmem:[#allocation2 + $0x25] sm:$0xff]  ;;  %v4092_v18 = vpack.c.bf16 %v4029_v24, %v4028_v23  ;;  %v3563_v24 = vld [vmem:[#allocation2 + $0x36] sm:$0xff] }
 0x3a9   :  { %4291 = vmatmul.bf16.vlgmr.msra.gmra.mxu3 %v4090_v41  ;;  %v3593_v45 = vpack.c.bf16 %v3530_v37, %v3529_v29  ;;  %v4060_v25 = vld [vmem:[#allocation2 + $0x28] sm:$0xff]  ;;  %v4063_v37 = vld [vmem:[#allocation2 + $0x40] sm:$0xff] }
 0x3aa   :  { %4380 = vmatmul.bf16.vlgmr.msra.gmra.mxu0 %v4091_v11 }
 0x3ab   :  { %v2924_v27 = vpop.f32.mrf.mxu2 }
 0x3ac   :  { %v2925_v47 = vadd.f32 %v2924_v27, %v2835_v22  ;;  %v3334_v16 = vpop.f32.mrf.mxu3  ;;  %v2837_v52 = vpop.f32.mrf.mxu1  ;;  %v3561_v22 = vld [vmem:[#allocation2 + $0x26] sm:$0xff] }
 0x3ad   :  { %v3424_v51 = vadd.f32 %v3423_v49, %v3334_v16  ;;  %v3594_v49 = vpack.c.bf16 %v3562_v6, %v3561_v22  ;;  %v4062_v22 = vld [vmem:[#allocation2 + $0x38] sm:$0xff] }
 0x3ae   :  { %v2980_v56 = vadd.f32 %v2925_v47, %v7972_v44  ;;  %v4061_v44 = vld [vmem:[#allocation2 + $0x30] sm:$0xff] }
 0x3af   :  { %v3425_v33 = vpop.f32.mrf.mxu0  ;;  %v4093_v38 = vpack.c.bf16 %v4061_v44, %v4060_v25 }
 0x3b0   :  { %v8164_v63 = vadd.f32 %v3424_v51, %v2980_v56  ;;  %v3532_v56 = vld [vmem:[#allocation2 + $0x3d] sm:$0xff] }
 0x3b3   :  { %v2926_v3 = vpop.f32.mrf.mxu2 }
 0x3b4   :  { %v2927_v9 = vadd.f32 %v2926_v3, %v2837_v52  ;;  %v3336_v10 = vpop.f32.mrf.mxu3  ;;  %v2840_v39 = vpop.f32.mrf.mxu1  ;;  %v4031_v3 = vld [vmem:[#allocation2 + $0x3f] sm:$0xff] }
 0x3b5   :  { %v3426_v62 = vadd.f32 %v3425_v33, %v3336_v10  ;;  %v3564_v33 = vld [vmem:[#allocation2 + $0x3e] sm:$0xff]  ;;  %v3531_v10 = vld [vmem:[#allocation2 + $0x35] sm:$0xff] }
 0x3b6   :  { %v2981_v26 = vadd.f32 %v2927_v9, %v7981_v21  ;;  %v3596_v29 = vpack.c.bf16 %v3564_v33, %v3563_v24 }
 0x3b7   :  { %v3428_v43 = vpop.f32.mrf.mxu0  ;;  %3797 = vmatmul.bf16.gmra.mxu1 %v3593_v45 }
 0x3b8   :  { %v8173_v41 = vadd.f32 %v3426_v62, %v2981_v26  ;;  %3886 = vmatmul.bf16.gmra.mxu2 %v3594_v49  ;;  %v7289_v49 = vld [vmem:[%s8909_s7 + $0x68] sm:$0xff] }
 0x3b9   :  { %4296 = vmatmul.bf16.gmra.mxu3 %v4092_v18  ;;  %5072 = vmatpush.bf16.msrb.mxu2 %v7289_v49 }
 0x3ba   :  { %4385 = vmatmul.bf16.gmra.mxu0 %v4093_v38 }
 0x3bb   :  { %v2929_v11 = vpop.f32.mrf.mxu2 }
 0x3bc   :  { %v2930_v42 = vadd.f32 %v2929_v11, %v2840_v39  ;;  %v3339_v59 = vpop.f32.mrf.mxu3  ;;  %v2842_v47 = vpop.f32.mrf.mxu1  ;;  %v3595_v39 = vpack.c.bf16 %v3532_v56, %v3531_v10  ;;  %v3566_v56 = vld [vmem:[#allocation2 + $0x4e] sm:$0xff] }
 0x3bd   :  { %v3429_v27 = vadd.f32 %v3428_v43, %v3339_v59  ;;  %v4095_v43 = vpack.c.bf16 %v4063_v37, %v4062_v22 }
 0x3be   :  { %v2982_v21 = vadd.f32 %v2930_v42, %v7984_v34  ;;  %v4030_v34 = vld [vmem:[#allocation2 + $0x37] sm:$0xff] }
 0x3bf   :  { %v3430_v16 = vpop.f32.mrf.mxu0  ;;  %v4094_v26 = vpack.c.bf16 %v4031_v3, %v4030_v34 }
 0x3c0   :  { %v8176_v51 = vadd.f32 %v3429_v27, %v2982_v21  ;;  %v7305_v21 = vld [vmem:[%s8909_s7 + $0xe8] sm:$0xff] }
 0x3c1   :  { %5571 = vmatpush.bf16.msrb.mxu0 %v7305_v21  ;;  %v3568_v21 = vld [vmem:[#allocation2 + $0x5e] sm:$0xff] }
 0x3c3   :  { %v2931_v52 = vpop.f32.mrf.mxu2 }
 0x3c4   :  { %v2932_v61 = vadd.f32 %v2931_v52, %v2842_v47  ;;  %v3341_v19 = vpop.f32.mrf.mxu3  ;;  %v2845_v9 = vpop.f32.mrf.mxu1  ;;  %v7281_v47 = vld [vmem:[%s8909_s7 + $0x28] sm:$0xff] }
 0x3c5   :  { %v3431_v6 = vadd.f32 %v3430_v16, %v3341_v19  ;;  %4983 = vmatpush.bf16.msrb.mxu1 %v7281_v47  ;;  %v3534_v52 = vld [vmem:[#allocation2 + $0x4d] sm:$0xff]  ;;  %v3567_v47 = vld [vmem:[#allocation2 + $0x56] sm:$0xff] }
 0x3c6   :  { %v2983_v44 = vadd.f32 %v2932_v61, %v7987_v60  ;;  %v7297_v60 = vld [vmem:[%s8909_s7 + $0xa8] sm:$0xff] }
 0x3c7   :  { %v3433_v62 = vpop.f32.mrf.mxu0  ;;  %3802 = vmatmul.bf16.gmra.mxu1 %v3595_v39  ;;  %5482 = vmatpush.bf16.msrb.mxu3 %v7297_v60  ;;  %v4033_v19 = vld [vmem:[#allocation2 + $0x4f] sm:$0xff]  ;;  %v4032_v39 = vld [vmem:[#allocation2 + $0x47] sm:$0xff] }
 0x3c8   :  { %v8179_v45 = vadd.f32 %v3431_v6, %v2983_v44  ;;  %3891 = vmatmul.bf16.gmra.mxu2 %v3596_v29  ;;  %v3533_v6 = vld [vmem:[#allocation2 + $0x45] sm:$0xff]  ;;  %v4096_v34 = vpack.c.bf16 %v4033_v19, %v4032_v39 }
 0x3c9   :  { %4301 = vmatmul.bf16.gmra.mxu3 %v4094_v26  ;;  %v3597_v44 = vpack.c.bf16 %v3534_v52, %v3533_v6  ;;  %v4064_v29 = vld [vmem:[#allocation2 + $0x48] sm:$0xff]  ;;  %v4067_v19 = vld [vmem:[#allocation2 + $0x60] sm:$0xff] }
 0x3ca   :  { %4390 = vmatmul.bf16.gmra.mxu0 %v4095_v43  ;;  %v7296_v39 = vld [vmem:[%s8909_s7 + $0xa0] sm:$0xff] }
 0x3cb   :  { %v2934_v23 = vpop.f32.mrf.mxu2  ;;  %5483 = vmatpush.bf16.msrb.mxu3 %v7296_v39 }
 0x3cc   :  { %v2935_v25 = vadd.f32 %v2934_v23, %v2845_v9  ;;  %v3344_v18 = vpop.f32.mrf.mxu3  ;;  %v2847_v11 = vpop.f32.mrf.mxu1  ;;  %v3565_v9 = vld [vmem:[#allocation2 + $0x46] sm:$0xff] }
 0x3cd   :  { %v3434_v38 = vadd.f32 %v3433_v62, %v3344_v18  ;;  %v3598_v62 = vpack.c.bf16 %v3566_v56, %v3565_v9  ;;  %v3600_v9 = vpack.c.bf16 %v3568_v21, %v3567_v47  ;;  %v3570_v47 = vld [vmem:[#allocation2 + $0x6e] sm:$0xff] }
 0x3ce   :  { %v2984_v42 = vadd.f32 %v2935_v25, %v7996_v30  ;;  %v4065_v30 = vld [vmem:[#allocation2 + $0x50] sm:$0xff]  ;;  %v4036_v21 = vld [vmem:[#allocation2 + $0x67] sm:$0xff] }
 0x3cf   :  { %v3435_v59 = vpop.f32.mrf.mxu0  ;;  %v4097_v22 = vpack.c.bf16 %v4065_v30, %v4064_v29 }
 0x3d0   :  { %v8188_v27 = vadd.f32 %v3434_v38, %v2984_v42  ;;  %v3536_v42 = vld [vmem:[#allocation2 + $0x5d] sm:$0xff] }
 0x3d3   :  { %v2936_v16 = vpop.f32.mrf.mxu2 }
 0x3d4   :  { %v2937_v33 = vadd.f32 %v2936_v16, %v2847_v11  ;;  %v3346_v61 = vpop.f32.mrf.mxu3  ;;  %v2850_v37 = vpop.f32.mrf.mxu1  ;;  %v3535_v11 = vld [vmem:[#allocation2 + $0x55] sm:$0xff] }
 0x3d5   :  { %v3436_v3 = vadd.f32 %v3435_v59, %v3346_v61  ;;  %v4034_v16 = vld [vmem:[#allocation2 + $0x57] sm:$0xff] }
 0x3d6   :  { %v2985_v10 = vadd.f32 %v2937_v33, %v8005_v8  ;;  %v4035_v33 = vld [vmem:[#allocation2 + $0x5f] sm:$0xff] }
 0x3d7   :  { %v3438_v24 = vpop.f32.mrf.mxu0  ;;  %3807 = vmatmul.bf16.gmra.mxu1 %v3597_v44  ;;  %v4066_v61 = vld [vmem:[#allocation2 + $0x58] sm:$0xff] }
 0x3d8   :  { %v8197_v26 = vadd.f32 %v3436_v3, %v2985_v10  ;;  %3896 = vmatmul.bf16.gmra.mxu2 %v3598_v62  ;;  %v4098_v10 = vpack.c.bf16 %v4035_v33, %v4034_v16  ;;  %v7288_v62 = vld [vmem:[%s8909_s7 + $0x60] sm:$0xff]  ;;  %v4069_v33 = vld [vmem:[#allocation2 + $0x70] sm:$0xff] }
 0x3d9   :  { %4306 = vmatmul.bf16.gmra.mxu3 %v4096_v34  ;;  %5073 = vmatpush.bf16.msrb.mxu2 %v7288_v62 }
 0x3da   :  { %4395 = vmatmul.bf16.gmra.mxu0 %v4097_v22 }
 0x3db   :  { %v2939_v43 = vpop.f32.mrf.mxu2 }
 0x3dc   :  { %v2940_v49 = vadd.f32 %v2939_v43, %v2850_v37  ;;  %v3349_v60 = vpop.f32.mrf.mxu3  ;;  %v2852_v25 = vpop.f32.mrf.mxu1 }
 0x3dd   :  { %v3439_v23 = vadd.f32 %v3438_v24, %v3349_v60  ;;  %v4099_v24 = vpack.c.bf16 %v4067_v19, %v4066_v61 }
 0x3de   :  { %v2986_v8 = vadd.f32 %v2940_v49, %v8008_v53  ;;  %v3599_v53 = vpack.c.bf16 %v3536_v42, %v3535_v11  ;;  %v3538_v11 = vld [vmem:[#allocation2 + $0x6d] sm:$0xff] }
 0x3df   :  { %v3440_v18 = vpop.f32.mrf.mxu0 }
 0x3e0   :  { %v8200_v38 = vadd.f32 %v3439_v23, %v2986_v8  ;;  %v7304_v8 = vld [vmem:[%s8909_s7 + $0xe0] sm:$0xff] }
 0x3e1   :  { %5572 = vmatpush.bf16.msrb.mxu0 %v7304_v8  ;;  %v3572_v8 = vld [vmem:[#allocation2 + $0x7e] sm:$0xff] }
 0x3e3   :  { %v2941_v59 = vpop.f32.mrf.mxu2 }
 0x3e4   :  { %v2942_v52 = vadd.f32 %v2941_v59, %v2852_v25  ;;  %v3351_v56 = vpop.f32.mrf.mxu3  ;;  %v2855_v3 = vpop.f32.mrf.mxu1  ;;  %v7280_v25 = vld [vmem:[%s8909_s7 + $0x20] sm:$0xff] }
 0x3e5   :  { %v3441_v30 = vadd.f32 %v3440_v18, %v3351_v56  ;;  %v3537_v18 = vld [vmem:[#allocation2 + $0x65] sm:$0xff]  ;;  %4984 = vmatpush.bf16.msrb.mxu1 %v7280_v25  ;;  %v3571_v25 = vld [vmem:[#allocation2 + $0x76] sm:$0xff] }
 0x3e6   :  { %v2987_v37 = vadd.f32 %v2942_v52, %v8011_v2  ;;  %v3569_v59 = vld [vmem:[#allocation2 + $0x66] sm:$0xff]  ;;  %v4037_v52 = vld [vmem:[#allocation2 + $0x6f] sm:$0xff] }
 0x3e7   :  { %v3443_v6 = vpop.f32.mrf.mxu0  ;;  %3812 = vmatmul.bf16.gmra.mxu1 %v3599_v53  ;;  %v4068_v56 = vld [vmem:[#allocation2 + $0x68] sm:$0xff]  ;;  %v4100_v53 = vpack.c.bf16 %v4037_v52, %v4036_v21  ;;  %v4071_v21 = vld [vmem:[#allocation2 + $0x80] sm:$0xff] }
 0x3e8   :  { %v8203_v44 = vadd.f32 %v3441_v30, %v2987_v37  ;;  %3901 = vmatmul.bf16.gmra.mxu2 %v3600_v9  ;;  %v3601_v37 = vpack.c.bf16 %v3538_v11, %v3537_v18  ;;  %v4101_v9 = vpack.c.bf16 %v4069_v33, %v4068_v56  ;;  %v4038_v18 = vld [vmem:[#allocation2 + $0x77] sm:$0xff]  ;;  %v3604_v33 = vpack.c.bf16 %v3572_v8, %v3571_v25  ;;  %v4040_v8 = vld [vmem:[#allocation2 + $0x87] sm:$0xff] }
 0x3e9   :  { %4311 = vmatmul.bf16.gmra.mxu3 %v4098_v10 }
 0x3ea   :  { %4400 = vmatmul.bf16.gmra.mxu0 %v4099_v24 }
 0x3eb   :  { %v2944_v2 = vpop.f32.mrf.mxu2 }
 0x3ec   :  { %v2945_v29 = vadd.f32 %v2944_v2, %v2855_v3  ;;  %v3354_v34 = vpop.f32.mrf.mxu3  ;;  %v2857_v43 = vpop.f32.mrf.mxu1 }
 0x3ed   :  { %v3444_v22 = vadd.f32 %v3443_v6, %v3354_v34  ;;  %v3602_v6 = vpack.c.bf16 %v3570_v47, %v3569_v59  ;;  %v4039_v59 = vld [vmem:[#allocation2 + $0x7f] sm:$0xff] }
 0x3ee   :  { %v2988_v49 = vadd.f32 %v2945_v29, %v8020_v17  ;;  %v4070_v47 = vld [vmem:[#allocation2 + $0x78] sm:$0xff] }
 0x3ef   :  { %v3445_v60 = vpop.f32.mrf.mxu0 }
 0x3f0   :  { %v8212_v23 = vadd.f32 %v3444_v22, %v2988_v49  ;;  %v3540_v49 = vld [vmem:[#allocation2 + $0x7d] sm:$0xff] }
 0x3f3   :  { %v2946_v42 = vpop.f32.mrf.mxu2 }
 0x3f4   :  { %v2947_v17 = vadd.f32 %v2946_v42, %v2857_v43  ;;  %v3356_v16 = vpop.f32.mrf.mxu3  ;;  %v2860_v19 = vpop.f32.mrf.mxu1  ;;  %v3539_v43 = vld [vmem:[#allocation2 + $0x75] sm:$0xff] }
 0x3f5   :  { %v3446_v61 = vadd.f32 %v3445_v60, %v3356_v16 }
 0x3f6   :  { %v2989_v30 = vadd.f32 %v2947_v17, %v8029_v57 }
 0x3f7   :  { %v3448_v3 = vpop.f32.mrf.mxu0  ;;  %3817 = vmatmul.bf16.gmra.mxu1 %v3601_v37  ;;  %v7295_v37 = vld [vmem:[%s8909_s7 + $0x98] sm:$0xff] }
 0x3f8   :  { %v8221_v10 = vadd.f32 %v3446_v61, %v2989_v30  ;;  %3906 = vmatmul.bf16.gmra.mxu2 %v3602_v6  ;;  %v4102_v61 = vpack.c.bf16 %v4039_v59, %v4038_v18  ;;  %5484 = vmatpush.bf16.msrb.mxu3 %v7295_v37  ;;  %v4041_v18 = vld [vmem:[#allocation2 + $0x8f] sm:$0xff] }
 0x3f9   :  { %4316 = vmatmul.bf16.gmra.mxu3 %v4100_v53 }
 0x3fa   :  { %4405 = vmatmul.bf16.gmra.mxu0 %v4101_v9 }
 0x3fb   :  { %v2949_v24 = vpop.f32.mrf.mxu2 }
 0x3fc   :  { %v2950_v62 = vadd.f32 %v2949_v24, %v2860_v19  ;;  %v3359_v39 = vpop.f32.mrf.mxu3  ;;  %v2862_v29 = vpop.f32.mrf.mxu1  ;;  %v4103_v19 = vpack.c.bf16 %v4071_v21, %v4070_v47 }
 0x3fd   :  { %v3449_v2 = vadd.f32 %v3448_v3, %v3359_v39  ;;  %v7287_v3 = vld [vmem:[%s8909_s7 + $0x58] sm:$0xff] }
 0x3fe   :  { %v2990_v34 = vadd.f32 %v2950_v62, %v8032_v0  ;;  %v3603_v0 = vpack.c.bf16 %v3540_v49, %v3539_v43  ;;  %5074 = vmatpush.bf16.msrb.mxu2 %v7287_v3  ;;  %v3573_v43 = vld [vmem:[#allocation2 + $0x86] sm:$0xff]  ;;  %v3574_v49 = vld [vmem:[#allocation2 + $0x8e] sm:$0xff] }
 0x3ff   :  { %v3450_v22 = vpop.f32.mrf.mxu0 }
 0x400   :  { %v8224_v57 = vadd.f32 %v3449_v2, %v2990_v34 }
 0x403   :  { %v2951_v60 = vpop.f32.mrf.mxu2 }
 0x404   :  { %v2952_v11 = vadd.f32 %v2951_v60, %v2862_v29  ;;  %v3361_v42 = vpop.f32.mrf.mxu3  ;;  %v2865_v16 = vpop.f32.mrf.mxu1  ;;  %v3541_v29 = vld [vmem:[#allocation2 + $0x85] sm:$0xff] }
 0x405   :  { %v3451_v17 = vadd.f32 %v3450_v22, %v3361_v42  ;;  %v3542_v22 = vld [vmem:[#allocation2 + $0x8d] sm:$0xff] }
 0x406   :  { %v2991_v52 = vadd.f32 %v2952_v11, %v8035_v12  ;;  %v4072_v11 = vld [vmem:[#allocation2 + $0x88] sm:$0xff] }
 0x407   :  { %v3453_v56 = vpop.f32.mrf.mxu0  ;;  %3822 = vmatmul.bf16.gmra.mxu1 %v3603_v0 }
 0x408   :  { %v8227_v30 = vadd.f32 %v3451_v17, %v2991_v52  ;;  %3911 = vmatmul.bf16.gmra.mxu2 %v3604_v33  ;;  %v3605_v17 = vpack.c.bf16 %v3542_v22, %v3541_v29  ;;  %v8239_v52 = vld [vmem:[#allocation2] sm:$0xff]  ;;  %v7279_v33 = vld [vmem:[%s8909_s7 + $0x18] sm:$0xff] }
 0x409   :  { %4321 = vmatmul.bf16.gmra.mxu3 %v4102_v61  ;;  %4985 = vmatpush.bf16.msrb.mxu1 %v7279_v33  ;;  %v3575_v29 = vld [vmem:[#allocation2 + $0xb6] sm:$0xff] }
 0x40a   :  { %4410 = vmatmul.bf16.gmra.mxu0 %v4103_v19  ;;  %v4042_v22 = vld [vmem:[#allocation2 + $0xb7] sm:$0xff] }
 0x40b   :  { %v2954_v12 = vpop.f32.mrf.mxu2 }
 0x40c   :  { %v2955_v6 = vadd.f32 %v2954_v12, %v2865_v16  ;;  %v3364_v53 = vpop.f32.mrf.mxu3  ;;  %v2867_v24 = vpop.f32.mrf.mxu1  ;;  %v4104_v16 = vpack.c.bf16 %v4041_v18, %v4040_v8  ;;  %v4075_v8 = vld [vmem:[#allocation2 + $0xc0] sm:$0xff] }
 0x40d   :  { %v3454_v9 = vadd.f32 %v3453_v56, %v3364_v53  ;;  %v4105_v56 = vpack.c.bf16 %v8239_v52, %v4072_v11 }
 0x40e   :  { %v2992_v62 = vadd.f32 %v2955_v6, %v8044_v14  ;;  %v3606_v14 = vpack.c.bf16 %v3574_v49, %v3573_v43 }
 0x40f   :  { %v3455_v39 = vpop.f32.mrf.mxu0 }
 0x410   :  { %v8236_v2 = vadd.f32 %v3454_v9, %v2992_v62  ;;  %v3544_v62 = vld [vmem:[#allocation2 + $0xbd] sm:$0xff] }
 0x413   :  { %v2956_v34 = vpop.f32.mrf.mxu2 }
 0x414   :  { %v2957_v60 = vadd.f32 %v2956_v34, %v2867_v24  ;;  %v3366_v25 = vpop.f32.mrf.mxu3  ;;  %v2870_v59 = vpop.f32.mrf.mxu1  ;;  %v3543_v24 = vld [vmem:[#allocation2 + $0xb5] sm:$0xff]  ;;  %v3576_v34 = vld [vmem:[#allocation2 + $0xbe] sm:$0xff] }
 0x415   :  { %v3456_v42 = vadd.f32 %v3455_v39, %v3366_v25  ;;  %v4074_v25 = vld [vmem:[#allocation2 + $0xb8] sm:$0xff] }
 0x416   :  { %v2993_v47 = vadd.f32 %v2957_v60, %v8053_v46  ;;  %v7303_v46 = vld [vmem:[%s8909_s7 + $0xd8] sm:$0xff] }
 0x417   :  { %v3458_v21 = vpop.f32.mrf.mxu0  ;;  %3827 = vmatmul.bf16.gmra.mxu1 %v3605_v17  ;;  %5573 = vmatpush.bf16.msrb.mxu0 %v7303_v46  ;;  %v4043_v60 = vld [vmem:[#allocation2 + $0xbf] sm:$0xff]  ;;  %v4107_v17 = vpack.c.bf16 %v4075_v8, %v4074_v25  ;;  %v4045_v25 = vld [vmem:[#allocation2 + $0xcf] sm:$0xff] }
 0x418   :  { %v8242_v0 = vadd.f32 %v3456_v42, %v2993_v47  ;;  %3916 = vmatmul.bf16.gmra.mxu2 %v3606_v14  ;;  %v3608_v47 = vpack.c.bf16 %v3576_v34, %v3575_v29  ;;  %v3577_v29 = vld [vmem:[#allocation2 + $0xc6] sm:$0xff]  ;;  %v3578_v34 = vld [vmem:[#allocation2 + $0xce] sm:$0xff] }
 0x419   :  { %4326 = vmatmul.bf16.gmra.mxu3 %v4104_v16  ;;  %v4076_v8 = vld [vmem:[#allocation2 + $0xc8] sm:$0xff] }
 0x41a   :  { %4415 = vmatmul.bf16.gmra.mxu0 %v4105_v56 }
 0x41b   :  { %v2959_v61 = vpop.f32.mrf.mxu2 }
 0x41c   :  { %v2960_v19 = vadd.f32 %v2959_v61, %v2870_v59  ;;  %v3369_v3 = vpop.f32.mrf.mxu3  ;;  %v2872_v12 = vpop.f32.mrf.mxu1 }
 0x41d   :  { %v3459_v37 = vadd.f32 %v3458_v21, %v3369_v3  ;;  %v4106_v21 = vpack.c.bf16 %v4043_v60, %v4042_v22  ;;  %v4044_v22 = vld [vmem:[#allocation2 + $0xc7] sm:$0xff] }
 0x41e   :  { %v2994_v6 = vadd.f32 %v2960_v19, %v8056_v28  ;;  %v3607_v28 = vpack.c.bf16 %v3544_v62, %v3543_v24  ;;  %v3545_v24 = vld [vmem:[#allocation2 + $0xc5] sm:$0xff]  ;;  %v3546_v62 = vld [vmem:[#allocation2 + $0xcd] sm:$0xff] }
 0x41f   :  { %v3460_v53 = vpop.f32.mrf.mxu0 }
 0x420   :  { %v8251_v9 = vadd.f32 %v3459_v37, %v2994_v6  ;;  %v7286_v6 = vld [vmem:[%s8909_s7 + $0x50] sm:$0xff] }
 0x421   :  { %5075 = vmatpush.bf16.msrb.mxu2 %v7286_v6 }
 0x423   :  { %v2961_v39 = vpop.f32.mrf.mxu2 }
 0x424   :  { %v2962_v43 = vadd.f32 %v2961_v39, %v2872_v12  ;;  %v3371_v49 = vpop.f32.mrf.mxu3  ;;  %v3793_v11 = vpop.f32.mrf.mxu1  ;;  %v8265_v12 = vld [vmem:[%s8911_s6] ss:$0 sm:$0xff] }
 0x425   :  { %v3461_v18 = vadd.f32 %v3460_v53, %v3371_v49 }
 0x426   :  { %v2995_v42 = vadd.f32 %v2962_v43, %v8059_v31  ;;  %v8260_v31 = vld [vmem:[%s8910_s5] ss:$0 sm:$0xff] }
 0x427   :  { %v4381_v59 = vpop.f32.mrf.mxu0  ;;  %3832 = vmatmul.bf16.gmra.mxu1 %v3607_v28 }
 0x428   :  { %v8254_v14 = vadd.f32 %v3461_v18, %v2995_v42  ;;  %3921 = vmatmul.bf16.gmra.mxu2 %v3608_v47  ;;  %v4077_v18 = vld [vmem:[#allocation2 + $0xd0] sm:$0xff]  ;;  %v3609_v42 = vpack.c.bf16 %v3546_v62, %v3545_v24 }
 0x429   :  { %4331 = vmatmul.bf16.gmra.mxu3 %v4106_v21 }
 0x42a   :  { %4420 = vmatmul.bf16.gmra.mxu0 %v4107_v17  ;;  %v3610_v17 = vpack.c.bf16 %v3578_v34, %v3577_v29 }
 0x42b   :  { %v3882_v16 = vpop.f32.mrf.mxu2 }
 0x42c   :  { %v3883_v56 = vadd.f32 %v3882_v16, %v3793_v11  ;;  %v4292_v33 = vpop.f32.mrf.mxu3  ;;  %v3795_v46 = vpop.f32.mrf.mxu1  ;;  %v4108_v16 = vpack.c.bf16 %v4045_v25, %v4044_v22  ;;  %v3547_v22 = vld [vmem:[#allocation2 + $0xd5] sm:$0xff] }
 0x42d   :  { %v4382_v19 = vadd.f32 %v4381_v59, %v4292_v33  ;;  %v3579_v25 = vld [vmem:[#allocation2 + $0xd6] sm:$0xff] }
 0x42e   :  { %v3962_v61 = vadd.f32 %v3883_v56, %v8068_v40  ;;  %v7294_v40 = vld [vmem:[%s8909_s7 + $0x90] sm:$0xff]  ;;  %v4109_v56 = vpack.c.bf16 %v4077_v18, %v4076_v8  ;;  %v3580_v8 = vld [vmem:[#allocation2 + $0xde] sm:$0xff] }
 0x42f   :  { %v4383_v3 = vpop.f32.mrf.mxu0  ;;  %5485 = vmatpush.bf16.msrb.mxu3 %v7294_v40  ;;  %v4046_v18 = vld [vmem:[#allocation2 + $0xd7] sm:$0xff] }
 0x430   :  { %v4461_v37 = vadd.f32 %v4382_v19, %v3962_v61  ;;  %v7302_v61 = vld [vmem:[%s8909_s7 + $0xd0] sm:$0xff] }
 0x431   :  { %5574 = vmatpush.bf16.msrb.mxu0 %v7302_v61 }
 0x432   :  { %v4561_v53 = vmul.f32 %v8260_v31, %v4461_v37 }
 0x433   :  { %v3884_v39 = vpop.f32.mrf.mxu2 }
 0x434   :  { %v8275_v43 = vadd.f32 %v8265_v12, %v4561_v53  ;;  %v3885_v49 = vadd.f32 %v3884_v39, %v3795_v46  ;;  %v4294_v60 = vpop.f32.mrf.mxu3  ;;  %v3798_v11 = vpop.f32.mrf.mxu1  ;;  %v7278_v46 = vld [vmem:[%s8909_s7 + $0x10] sm:$0xff] }
 0x435   :  { %v4384_v47 = vadd.f32 %v4383_v3, %v4294_v60  ;;  %4986 = vmatpush.bf16.msrb.mxu1 %v7278_v46 }
 0x436   :  { %v4629_v59 = vmax.f32 %v8275_v43, 0.0  ;;  %v3963_v28 = vadd.f32 %v3885_v49, %v8077_v32  ;;  %v3548_v49 = vld [vmem:[#allocation2 + $0xdd] sm:$0xff] }
 0x437   :  { %v4386_v21 = vpop.f32.mrf.mxu0  ;;  %3837 = vmatmul.bf16.gmra.mxu1 %v3609_v42 }
 0x438   :  { %4661 = vst [vmem:[#allocation2 + $0x10] sm:$0xff] %v4629_v59  ;;  %v4462_v33 = vadd.f32 %v4384_v47, %v3963_v28  ;;  %3926 = vmatmul.bf16.gmra.mxu2 %v3610_v17  ;;  %v4078_v47 = vld [vmem:[#allocation2 + $0xd8] sm:$0xff] }
 0x439   :  { %4336 = vmatmul.bf16.gmra.mxu3 %v4108_v16  ;;  %v3611_v16 = vpack.c.bf16 %v3548_v49, %v3547_v22 }
 0x43a   :  { %4425 = vmatmul.bf16.gmra.mxu0 %v4109_v56  ;;  %v4562_v32 = vmul.f32 %v8260_v31, %v4462_v33 }
 0x43b   :  { %v3887_v19 = vpop.f32.mrf.mxu2 }
 0x43c   :  { %v8289_v3 = vadd.f32 %v8265_v12, %v4562_v32  ;;  %v3888_v37 = vadd.f32 %v3887_v19, %v3798_v11  ;;  %v4297_v6 = vpop.f32.mrf.mxu3  ;;  %v3800_v40 = vpop.f32.mrf.mxu1  ;;  %v3612_v32 = vpack.c.bf16 %v3580_v8, %v3579_v25  ;;  %v7285_v8 = vld [vmem:[%s8909_s7 + $0x48] sm:$0xff] }
 0x43d   :  { %v4387_v62 = vadd.f32 %v4386_v21, %v4297_v6  ;;  %v4079_v21 = vld [vmem:[#allocation2 + $0xe0] sm:$0xff]  ;;  %5076 = vmatpush.bf16.msrb.mxu2 %v7285_v8 }
 0x43e   :  { %v4630_v53 = vmax.f32 %v8289_v3, 0.0  ;;  %v3964_v24 = vadd.f32 %v3888_v37, %v8080_v15  ;;  %v4047_v15 = vld [vmem:[#allocation2 + $0xdf] sm:$0xff]  ;;  %v4111_v37 = vpack.c.bf16 %v4079_v21, %v4078_v47  ;;  %v3582_v21 = vld [vmem:[#allocation2 + $0xee] sm:$0xff] }
 0x43f   :  { %v4388_v39 = vpop.f32.mrf.mxu0  ;;  %v4110_v19 = vpack.c.bf16 %v4047_v15, %v4046_v18  ;;  %v7293_v18 = vld [vmem:[%s8909_s7 + $0x88] sm:$0xff] }
 0x440   :  { %4662 = vst [vmem:[#allocation2 + $0x18] sm:$0xff] %v4630_v53  ;;  %v4463_v29 = vadd.f32 %v4387_v62, %v3964_v24  ;;  %v3550_v15 = vld [vmem:[#allocation2 + $0xed] sm:$0xff]  ;;  %5486 = vmatpush.bf16.msrb.mxu3 %v7293_v18 }
 0x441   :  { %v3581_v47 = vld [vmem:[#allocation2 + $0xe6] sm:$0xff] }
 0x442   :  { %v4563_v34 = vmul.f32 %v8260_v31, %v4463_v29  ;;  %v7301_v18 = vld [vmem:[%s8909_s7 + $0xc8] sm:$0xff] }
 0x443   :  { %v3889_v60 = vpop.f32.mrf.mxu2  ;;  %5575 = vmatpush.bf16.msrb.mxu0 %v7301_v18 }
 0x444   :  { %v8297_v11 = vadd.f32 %v8265_v12, %v4563_v34  ;;  %v3890_v42 = vadd.f32 %v3889_v60, %v3800_v40  ;;  %v4299_v28 = vpop.f32.mrf.mxu3  ;;  %v3803_v17 = vpop.f32.mrf.mxu1 }
 0x445   :  { %v4389_v46 = vadd.f32 %v4388_v39, %v4299_v28  ;;  %v3549_v28 = vld [vmem:[#allocation2 + $0xe5] sm:$0xff] }
 0x446   :  { %v4631_v56 = vmax.f32 %v8297_v11, 0.0  ;;  %v3965_v33 = vadd.f32 %v3890_v42, %v8083_v58 }
 0x447   :  { %v4391_v61 = vpop.f32.mrf.mxu0  ;;  %3842 = vmatmul.bf16.gmra.mxu1 %v3611_v16 }
 0x448   :  { %4663 = vst [vmem:[#allocation2 + $0x20] sm:$0xff] %v4631_v56  ;;  %v4464_v6 = vadd.f32 %v4389_v46, %v3965_v33  ;;  %3931 = vmatmul.bf16.gmra.mxu2 %v3612_v32  ;;  %v4080_v32 = vld [vmem:[#allocation2 + $0xe8] sm:$0xff] }
 0x449   :  { %4341 = vmatmul.bf16.gmra.mxu3 %v4110_v19  ;;  %v4081_v19 = vld [vmem:[#allocation2 + $0xf0] sm:$0xff] }
 0x44a   :  { %4430 = vmatmul.bf16.gmra.mxu0 %v4111_v37  ;;  %v4564_v40 = vmul.f32 %v8260_v31, %v4464_v6  ;;  %v3613_v6 = vpack.c.bf16 %v3550_v15, %v3549_v28 }
 0x44b   :  { %v3892_v24 = vpop.f32.mrf.mxu2 }
 0x44c   :  { %v8305_v62 = vadd.f32 %v8265_v12, %v4564_v40  ;;  %v3893_v58 = vadd.f32 %v3892_v24, %v3803_v17  ;;  %v4302_v39 = vpop.f32.mrf.mxu3  ;;  %v3805_v29 = vpop.f32.mrf.mxu1  ;;  %v4048_v17 = vld [vmem:[#allocation2 + $0xe7] sm:$0xff] }
 0x44d   :  { %v4392_v49 = vadd.f32 %v4391_v61, %v4302_v39  ;;  %v4049_v61 = vld [vmem:[#allocation2 + $0xef] sm:$0xff] }
 0x44e   :  { %v4632_v34 = vmax.f32 %v8305_v62, 0.0  ;;  %v3966_v22 = vadd.f32 %v3893_v58, %v8092_v13 }
 0x44f   :  { %v4393_v60 = vpop.f32.mrf.mxu0 }
 0x450   :  { %4664 = vst [vmem:[#allocation2 + $0x28] sm:$0xff] %v4632_v34  ;;  %v4465_v25 = vadd.f32 %v4392_v49, %v3966_v22  ;;  %v3614_v22 = vpack.c.bf16 %v3582_v21, %v3581_v47  ;;  %v4112_v49 = vpack.c.bf16 %v4049_v61, %v4048_v17 }
 0x452   :  { %v4565_v42 = vmul.f32 %v8260_v31, %v4465_v25  ;;  %v4113_v25 = vpack.c.bf16 %v4081_v19, %v4080_v32  ;;  %v3551_v32 = vld [vmem:[#allocation2 + $0xf5] sm:$0xff]  ;;  %v3552_v19 = vld [vmem:[#allocation2 + $0xfd] sm:$0xff] }
 0x453   :  { %v3894_v13 = vpop.f32.mrf.mxu2  ;;  %v3615_v18 = vpack.c.bf16 %v3552_v19, %v3551_v32 }
 0x454   :  { %v8319_v16 = vadd.f32 %v8265_v12, %v4565_v42  ;;  %v3895_v33 = vadd.f32 %v3894_v13, %v3805_v29  ;;  %v4304_v46 = vpop.f32.mrf.mxu3  ;;  %v3808_v37 = vpop.f32.mrf.mxu1  ;;  %v7277_v29 = vld [vmem:[%s8909_s7 + $0x8] sm:$0xff] }
 0x455   :  { %v4394_v58 = vadd.f32 %v4393_v60, %v4304_v46  ;;  %4987 = vmatpush.bf16.msrb.mxu1 %v7277_v29 }
 0x456   :  { %v4633_v40 = vmax.f32 %v8319_v16, 0.0  ;;  %v3967_v24 = vadd.f32 %v3895_v33, %v8101_v20 }
 0x457   :  { %v4396_v39 = vpop.f32.mrf.mxu0  ;;  %3847 = vmatmul.bf16.gmra.mxu1 %v3613_v6 }
 0x458   :  { %4665 = vst [vmem:[#allocation2 + $0x30] sm:$0xff] %v4633_v40  ;;  %v4466_v8 = vadd.f32 %v4394_v58, %v3967_v24  ;;  %3936 = vmatmul.bf16.gmra.mxu2 %v3614_v22  ;;  %v3583_v24 = vld [vmem:[#allocation2 + $0xf6] sm:$0xff]  ;;  %v3584_v58 = vld [vmem:[#allocation2 + $0xfe] sm:$0xff] }
 0x459   :  { %4346 = vmatmul.bf16.gmra.mxu3 %v4112_v49 }
 0x45a   :  { %4435 = vmatmul.bf16.gmra.mxu0 %v4113_v25  ;;  %v4566_v20 = vmul.f32 %v8260_v31, %v4466_v8  ;;  %v4083_v8 = vld [vmem:[#allocation2 + $0x100] sm:$0xff] }
 0x45b   :  { %v3897_v60 = vpop.f32.mrf.mxu2 }
 0x45c   :  { %v8333_v42 = vadd.f32 %v8265_v12, %v4566_v20  ;;  %v3898_v28 = vadd.f32 %v3897_v60, %v3808_v37  ;;  %v4307_v15 = vpop.f32.mrf.mxu3  ;;  %v3810_v13 = vpop.f32.mrf.mxu1  ;;  %v4050_v37 = vld [vmem:[#allocation2 + $0xf7] sm:$0xff] }
 0x45d   :  { %v4397_v17 = vadd.f32 %v4396_v39, %v4307_v15  ;;  %v4082_v39 = vld [vmem:[#allocation2 + $0xf8] sm:$0xff] }
 0x45e   :  { %v4634_v47 = vmax.f32 %v8333_v42, 0.0  ;;  %v3968_v21 = vadd.f32 %v3898_v28, %v8104_v1  ;;  %v4051_v1 = vld [vmem:[#allocation2 + $0xff] sm:$0xff] }
 0x45f   :  { %v4398_v33 = vpop.f32.mrf.mxu0 }
 0x460   :  { %4666 = vst [vmem:[#allocation2 + $0x38] sm:$0xff] %v4634_v47  ;;  %v4467_v46 = vadd.f32 %v4397_v17, %v3968_v21  ;;  %v3616_v21 = vpack.c.bf16 %v3584_v58, %v3583_v24  ;;  %v4114_v17 = vpack.c.bf16 %v4051_v1, %v4050_v37  ;;  %v7284_v1 = vld [vmem:[%s8909_s7 + $0x40] sm:$0xff] }
 0x461   :  { %5077 = vmatpush.bf16.msrb.mxu2 %v7284_v1 }
 0x462   :  { %v4567_v61 = vmul.f32 %v8260_v31, %v4467_v46  ;;  %v4115_v46 = vpack.c.bf16 %v4083_v8, %v4082_v39  ;;  %v7292_v39 = vld [vmem:[%s8909_s7 + $0x80] sm:$0xff] }
 0x463   :  { %v3899_v6 = vpop.f32.mrf.mxu2  ;;  %5487 = vmatpush.bf16.msrb.mxu3 %v7292_v39 }
 0x464   :  { %v8341_v22 = vadd.f32 %v8265_v12, %v4567_v61  ;;  %v3900_v49 = vadd.f32 %v3899_v6, %v3810_v13  ;;  %v4309_v25 = vpop.f32.mrf.mxu3  ;;  %v3813_v29 = vpop.f32.mrf.mxu1 }
 0x465   :  { %v4399_v28 = vadd.f32 %v4398_v33, %v4309_v25 }
 0x466   :  { %v8918_v20 = vmax.f32 %v8341_v22, 0.0  ;;  %v3969_v60 = vadd.f32 %v3900_v49, %v8107_v35 }
 0x467   :  { %v4401_v15 = vpop.f32.mrf.mxu0  ;;  %3852 = vmatmul.bf16.gmra.mxu1 %v3615_v18  ;;  %v3554_v18 = vld [vmem:[#allocation2 + $0x10d] sm:$0xff] }
 0x468   :  { %4667 = vst [vmem:[#allocation2 + $0x40] sm:$0xff] %v8918_v20  ;;  %v4468_v61 = vadd.f32 %v4399_v28, %v3969_v60  ;;  %3941 = vmatmul.bf16.gmra.mxu2 %v3616_v21  ;;  %v3585_v60 = vld [vmem:[#allocation2 + $0x106] sm:$0xff]  ;;  %v3586_v28 = vld [vmem:[#allocation2 + $0x10e] sm:$0xff] }
 0x469   :  { %4351 = vmatmul.bf16.gmra.mxu3 %v4114_v17  ;;  %v3618_v39 = vpack.c.bf16 %v3586_v28, %v3585_v60 }
 0x46a   :  { %4440 = vmatmul.bf16.gmra.mxu0 %v4115_v46  ;;  %v4568_v13 = vmul.f32 %v8260_v31, %v4468_v61  ;;  %v4053_v61 = vld [vmem:[#allocation2 + $0x10f] sm:$0xff] }
 0x46b   :  { %v3902_v32 = vpop.f32.mrf.mxu2 }
 0x46c   :  { %v8349_v19 = vadd.f32 %v8265_v12, %v4568_v13  ;;  %v3903_v35 = vadd.f32 %v3902_v32, %v3813_v29  ;;  %v4312_v33 = vpop.f32.mrf.mxu3  ;;  %v3815_v6 = vpop.f32.mrf.mxu1  ;;  %v3553_v29 = vld [vmem:[#allocation2 + $0x105] sm:$0xff]  ;;  %v4085_v32 = vld [vmem:[#allocation2 + $0x110] sm:$0xff] }
 0x46d   :  { %v4402_v37 = vadd.f32 %v4401_v15, %v4312_v33  ;;  %v4052_v15 = vld [vmem:[#allocation2 + $0x107] sm:$0xff]  ;;  %v3617_v33 = vpack.c.bf16 %v3554_v18, %v3553_v29 }
 0x46e   :  { %v8917_v24 = vmax.f32 %v8349_v19, 0.0  ;;  %v3970_v58 = vadd.f32 %v3903_v35, %v8116_v4  ;;  %v4084_v13 = vld [vmem:[#allocation2 + $0x108] sm:$0xff]  ;;  %v7300_v29 = vld [vmem:[%s8909_s7 + $0xc0] sm:$0xff] }
 0x46f   :  { %v4403_v49 = vpop.f32.mrf.mxu0  ;;  %v4117_v20 = vpack.c.bf16 %v4085_v32, %v4084_v13  ;;  %5576 = vmatpush.bf16.msrb.mxu0 %v7300_v29  ;;  %v3555_v13 = vld [vmem:[#allocation2 + $0x115] sm:$0xff]  ;;  %v3556_v32 = vld [vmem:[#allocation2 + $0x11d] sm:$0xff] }
 0x470   :  { %4668 = vst [vmem:[#allocation2 + $0x48] sm:$0xff] %v8917_v24  ;;  %v4469_v25 = vadd.f32 %v4402_v37, %v3970_v58  ;;  %v4116_v24 = vpack.c.bf16 %v4053_v61, %v4052_v15  ;;  %v4087_v29 = vld [vmem:[#allocation2 + $0x120] sm:$0xff] }
 0x472   :  { %v4569_v8 = vmul.f32 %v8260_v31, %v4469_v25 }
 0x473   :  { %v3904_v4 = vpop.f32.mrf.mxu2 }
 0x474   :  { %v8363_v21 = vadd.f32 %v8265_v12, %v4569_v8  ;;  %v3905_v17 = vadd.f32 %v3904_v4, %v3815_v6  ;;  %v4314_v46 = vpop.f32.mrf.mxu3  ;;  %v3818_v35 = vpop.f32.mrf.mxu1  ;;  %v7276_v6 = vld [vmem:[%s8909_s7] sm:$0xff] }
 0x475   :  { %v4404_v25 = vadd.f32 %v4403_v49, %v4314_v46  ;;  %4988 = vmatpush.bf16.msrb.mxu1 %v7276_v6 }
 0x476   :  { %v8920_v58 = vmax.f32 %v8363_v21, 0.0  ;;  %v3971_v37 = vadd.f32 %v3905_v17, %v8125_v5 }
 0x477   :  { %v4406_v1 = vpop.f32.mrf.mxu0  ;;  %3857 = vmatmul.bf16.gmra.mxu1 %v3617_v33 }
 0x478   :  { %4669 = vst [vmem:[#allocation2 + $0x50] sm:$0xff] %v8920_v58  ;;  %v4470_v8 = vadd.f32 %v4404_v25, %v3971_v37  ;;  %3946 = vmatmul.bf16.gmra.mxu2 %v3618_v39  ;;  %v3587_v37 = vld [vmem:[#allocation2 + $0x116] sm:$0xff]  ;;  %v3588_v25 = vld [vmem:[#allocation2 + $0x11e] sm:$0xff] }
 0x479   :  { %4356 = vmatmul.bf16.gmra.mxu3 %v4116_v24 }
 0x47a   :  { %4445 = vmatmul.bf16.gmra.mxu0 %v4117_v20  ;;  %v4570_v5 = vmul.f32 %v8260_v31, %v4470_v8 }
 0x47b   :  { %v3907_v49 = vpop.f32.mrf.mxu2 }
 0x47c   :  { %v8377_v18 = vadd.f32 %v8265_v12, %v4570_v5  ;;  %v3908_v4 = vadd.f32 %v3907_v49, %v3818_v35  ;;  %v4317_v60 = vpop.f32.mrf.mxu3  ;;  %v3820_v28 = vpop.f32.mrf.mxu1  ;;  %v4054_v35 = vld [vmem:[#allocation2 + $0x117] sm:$0xff]  ;;  %v3619_v49 = vpack.c.bf16 %v3556_v32, %v3555_v13 }
 0x47d   :  { %v4407_v46 = vadd.f32 %v4406_v1, %v4317_v60  ;;  %v4086_v1 = vld [vmem:[#allocation2 + $0x118] sm:$0xff] }
 0x47e   :  { %v8919_v15 = vmax.f32 %v8377_v18, 0.0  ;;  %v3972_v17 = vadd.f32 %v3908_v4, %v8128_v48  ;;  %v4055_v48 = vld [vmem:[#allocation2 + $0x11f] sm:$0xff]  ;;  %v4119_v58 = vpack.c.bf16 %v4087_v29, %v4086_v1 }
 0x47f   :  { %v4408_v61 = vpop.f32.mrf.mxu0  ;;  %v3589_v29 = vld [vmem:[#allocation2 + $0x126] sm:$0xff] }
 0x480   :  { %4670 = vst [vmem:[#allocation2 + $0x58] sm:$0xff] %v8919_v15  ;;  %v4471_v20 = vadd.f32 %v4407_v46, %v3972_v17  ;;  %v4118_v15 = vpack.c.bf16 %v4055_v48, %v4054_v35  ;;  %v3558_v48 = vld [vmem:[#allocation2 + $0x12d] sm:$0xff] }
 0x482   :  { %v4571_v24 = vmul.f32 %v8260_v31, %v4471_v20  ;;  %v3620_v20 = vpack.c.bf16 %v3588_v25, %v3587_v37 }
 0x483   :  { %v3909_v33 = vpop.f32.mrf.mxu2 }
 0x484   :  { %v8385_v39 = vadd.f32 %v8265_v12, %v4571_v24  ;;  %v3910_v8 = vadd.f32 %v3909_v33, %v3820_v28  ;;  %v4319_v6 = vpop.f32.mrf.mxu3  ;;  %v3823_v5 = vpop.f32.mrf.mxu1 }
 0x485   :  { %v4409_v17 = vadd.f32 %v4408_v61, %v4319_v6  ;;  %v3557_v6 = vld [vmem:[#allocation2 + $0x125] sm:$0xff] }
 0x486   :  { %v4639_v4 = vmax.f32 %v8385_v39, 0.0  ;;  %v3973_v60 = vadd.f32 %v3910_v8, %v8131_v54  ;;  %v8531_v39 = vld [vmem:[%s8910_s5] ss:$0 sm:$0xff] }
 0x487   :  { %v4411_v46 = vpop.f32.mrf.mxu0  ;;  %3862 = vmatmul.bf16.gmra.mxu1 %v3619_v49  ;;  %v3590_v49 = vld [vmem:[#allocation2 + $0x12e] sm:$0xff] }
 0x488   :  { %4671 = vst [vmem:[#allocation2 + $0x60] sm:$0xff] %v4639_v4  ;;  %v4472_v24 = vadd.f32 %v4409_v17, %v3973_v60  ;;  %3951 = vmatmul.bf16.gmra.mxu2 %v3620_v20  ;;  %v4056_v20 = vld [vmem:[#allocation2 + $0x127] sm:$0xff] }
 0x489   :  { %4361 = vmatmul.bf16.gmra.mxu3 %v4118_v15 }
 0x48a   :  { %4450 = vmatmul.bf16.gmra.mxu0 %v4119_v58  ;;  %v4572_v28 = vmul.f32 %v8260_v31, %v4472_v24 }
 0x48b   :  { %v3912_v13 = vpop.f32.mrf.mxu2 }
 0x48c   :  { %v8393_v32 = vadd.f32 %v8265_v12, %v4572_v28  ;;  %v3913_v54 = vadd.f32 %v3912_v13, %v3823_v5  ;;  %v4322_v61 = vpop.f32.mrf.mxu3  ;;  %v3825_v33 = vpop.f32.mrf.mxu1  ;;  %v3621_v28 = vpack.c.bf16 %v3558_v48, %v3557_v6 }
 0x48d   :  { %v4412_v35 = vadd.f32 %v4411_v46, %v4322_v61  ;;  %v4088_v46 = vld [vmem:[#allocation2 + $0x128] sm:$0xff] }
 0x48e   :  { %v8921_v37 = vmax.f32 %v8393_v32, 0.0  ;;  %v3974_v25 = vadd.f32 %v3913_v54, %v8140_v7  ;;  %v4057_v7 = vld [vmem:[#allocation2 + $0x12f] sm:$0xff] }
 0x48f   :  { %v4413_v8 = vpop.f32.mrf.mxu0 }
 0x490   :  { %4672 = vst [vmem:[#allocation2 + $0x68] sm:$0xff] %v8921_v37  ;;  %v4473_v15 = vadd.f32 %v4412_v35, %v3974_v25  ;;  %v3622_v35 = vpack.c.bf16 %v3590_v49, %v3589_v29  ;;  %v4121_v37 = vpack.c.bf16 %v8239_v52, %v4088_v46 }
 0x492   :  { %v4573_v58 = vmul.f32 %v8260_v31, %v4473_v15  ;;  %v4120_v15 = vpack.c.bf16 %v4057_v7, %v4056_v20  ;;  %v4726_v7 = vld [vmem:[#allocation2 + $0x17] sm:$0xff] }
 0x493   :  { %v3914_v1 = vpop.f32.mrf.mxu2 }
 0x494   :  { %v8401_v5 = vadd.f32 %v8265_v12, %v4573_v58  ;;  %v3915_v60 = vadd.f32 %v3914_v1, %v3825_v33  ;;  %v4324_v17 = vpop.f32.mrf.mxu3  ;;  %v3828_v24 = vpop.f32.mrf.mxu1 }
 0x495   :  { %v4414_v61 = vadd.f32 %v4413_v8, %v4324_v17 }
 0x496   :  { %v4641_v13 = vmax.f32 %v8401_v5, 0.0  ;;  %v3975_v54 = vadd.f32 %v3915_v60, %v8149_v55 }
 0x497   :  { %v4416_v25 = vpop.f32.mrf.mxu0  ;;  %3867 = vmatmul.bf16.gmra.mxu1 %v3621_v28 }
 0x498   :  { %4673 = vst [vmem:[#allocation2 + $0x70] sm:$0xff] %v4641_v13  ;;  %v4474_v33 = vadd.f32 %v4414_v61, %v3975_v54  ;;  %3956 = vmatmul.bf16.gmra.mxu2 %v3622_v35  ;;  %v5224_v54 = vld [vmem:[#allocation2 + $0x19] sm:$0xff] }
 0x499   :  { %4366 = vmatmul.bf16.gmra.mxu3 %v4120_v15  ;;  %v5256_v61 = vld [vmem:[#allocation2 + $0x1a] sm:$0xff]  ;;  %v4725_v15 = vld [vmem:[#allocation2 + $0xf] sm:$0xff] }
 0x49a   :  { %4455 = vmatmul.bf16.gmra.mxu0 %v4121_v37  ;;  %v4574_v58 = vmul.f32 %v8260_v31, %v4474_v33 }
 0x49b   :  { %v3917_v6 = vpop.f32.mrf.mxu2 }
 0x49c   :  { %v8410_v48 = vadd.f32 %v8265_v12, %v4574_v58  ;;  %v3918_v55 = vadd.f32 %v3917_v6, %v3828_v24  ;;  %v4327_v8 = vpop.f32.mrf.mxu3  ;;  %v3830_v1 = vpop.f32.mrf.mxu1 }
 0x49d   :  { %v4417_v49 = vadd.f32 %v4416_v25, %v4327_v8  ;;  %v5223_v8 = vld [vmem:[#allocation2 + $0x11] sm:$0xff] }
 0x49e   :  { %v4642_v29 = vmax.f32 %v8410_v48, 0.0  ;;  %v3976_v52 = vadd.f32 %v3918_v55, %v8152_v36  ;;  %v4790_v36 = vpack.c.bf16 %v4630_v53, %v4629_v59  ;;  %v4789_v55 = vpack.c.bf16 %v4726_v7, %v4725_v15  ;;  %v4728_v15 = vld [vmem:[#allocation2 + $0x27] sm:$0xff] }
 0x49f   :  { %v4418_v60 = vpop.f32.mrf.mxu0 }
 0x4a0   :  { %4674 = vst [vmem:[#allocation2 + $0x78] sm:$0xff] %v4642_v29  ;;  %v4475_v17 = vadd.f32 %v4417_v49, %v3976_v52  ;;  %v5255_v52 = vld [vmem:[#allocation2 + $0x12] sm:$0xff] }
 0x4a1   :  { %v5288_v49 = vpack.c.bf16 %v5256_v61, %v5255_v52  ;;  %v4727_v52 = vld [vmem:[#allocation2 + $0x1f] sm:$0xff] }
 0x4a2   :  { %v4575_v37 = vmul.f32 %v8260_v31, %v4475_v17 }
 0x4a3   :  { %v3919_v20 = vpop.f32.mrf.mxu2 }
 0x4a4   :  { %v8418_v46 = vadd.f32 %v8265_v12, %v4575_v37  ;;  %v3920_v24 = vadd.f32 %v3919_v20, %v3830_v1  ;;  %v4329_v28 = vpop.f32.mrf.mxu3  ;;  %v3833_v35 = vpop.f32.mrf.mxu1  ;;  %v5287_v1 = vpack.c.bf16 %v5224_v54, %v5223_v8 }
 0x4a5   :  { %v4419_v58 = vadd.f32 %v4418_v60, %v4329_v28 }
 0x4a6   :  { %v4643_v25 = vmax.f32 %v8418_v46, 0.0  ;;  %v3977_v33 = vadd.f32 %v3920_v24, %v8155_v50 }
 0x4a7   :  { %v4421_v6 = vpop.f32.mrf.mxu0  ;;  %4989 = vmatmul.bf16.vlgmr.msrb.gmra.mxu1 %v4789_v55  ;;  %v5258_v55 = vld [vmem:[#allocation2 + $0x2a] sm:$0xff] }
 0x4a8   :  { %4675 = vst [vmem:[#allocation2 + $0x80] sm:$0xff] %v4643_v25  ;;  %v4476_v17 = vadd.f32 %v4419_v58, %v3977_v33  ;;  %5078 = vmatmul.bf16.vlgmr.msrb.gmra.mxu2 %v4790_v36  ;;  %v5226_v58 = vld [vmem:[#allocation2 + $0x29] sm:$0xff] }
 0x4a9   :  { %5488 = vmatmul.bf16.vlgmr.msrb.gmra.mxu3 %v5287_v1 }
 0x4aa   :  { %5577 = vmatmul.bf16.vlgmr.msrb.gmra.mxu0 %v5288_v49  ;;  %v4576_v43 = vmul.f32 %v8260_v31, %v4476_v17 }
 0x4ab   :  { %v3922_v59 = vpop.f32.mrf.mxu2 }
 0x4ac   :  { %v8430_v50 = vadd.f32 %v8265_v12, %v4576_v43  ;;  %v3923_v3 = vadd.f32 %v3922_v59, %v3833_v35  ;;  %v4332_v53 = vpop.f32.mrf.mxu3  ;;  %v3835_v60 = vpop.f32.mrf.mxu1  ;;  %v4791_v43 = vpack.c.bf16 %v4728_v15, %v4727_v52  ;;  %v5225_v59 = vld [vmem:[#allocation2 + $0x21] sm:$0xff] }
 0x4ad   :  { %v4422_v7 = vadd.f32 %v4421_v6, %v4332_v53  ;;  %v5289_v53 = vpack.c.bf16 %v5226_v58, %v5225_v59  ;;  %v4730_v58 = vld [vmem:[#allocation2 + $0x37] sm:$0xff] }
 0x4ae   :  { %v4644_v37 = vmax.f32 %v8430_v50, 0.0  ;;  %v3978_v20 = vadd.f32 %v3923_v3, %v8164_v63  ;;  %v4792_v63 = vpack.c.bf16 %v4632_v34, %v4631_v56  ;;  %v5257_v3 = vld [vmem:[#allocation2 + $0x22] sm:$0xff] }
 0x4af   :  { %v4423_v24 = vpop.f32.mrf.mxu0 }
 0x4b0   :  { %4676 = vst [vmem:[#allocation2 + $0x88] sm:$0xff] %v4644_v37  ;;  %v4477_v28 = vadd.f32 %v4422_v7, %v3978_v20 }
 0x4b2   :  { %v4577_v54 = vmul.f32 %v8260_v31, %v4477_v28 }
 0x4b3   :  { %v3924_v61 = vpop.f32.mrf.mxu2 }
 0x4b4   :  { %v8438_v36 = vadd.f32 %v8265_v12, %v4577_v54  ;;  %v3925_v35 = vadd.f32 %v3924_v61, %v3835_v60  ;;  %v4334_v33 = vpop.f32.mrf.mxu3  ;;  %v3838_v8 = vpop.f32.mrf.mxu1  ;;  %v5290_v60 = vpack.c.bf16 %v5258_v55, %v5257_v3 }
 0x4b5   :  { %v4424_v49 = vadd.f32 %v4423_v24, %v4334_v33 }
 0x4b6   :  { %v4645_v6 = vmax.f32 %v8438_v36, 0.0  ;;  %v3979_v1 = vadd.f32 %v3925_v35, %v8173_v41 }
 0x4b7   :  { %v4426_v17 = vpop.f32.mrf.mxu0  ;;  %4994 = vmatmul.bf16.gmra.mxu1 %v4791_v43  ;;  %v4729_v43 = vld [vmem:[#allocation2 + $0x2f] sm:$0xff] }
 0x4b8   :  { %4677 = vst [vmem:[#allocation2 + $0xb0] sm:$0xff] %v4645_v6  ;;  %v4478_v20 = vadd.f32 %v4424_v49, %v3979_v1  ;;  %5083 = vmatmul.bf16.gmra.mxu2 %v4792_v63  ;;  %v5228_v63 = vld [vmem:[#allocation2 + $0x39] sm:$0xff] }
 0x4b9   :  { %5493 = vmatmul.bf16.gmra.mxu3 %v5289_v53  ;;  %v5260_v1 = vld [vmem:[#allocation2 + $0x3a] sm:$0xff] }
 0x4ba   :  { %5582 = vmatmul.bf16.gmra.mxu0 %v5290_v60  ;;  %v4578_v11 = vmul.f32 %v8260_v31, %v4478_v20  ;;  %v4793_v60 = vpack.c.bf16 %v4730_v58, %v4729_v43  ;;  %v5227_v20 = vld [vmem:[#allocation2 + $0x31] sm:$0xff] }
 0x4bb   :  { %v3927_v56 = vpop.f32.mrf.mxu2  ;;  %v5262_v43 = vld [vmem:[#allocation2 + $0x4a] sm:$0xff] }
 0x4bc   :  { %v8450_v41 = vadd.f32 %v8265_v12, %v4578_v11  ;;  %v3928_v62 = vadd.f32 %v3927_v56, %v3838_v8  ;;  %v4337_v34 = vpop.f32.mrf.mxu3  ;;  %v3840_v7 = vpop.f32.mrf.mxu1  ;;  %v5259_v11 = vld [vmem:[#allocation2 + $0x32] sm:$0xff]  ;;  %v5291_v56 = vpack.c.bf16 %v5228_v63, %v5227_v20 }
 0x4bd   :  { %v4427_v54 = vadd.f32 %v4426_v17, %v4337_v34 }
 0x4be   :  { %v4646_v24 = vmax.f32 %v8450_v41, 0.0  ;;  %v3980_v28 = vadd.f32 %v3928_v62, %v8176_v51  ;;  %v4794_v51 = vpack.c.bf16 %v4634_v47, %v4633_v40  ;;  %v5292_v62 = vpack.c.bf16 %v5260_v1, %v5259_v11 }
 0x4bf   :  { %v4428_v61 = vpop.f32.mrf.mxu0 }
 0x4c0   :  { %4678 = vst [vmem:[#allocation2 + $0xb8] sm:$0xff] %v4646_v24  ;;  %v4479_v15 = vadd.f32 %v4427_v54, %v3980_v28 }
 0x4c2   :  { %v4579_v35 = vmul.f32 %v8260_v31, %v4479_v15 }
 0x4c3   :  { %v3929_v33 = vpop.f32.mrf.mxu2 }
 0x4c4   :  { %v8458_v55 = vadd.f32 %v8265_v12, %v4579_v35  ;;  %v3930_v8 = vadd.f32 %v3929_v33, %v3840_v7  ;;  %v4339_v52 = vpop.f32.mrf.mxu3  ;;  %v3843_v49 = vpop.f32.mrf.mxu1 }
 0x4c5   :  { %v4429_v3 = vadd.f32 %v4428_v61, %v4339_v52 }
 0x4c6   :  { %v4647_v17 = vmax.f32 %v8458_v55, 0.0  ;;  %v3981_v59 = vadd.f32 %v3930_v8, %v8179_v45  ;;  %v4732_v8 = vld [vmem:[#allocation2 + $0x47] sm:$0xff] }
 0x4c7   :  { %v4431_v53 = vpop.f32.mrf.mxu0  ;;  %4999 = vmatmul.bf16.gmra.mxu1 %v4793_v60 }
 0x4c8   :  { %4679 = vst [vmem:[#allocation2 + $0xc0] sm:$0xff] %v4647_v17  ;;  %v4480_v34 = vadd.f32 %v4429_v3, %v3981_v59  ;;  %5088 = vmatmul.bf16.gmra.mxu2 %v4794_v51  ;;  %v4731_v59 = vld [vmem:[#allocation2 + $0x3f] sm:$0xff]  ;;  %v8923_v3 = vmax.f32 %v8349_v19, 0.0 }
 0x4c9   :  { %5498 = vmatmul.bf16.gmra.mxu3 %v5291_v56 }
 0x4ca   :  { %5587 = vmatmul.bf16.gmra.mxu0 %v5292_v62  ;;  %v4580_v16 = vmul.f32 %v8260_v31, %v4480_v34  ;;  %v4795_v62 = vpack.c.bf16 %v4732_v8, %v4731_v59  ;;  %v5229_v34 = vld [vmem:[#allocation2 + $0x41] sm:$0xff] }
 0x4cb   :  { %v3932_v40 = vpop.f32.mrf.mxu2 }
 0x4cc   :  { %v8470_v45 = vadd.f32 %v8265_v12, %v4580_v16  ;;  %v3933_v42 = vadd.f32 %v3932_v40, %v3843_v49  ;;  %v4342_v47 = vpop.f32.mrf.mxu3  ;;  %v3845_v7 = vpop.f32.mrf.mxu1  ;;  %v5230_v49 = vld [vmem:[#allocation2 + $0x49] sm:$0xff] }
 0x4cd   :  { %v4432_v61 = vadd.f32 %v4431_v53, %v4342_v47  ;;  %v5261_v16 = vld [vmem:[#allocation2 + $0x42] sm:$0xff]  ;;  %v5293_v40 = vpack.c.bf16 %v5230_v49, %v5229_v34  ;;  %v4734_v49 = vld [vmem:[#allocation2 + $0x57] sm:$0xff] }
 0x4ce   :  { %v4648_v28 = vmax.f32 %v8470_v45, 0.0  ;;  %v3982_v54 = vadd.f32 %v3933_v42, %v8188_v27  ;;  %v8922_v27 = vmax.f32 %v8341_v22, 0.0  ;;  %v5294_v42 = vpack.c.bf16 %v5262_v43, %v5261_v16 }
 0x4cf   :  { %v4433_v15 = vpop.f32.mrf.mxu0 }
 0x4d0   :  { %4680 = vst [vmem:[#allocation2 + $0xc8] sm:$0xff] %v4648_v28  ;;  %v4481_v35 = vadd.f32 %v4432_v61, %v3982_v54  ;;  %v4796_v53 = vpack.c.bf16 %v8923_v3, %v8922_v27  ;;  %v5232_v27 = vld [vmem:[#allocation2 + $0x59] sm:$0xff] }
 0x4d1   :  { %v5264_v3 = vld [vmem:[#allocation2 + $0x5a] sm:$0xff] }
 0x4d2   :  { %v4581_v33 = vmul.f32 %v8260_v31, %v4481_v35 }
 0x4d3   :  { %v3934_v58 = vpop.f32.mrf.mxu2 }
 0x4d4   :  { %v8478_v52 = vadd.f32 %v8265_v12, %v4581_v33  ;;  %v3935_v63 = vadd.f32 %v3934_v58, %v3845_v7  ;;  %v4344_v1 = vpop.f32.mrf.mxu3  ;;  %v3848_v51 = vpop.f32.mrf.mxu1 }
 0x4d5   :  { %v4434_v11 = vadd.f32 %v4433_v15, %v4344_v1 }
 0x4d6   :  { %v4649_v60 = vmax.f32 %v8478_v52, 0.0  ;;  %v3983_v20 = vadd.f32 %v3935_v63, %v8197_v26 }
 0x4d7   :  { %v4436_v56 = vpop.f32.mrf.mxu0  ;;  %5004 = vmatmul.bf16.gmra.mxu1 %v4795_v62 }
 0x4d8   :  { %4681 = vst [vmem:[#allocation2 + $0xd0] sm:$0xff] %v4649_v60  ;;  %v4482_v47 = vadd.f32 %v4434_v11, %v3983_v20  ;;  %5093 = vmatmul.bf16.gmra.mxu2 %v4796_v53  ;;  %v4733_v20 = vld [vmem:[#allocation2 + $0x4f] sm:$0xff]  ;;  %v8925_v11 = vmax.f32 %v8377_v18, 0.0 }
 0x4d9   :  { %5503 = vmatmul.bf16.gmra.mxu3 %v5293_v40 }
 0x4da   :  { %5592 = vmatmul.bf16.gmra.mxu0 %v5294_v42  ;;  %v4582_v22 = vmul.f32 %v8260_v31, %v4482_v47  ;;  %v4797_v42 = vpack.c.bf16 %v4734_v49, %v4733_v20  ;;  %v5231_v47 = vld [vmem:[#allocation2 + $0x51] sm:$0xff] }
 0x4db   :  { %v3937_v19 = vpop.f32.mrf.mxu2 }
 0x4dc   :  { %v8490_v26 = vadd.f32 %v8265_v12, %v4582_v22  ;;  %v3938_v7 = vadd.f32 %v3937_v19, %v3848_v51  ;;  %v4347_v54 = vpop.f32.mrf.mxu3  ;;  %v3850_v61 = vpop.f32.mrf.mxu1  ;;  %v5263_v22 = vld [vmem:[#allocation2 + $0x52] sm:$0xff]  ;;  %v5295_v19 = vpack.c.bf16 %v5232_v27, %v5231_v47  ;;  %v4736_v27 = vld [vmem:[#allocation2 + $0x67] sm:$0xff] }
 0x4dd   :  { %v4437_v33 = vadd.f32 %v4436_v56, %v4347_v54 }
 0x4de   :  { %v4650_v15 = vmax.f32 %v8490_v26, 0.0  ;;  %v3984_v35 = vadd.f32 %v3938_v7, %v8200_v38  ;;  %v8924_v38 = vmax.f32 %v8363_v21, 0.0  ;;  %v5296_v7 = vpack.c.bf16 %v5264_v3, %v5263_v22 }
 0x4df   :  { %v4438_v58 = vpop.f32.mrf.mxu0 }
 0x4e0   :  { %4682 = vst [vmem:[#allocation2 + $0xd8] sm:$0xff] %v4650_v15  ;;  %v4483_v8 = vadd.f32 %v4437_v33, %v3984_v35  ;;  %v4798_v56 = vpack.c.bf16 %v8925_v11, %v8924_v38  ;;  %v5234_v38 = vld [vmem:[#allocation2 + $0x69] sm:$0xff] }
 0x4e1   :  { %v5266_v11 = vld [vmem:[#allocation2 + $0x6a] sm:$0xff] }
 0x4e2   :  { %v4583_v63 = vmul.f32 %v8260_v31, %v4483_v8 }
 0x4e3   :  { %v3939_v1 = vpop.f32.mrf.mxu2 }
 0x4e4   :  { %v8498_v43 = vadd.f32 %v8265_v12, %v4583_v63  ;;  %v3940_v51 = vadd.f32 %v3939_v1, %v3850_v61  ;;  %v4349_v59 = vpop.f32.mrf.mxu3  ;;  %v3853_v53 = vpop.f32.mrf.mxu1 }
 0x4e5   :  { %v4439_v16 = vadd.f32 %v4438_v58, %v4349_v59 }
 0x4e6   :  { %v4651_v62 = vmax.f32 %v8498_v43, 0.0  ;;  %v3985_v34 = vadd.f32 %v3940_v51, %v8203_v44 }
 0x4e7   :  { %v4441_v40 = vpop.f32.mrf.mxu0  ;;  %5009 = vmatmul.bf16.gmra.mxu1 %v4797_v42 }
 0x4e8   :  { %4683 = vst [vmem:[#allocation2 + $0xe0] sm:$0xff] %v4651_v62  ;;  %v4484_v54 = vadd.f32 %v4439_v16, %v3985_v34  ;;  %5098 = vmatmul.bf16.gmra.mxu2 %v4798_v56  ;;  %v4735_v34 = vld [vmem:[#allocation2 + $0x5f] sm:$0xff] }
 0x4e9   :  { %5508 = vmatmul.bf16.gmra.mxu3 %v5295_v19  ;;  %v4799_v22 = vpack.c.bf16 %v4736_v27, %v4735_v34  ;;  %v5265_v19 = vld [vmem:[#allocation2 + $0x62] sm:$0xff]  ;;  %v5268_v34 = vld [vmem:[#allocation2 + $0x7a] sm:$0xff] }
 0x4ea   :  { %5597 = vmatmul.bf16.gmra.mxu0 %v5296_v7  ;;  %v4584_v21 = vmul.f32 %v8260_v31, %v4484_v54  ;;  %v5298_v54 = vpack.c.bf16 %v5266_v11, %v5265_v19  ;;  %v5235_v19 = vld [vmem:[#allocation2 + $0x71] sm:$0xff] }
 0x4eb   :  { %v3942_v18 = vpop.f32.mrf.mxu2 }
 0x4ec   :  { %v8510_v44 = vadd.f32 %v8265_v12, %v4584_v21  ;;  %v3943_v61 = vadd.f32 %v3942_v18, %v3853_v53  ;;  %v4352_v35 = vpop.f32.mrf.mxu3  ;;  %v3855_v33 = vpop.f32.mrf.mxu1 }
 0x4ed   :  { %v4442_v63 = vadd.f32 %v4441_v40, %v4352_v35 }
 0x4ee   :  { %v4652_v58 = vmax.f32 %v8510_v44, 0.0  ;;  %v3986_v8 = vadd.f32 %v3943_v61, %v8212_v23  ;;  %v8926_v23 = vmax.f32 %v8393_v32, 0.0  ;;  %v8537_v32 = vld [vmem:[%s8911_s6] ss:$0 sm:$0xff] }
 0x4ef   :  { %v4443_v1 = vpop.f32.mrf.mxu0 }
 0x4f0   :  { %4684 = vst [vmem:[#allocation2 + $0xe8] sm:$0xff] %v4652_v58  ;;  %v4485_v49 = vadd.f32 %v4442_v63, %v3986_v8  ;;  %v4800_v16 = vpack.c.bf16 %v8926_v23, %v4639_v4 }
 0x4f2   :  { %v4585_v51 = vmul.f32 %v8260_v31, %v4485_v49 }
 0x4f3   :  { %v3944_v59 = vpop.f32.mrf.mxu2 }
 0x4f4   :  { %v8518_v3 = vadd.f32 %v8265_v12, %v4585_v51  ;;  %v3945_v53 = vadd.f32 %v3944_v59, %v3855_v33  ;;  %v4354_v20 = vpop.f32.mrf.mxu3  ;;  %v3858_v56 = vpop.f32.mrf.mxu1  ;;  %v5233_v12 = vld [vmem:[#allocation2 + $0x61] sm:$0xff] }
 0x4f5   :  { %v4444_v42 = vadd.f32 %v4443_v1, %v4354_v20  ;;  %v5297_v7 = vpack.c.bf16 %v5234_v38, %v5233_v12 }
 0x4f6   :  { %v4653_v40 = vmax.f32 %v8518_v3, 0.0  ;;  %v3987_v31 = vadd.f32 %v3945_v53, %v8221_v10  ;;  %v4738_v53 = vld [vmem:[#allocation2 + $0x77] sm:$0xff] }
 0x4f7   :  { %v4446_v47 = vpop.f32.mrf.mxu0  ;;  %5014 = vmatmul.bf16.gmra.mxu1 %v4799_v22 }
 0x4f8   :  { %4685 = vst [vmem:[#allocation2 + $0xf0] sm:$0xff] %v4653_v40  ;;  %v4486_v21 = vadd.f32 %v4444_v42, %v3987_v31  ;;  %5103 = vmatmul.bf16.gmra.mxu2 %v4800_v16  ;;  %v4737_v16 = vld [vmem:[#allocation2 + $0x6f] sm:$0xff] }
 0x4f9   :  { %5513 = vmatmul.bf16.gmra.mxu3 %v5297_v7  ;;  %v4801_v12 = vpack.c.bf16 %v4738_v53, %v4737_v16  ;;  %v5267_v7 = vld [vmem:[#allocation2 + $0x72] sm:$0xff]  ;;  %v4739_v16 = vld [vmem:[#allocation2 + $0x7f] sm:$0xff] }
 0x4fa   :  { %5602 = vmatmul.bf16.gmra.mxu0 %v5298_v54  ;;  %v4586_v10 = vmul.f32 %v8531_v39, %v4486_v21  ;;  %v5300_v21 = vpack.c.bf16 %v5268_v34, %v5267_v7  ;;  %v5269_v34 = vld [vmem:[#allocation2 + $0x82] sm:$0xff] }
 0x4fb   :  { %v3947_v4 = vpop.f32.mrf.mxu2 }
 0x4fc   :  { %v8540_v18 = vadd.f32 %v8537_v32, %v4586_v10  ;;  %v3948_v61 = vadd.f32 %v3947_v4, %v3858_v56  ;;  %v4357_v35 = vpop.f32.mrf.mxu3  ;;  %v3860_v33 = vpop.f32.mrf.mxu1  ;;  %v5236_v56 = vld [vmem:[#allocation2 + $0x79] sm:$0xff] }
 0x4fd   :  { %v4447_v1 = vadd.f32 %v4446_v47, %v4357_v35  ;;  %v5299_v54 = vpack.c.bf16 %v5236_v56, %v5235_v19  ;;  %v5238_v56 = vld [vmem:[#allocation2 + $0x89] sm:$0xff] }
 0x4fe   :  { %v4654_v8 = vmax.f32 %v8540_v18, 0.0  ;;  %v3988_v63 = vadd.f32 %v3948_v61, %v8224_v57  ;;  %v4802_v57 = vpack.c.bf16 %v4642_v29, %v4641_v13 }
 0x4ff   :  { %v4448_v49 = vpop.f32.mrf.mxu0 }
 0x500   :  { %4686 = vst [vmem:[#allocation2 + $0xf8] sm:$0xff] %v4654_v8  ;;  %v4487_v51 = vadd.f32 %v4447_v1, %v3988_v63 }
 0x502   :  { %v4587_v59 = vmul.f32 %v8531_v39, %v4487_v51 }
 0x503   :  { %v3949_v27 = vpop.f32.mrf.mxu2 }
 0x504   :  { %v8548_v20 = vadd.f32 %v8537_v32, %v4587_v59  ;;  %v3950_v38 = vadd.f32 %v3949_v27, %v3860_v33  ;;  %v4359_v11 = vpop.f32.mrf.mxu3  ;;  %v3863_v23 = vpop.f32.mrf.mxu1  ;;  %v4740_v59 = vld [vmem:[#allocation2 + $0x87] sm:$0xff] }
 0x505   :  { %v4449_v47 = vadd.f32 %v4448_v49, %v4359_v11  ;;  %v5237_v27 = vld [vmem:[#allocation2 + $0x81] sm:$0xff]  ;;  %v4803_v19 = vpack.c.bf16 %v4740_v59, %v4739_v16  ;;  %v5240_v59 = vld [vmem:[#allocation2 + $0xb9] sm:$0xff] }
 0x506   :  { %v4655_v31 = vmax.f32 %v8548_v20, 0.0  ;;  %v3989_v42 = vadd.f32 %v3950_v38, %v8227_v30  ;;  %v5301_v7 = vpack.c.bf16 %v5238_v56, %v5237_v27  ;;  %v5272_v27 = vld [vmem:[#allocation2 + $0xba] sm:$0xff] }
 0x507   :  { %v4451_v22 = vpop.f32.mrf.mxu0  ;;  %5019 = vmatmul.bf16.gmra.mxu1 %v4801_v12 }
 0x508   :  { %4687 = vst [vmem:[#allocation2 + $0x100] sm:$0xff] %v4655_v31  ;;  %v4488_v10 = vadd.f32 %v4449_v47, %v3989_v42  ;;  %5108 = vmatmul.bf16.gmra.mxu2 %v4802_v57  ;;  %v4804_v57 = vpack.c.bf16 %v4644_v37, %v4643_v25 }
 0x509   :  { %5518 = vmatmul.bf16.gmra.mxu3 %v5299_v54 }
 0x50a   :  { %5607 = vmatmul.bf16.gmra.mxu0 %v5300_v21  ;;  %v4588_v5 = vmul.f32 %v8531_v39, %v4488_v10 }
 0x50b   :  { %v3952_v13 = vpop.f32.mrf.mxu2 }
 0x50c   :  { %v8560_v30 = vadd.f32 %v8537_v32, %v4588_v5  ;;  %v3953_v48 = vadd.f32 %v3952_v13, %v3863_v23  ;;  %v4362_v29 = vpop.f32.mrf.mxu3  ;;  %v3865_v4 = vpop.f32.mrf.mxu1  ;;  %v5270_v23 = vld [vmem:[#allocation2 + $0x8a] sm:$0xff] }
 0x50d   :  { %v4452_v33 = vadd.f32 %v4451_v22, %v4362_v29  ;;  %v5302_v54 = vpack.c.bf16 %v5270_v23, %v5269_v34 }
 0x50e   :  { %v4656_v61 = vmax.f32 %v8560_v30, 0.0  ;;  %v3990_v35 = vadd.f32 %v3953_v48, %v8236_v2 }
 0x50f   :  { %v4453_v63 = vpop.f32.mrf.mxu0 }
 0x510   :  { %4688 = vst [vmem:[#allocation2 + $0x108] sm:$0xff] %v4656_v61  ;;  %v4489_v1 = vadd.f32 %v4452_v33, %v3990_v35 }
 0x512   :  { %v4589_v49 = vmul.f32 %v8531_v39, %v4489_v1 }
 0x513   :  { %v3954_v51 = vpop.f32.mrf.mxu2 }
 0x514   :  { %v8568_v53 = vadd.f32 %v8537_v32, %v4589_v49  ;;  %v3955_v38 = vadd.f32 %v3954_v51, %v3865_v4  ;;  %v4364_v11 = vpop.f32.mrf.mxu3  ;;  %v3868_v2 = vpop.f32.mrf.mxu1 }
 0x515   :  { %v4454_v22 = vadd.f32 %v4453_v63, %v4364_v11  ;;  %v4742_v63 = vld [vmem:[#allocation2 + $0xb7] sm:$0xff]  ;;  %v4741_v11 = vld [vmem:[#allocation2 + $0xaf] sm:$0xff] }
 0x516   :  { %v4657_v42 = vmax.f32 %v8568_v53, 0.0  ;;  %v3991_v47 = vadd.f32 %v3955_v38, %v8242_v0  ;;  %v4805_v16 = vpack.c.bf16 %v4742_v63, %v4741_v11  ;;  %v5241_v11 = vld [vmem:[#allocation2 + $0xc1] sm:$0xff] }
 0x517   :  { %v4456_v12 = vpop.f32.mrf.mxu0  ;;  %5024 = vmatmul.bf16.gmra.mxu1 %v4803_v19 }
 0x518   :  { %4689 = vst [vmem:[#allocation2 + $0x110] sm:$0xff] %v4657_v42  ;;  %v4490_v21 = vadd.f32 %v4454_v22, %v3991_v47  ;;  %5113 = vmatmul.bf16.gmra.mxu2 %v4804_v57  ;;  %v5239_v57 = vld [vmem:[#allocation2 + $0xb1] sm:$0xff] }
 0x519   :  { %5523 = vmatmul.bf16.gmra.mxu3 %v5301_v7  ;;  %v5271_v47 = vld [vmem:[#allocation2 + $0xb2] sm:$0xff]  ;;  %v5303_v22 = vpack.c.bf16 %v5240_v59, %v5239_v57 }
 0x51a   :  { %5612 = vmatmul.bf16.gmra.mxu0 %v5302_v54  ;;  %v4590_v46 = vmul.f32 %v8531_v39, %v4490_v21  ;;  %v8605_v21 = vld [vmem:[%s8912_s8] ss:$0 sm:$0xff] }
 0x51b   :  { %v3957_v25 = vpop.f32.mrf.mxu2 }
 0x51c   :  { %v8580_v50 = vadd.f32 %v8537_v32, %v4590_v46  ;;  %v3958_v0 = vadd.f32 %v3957_v25, %v3868_v2  ;;  %v4367_v37 = vpop.f32.mrf.mxu3  ;;  %v3870_v10 = vpop.f32.mrf.mxu1 }
 0x51d   :  { %v4457_v48 = vadd.f32 %v4456_v12, %v4367_v37  ;;  %v5304_v12 = vpack.c.bf16 %v5272_v27, %v5271_v47 }
 0x51e   :  { %v4658_v5 = vmax.f32 %v8580_v50, 0.0  ;;  %v3992_v13 = vadd.f32 %v3958_v0, %v8251_v9  ;;  %v4806_v9 = vpack.c.bf16 %v4646_v24, %v4645_v6 }
 0x51f   :  { %v4458_v29 = vpop.f32.mrf.mxu0 }
 0x520   :  { %4690 = vst [vmem:[#allocation2 + $0x118] sm:$0xff] %v4658_v5  ;;  %v4491_v4 = vadd.f32 %v4457_v48, %v3992_v13  ;;  %v4744_v13 = vld [vmem:[#allocation2 + $0xc7] sm:$0xff] }
 0x522   :  { %v4591_v35 = vmul.f32 %v8531_v39, %v4491_v4  ;;  %v5242_v4 = vld [vmem:[#allocation2 + $0xc9] sm:$0xff] }
 0x523   :  { %v3959_v33 = vpop.f32.mrf.mxu2 }
 0x524   :  { %v8588_v1 = vadd.f32 %v8537_v32, %v4591_v35  ;;  %v3960_v49 = vadd.f32 %v3959_v33, %v3870_v10  ;;  %v4369_v51 = vpop.f32.mrf.mxu3  ;;  %v4990_v38 = vpop.f32.mrf.mxu1  ;;  %v5274_v35 = vld [vmem:[#allocation2 + $0xca] sm:$0xff] }
 0x525   :  { %v4459_v23 = vadd.f32 %v4458_v29, %v4369_v51  ;;  %v4743_v51 = vld [vmem:[#allocation2 + $0xbf] sm:$0xff] }
 0x526   :  { %v4659_v56 = vmax.f32 %v8588_v1, 0.0  ;;  %v3993_v34 = vadd.f32 %v3960_v49, %v8254_v14  ;;  %v4807_v27 = vpack.c.bf16 %v4744_v13, %v4743_v51  ;;  %v4745_v13 = vld [vmem:[#allocation2 + $0xcf] sm:$0xff] }
 0x527   :  { %v5578_v2 = vpop.f32.mrf.mxu0  ;;  %5029 = vmatmul.bf16.gmra.mxu1 %v4805_v16 }
 0x528   :  { %4691 = vst [vmem:[#allocation2 + $0x120] sm:$0xff] %v4659_v56  ;;  %v4492_v19 = vadd.f32 %v4459_v23, %v3993_v34  ;;  %5118 = vmatmul.bf16.gmra.mxu2 %v4806_v9  ;;  %v5273_v9 = vld [vmem:[#allocation2 + $0xc2] sm:$0xff]  ;;  %v5305_v23 = vpack.c.bf16 %v5242_v4, %v5241_v11  ;;  %v4810_v4 = vpack.c.bf16 %v4650_v15, %v4649_v60 }
 0x529   :  { %5528 = vmatmul.bf16.gmra.mxu3 %v5303_v22 }
 0x52a   :  { %5617 = vmatmul.bf16.gmra.mxu0 %v5304_v12  ;;  %v4592_v36 = vmul.f32 %v8531_v39, %v4492_v19  ;;  %v8611_v39 = vld [vmem:[%s8913_s9] ss:$0 sm:$0xff] }
 0x52b   :  { %v5079_v6 = vpop.f32.mrf.mxu2 }
 0x52c   :  { %v8600_v14 = vadd.f32 %v8537_v32, %v4592_v36  ;;  %v5080_v41 = vadd.f32 %v5079_v6, %v4990_v38  ;;  %v5489_v24 = vpop.f32.mrf.mxu3  ;;  %v4992_v54 = vpop.f32.mrf.mxu1  ;;  %v4808_v38 = vpack.c.bf16 %v4648_v28, %v4647_v17 }
 0x52d   :  { %v5579_v7 = vadd.f32 %v5578_v2, %v5489_v24  ;;  %v5306_v2 = vpack.c.bf16 %v5274_v35, %v5273_v9  ;;  %v4746_v24 = vld [vmem:[#allocation2 + $0xd7] sm:$0xff] }
 0x52e   :  { %v4660_v46 = vmax.f32 %v8600_v14, 0.0  ;;  %v5243_v35 = vld [vmem:[#allocation2 + $0xd1] sm:$0xff] }
 0x52f   :  { %v5580_v25 = vpop.f32.mrf.mxu0  ;;  %v5658_v0 = vadd.f32 %v5579_v7, %v5080_v41 }
 0x530   :  { %4692 = vst [vmem:[#allocation2 + $0x128] sm:$0xff] %v4660_v46 }
 0x531   :  { %v5758_v32 = vmul.f32 %v8605_v21, %v5658_v0  ;;  %v5276_v0 = vld [vmem:[#allocation2 + $0xda] sm:$0xff] }
 0x533   :  { %v5081_v37 = vpop.f32.mrf.mxu2  ;;  %v5794_v10 = vadd.f32 %v8611_v39, %v5758_v32 }
 0x534   :  { %v5082_v48 = vadd.f32 %v5081_v37, %v4992_v54  ;;  %v5491_v29 = vpop.f32.mrf.mxu3  ;;  %v4995_v63 = vpop.f32.mrf.mxu1 }
 0x535   :  { %v5581_v33 = vadd.f32 %v5580_v25, %v5491_v29  ;;  %v5826_v49 = vmax.f32 %v5794_v10, 0.0  ;;  %v5244_v25 = vld [vmem:[#allocation2 + $0xd9] sm:$0xff]  ;;  %v4809_v29 = vpack.c.bf16 %v4746_v24, %v4745_v13  ;;  %v5245_v24 = vld [vmem:[#allocation2 + $0xe1] sm:$0xff] }
 0x537   :  { %v5583_v59 = vpop.f32.mrf.mxu0  ;;  %v5659_v34 = vadd.f32 %v5581_v33, %v5082_v48  ;;  %5858 = vadd.xlane.f32.xlu0 %v5826_v49  ;;  %5034 = vmatmul.bf16.gmra.mxu1 %v4807_v27  ;;  %v5275_v33 = vld [vmem:[#allocation2 + $0xd2] sm:$0xff]  ;;  %v5307_v49 = vpack.c.bf16 %v5244_v25, %v5243_v35 }
 0x538   :  { %5123 = vmatmul.bf16.gmra.mxu2 %v4808_v38  ;;  %v5308_v51 = vpack.c.bf16 %v5276_v0, %v5275_v33 }
 0x539   :  { %5533 = vmatmul.bf16.gmra.mxu3 %v5305_v23  ;;  %v5759_v16 = vmul.f32 %v8605_v21, %v5659_v34 }
 0x53a   :  { %5622 = vmatmul.bf16.gmra.mxu0 %v5306_v2 }
 0x53b   :  { %v5084_v57 = vpop.f32.mrf.mxu2  ;;  %v5795_v47 = vadd.f32 %v8611_v39, %v5759_v16 }
 0x53c   :  { %v5085_v22 = vadd.f32 %v5084_v57, %v4995_v63  ;;  %v5494_v55 = vpop.f32.mrf.mxu3  ;;  %v4997_v45 = vpop.f32.mrf.mxu1  ;;  %v4748_v57 = vld [vmem:[#allocation2 + $0xe7] sm:$0xff] }
 0x53d   :  { %v5584_v12 = vadd.f32 %v5583_v59, %v5494_v55  ;;  %v5827_v17 = vmax.f32 %v5795_v47, 0.0  ;;  %v5246_v55 = vld [vmem:[#allocation2 + $0xe9] sm:$0xff] }
 0x53e   :  { %v5309_v25 = vpack.c.bf16 %v5246_v55, %v5245_v24 }
 0x53f   :  { %v5585_v28 = vpop.f32.mrf.mxu0  ;;  %v5660_v19 = vadd.f32 %v5584_v12, %v5085_v22  ;;  %5860 = vadd.xlane.f32.xlu0 %v5827_v17  ;;  %v5278_v12 = vld [vmem:[#allocation2 + $0xea] sm:$0xff] }
 0x541   :  { %v5760_v36 = vmul.f32 %v8605_v21, %v5660_v19  ;;  %v4747_v19 = vld [vmem:[#allocation2 + $0xdf] sm:$0xff] }
 0x543   :  { %v5086_v6 = vpop.f32.mrf.mxu2  ;;  %v5796_v41 = vadd.f32 %v8611_v39, %v5760_v36 }
 0x544   :  { %v5087_v7 = vadd.f32 %v5086_v6, %v4997_v45  ;;  %v5496_v54 = vpop.f32.mrf.mxu3  ;;  %v5000_v37 = vpop.f32.mrf.mxu1  ;;  %v4811_v6 = vpack.c.bf16 %v4748_v57, %v4747_v19 }
 0x545   :  { %v5586_v32 = vadd.f32 %v5585_v28, %v5496_v54  ;;  %v5828_v10 = vmax.f32 %v5796_v41, 0.0  ;;  %v4812_v41 = vpack.c.bf16 %v4652_v58, %v4651_v62 }
 0x547   :  { %v5588_v48 = vpop.f32.mrf.mxu0  ;;  %v5661_v63 = vadd.f32 %v5586_v32, %v5087_v7  ;;  %5862 = vadd.xlane.f32.xlu2 %v5828_v10  ;;  %5039 = vmatmul.bf16.gmra.mxu1 %v4809_v29  ;;  %v5277_v7 = vld [vmem:[#allocation2 + $0xe2] sm:$0xff] }
 0x548   :  { %5128 = vmatmul.bf16.gmra.mxu2 %v4810_v4  ;;  %v5310_v0 = vpack.c.bf16 %v5278_v12, %v5277_v7  ;;  %v5250_v7 = vld [vmem:[#allocation2 + $0x109] sm:$0xff] }
 0x549   :  { %5538 = vmatmul.bf16.gmra.mxu3 %v5307_v49  ;;  %v5761_v59 = vmul.f32 %v8605_v21, %v5661_v63  ;;  %v4750_v63 = vld [vmem:[#allocation2 + $0xf7] sm:$0xff] }
 0x54a   :  { %5627 = vmatmul.bf16.gmra.mxu0 %v5308_v51 }
 0x54b   :  { %v5089_v27 = vpop.f32.mrf.mxu2  ;;  %v5797_v38 = vadd.f32 %v8611_v39, %v5761_v59  ;;  %v5248_v59 = vld [vmem:[#allocation2 + $0xf9] sm:$0xff] }
 0x54c   :  { %v5090_v11 = vadd.f32 %v5089_v27, %v5000_v37  ;;  %v5499_v52 = vpop.f32.mrf.mxu3  ;;  %v5002_v26 = vpop.f32.mrf.mxu1  ;;  %v5280_v27 = vld [vmem:[#allocation2 + $0xfa] sm:$0xff] }
 0x54d   :  { %v5589_v9 = vadd.f32 %v5588_v48, %v5499_v52  ;;  %v5829_v60 = vmax.f32 %v5797_v38, 0.0 }
 0x54f   :  { %v5590_v15 = vpop.f32.mrf.mxu0  ;;  %v5662_v34 = vadd.f32 %v5589_v9, %v5090_v11  ;;  %5864 = vadd.xlane.f32.xlu0 %v5829_v60  ;;  %v4749_v9 = vld [vmem:[#allocation2 + $0xef] sm:$0xff] }
 0x550   :  { %v4813_v60 = vpack.c.bf16 %v4750_v63, %v4749_v9 }
 0x551   :  { %v5762_v23 = vmul.f32 %v8605_v21, %v5662_v34  ;;  %v5247_v34 = vld [vmem:[#allocation2 + $0xf1] sm:$0xff] }
 0x553   :  { %v5091_v2 = vpop.f32.mrf.mxu2  ;;  %v5798_v16 = vadd.f32 %v8611_v39, %v5762_v23  ;;  %v5279_v23 = vld [vmem:[#allocation2 + $0xf2] sm:$0xff] }
 0x554   :  { %v5092_v47 = vadd.f32 %v5091_v2, %v5002_v26  ;;  %v5501_v22 = vpop.f32.mrf.mxu3  ;;  %v5005_v17 = vpop.f32.mrf.mxu1  ;;  %v5312_v57 = vpack.c.bf16 %v5280_v27, %v5279_v23 }
 0x555   :  { %v5591_v45 = vadd.f32 %v5590_v15, %v5501_v22  ;;  %v5830_v28 = vmax.f32 %v5798_v16, 0.0  ;;  %v4814_v15 = vpack.c.bf16 %v4654_v8, %v4653_v40  ;;  %v5311_v16 = vpack.c.bf16 %v5248_v59, %v5247_v34 }
 0x557   :  { %v5593_v36 = vpop.f32.mrf.mxu0  ;;  %v5663_v54 = vadd.f32 %v5591_v45, %v5092_v47  ;;  %5866 = vadd.xlane.f32.xlu2 %v5830_v28  ;;  %5044 = vmatmul.bf16.gmra.mxu1 %v4811_v6  ;;  %v4752_v6 = vld [vmem:[#allocation2 + $0x107] sm:$0xff] }
 0x558   :  { %5133 = vmatmul.bf16.gmra.mxu2 %v4812_v41 }
 0x559   :  { %5543 = vmatmul.bf16.gmra.mxu3 %v5309_v25  ;;  %v5763_v32 = vmul.f32 %v8605_v21, %v5663_v54  ;;  %v5282_v54 = vld [vmem:[#allocation2 + $0x10a] sm:$0xff] }
 0x55a   :  { %5632 = vmatmul.bf16.gmra.mxu0 %v5310_v0 }
 0x55b   :  { %v5094_v37 = vpop.f32.mrf.mxu2  ;;  %v5799_v10 = vadd.f32 %v8611_v39, %v5763_v32 }
 0x55c   :  { %v5095_v13 = vadd.f32 %v5094_v37, %v5005_v17  ;;  %v5504_v43 = vpop.f32.mrf.mxu3  ;;  %v5007_v44 = vpop.f32.mrf.mxu1  ;;  %v4751_v37 = vld [vmem:[#allocation2 + $0xff] sm:$0xff] }
 0x55d   :  { %v5594_v48 = vadd.f32 %v5593_v36, %v5504_v43  ;;  %v5831_v62 = vmax.f32 %v5799_v10, 0.0  ;;  %v4816_v43 = vpack.c.bf16 %v4656_v61, %v4655_v31 }
 0x55f   :  { %v5595_v58 = vpop.f32.mrf.mxu0  ;;  %v5664_v29 = vadd.f32 %v5594_v48, %v5095_v13  ;;  %5868 = vadd.xlane.f32.xlu1 %v5831_v62  ;;  %v4815_v13 = vpack.c.bf16 %v4752_v6, %v4751_v37  ;;  %v5249_v48 = vld [vmem:[#allocation2 + $0x101] sm:$0xff] }
 0x560   :  { %v5285_v37 = vld [vmem:[#allocation2 + $0x122] sm:$0xff] }
 0x561   :  { %v5764_v4 = vmul.f32 %v8605_v21, %v5664_v29 }
 0x563   :  { %v5096_v35 = vpop.f32.mrf.mxu2  ;;  %v5800_v33 = vadd.f32 %v8611_v39, %v5764_v4 }
 0x564   :  { %v5097_v49 = vadd.f32 %v5096_v35, %v5007_v44  ;;  %v5506_v51 = vpop.f32.mrf.mxu3  ;;  %v5010_v11 = vpop.f32.mrf.mxu1  ;;  %v5281_v44 = vld [vmem:[#allocation2 + $0x102] sm:$0xff] }
 0x565   :  { %v5596_v38 = vadd.f32 %v5595_v58, %v5506_v51  ;;  %v5832_v52 = vmax.f32 %v5800_v33, 0.0  ;;  %v5313_v58 = vpack.c.bf16 %v5250_v7, %v5249_v48  ;;  %v5314_v29 = vpack.c.bf16 %v5282_v54, %v5281_v44  ;;  %v4756_v7 = vld [vmem:[#allocation2 + $0x127] sm:$0xff]  ;;  %v4755_v44 = vld [vmem:[#allocation2 + $0x11f] sm:$0xff] }
 0x566   :  { %v5253_v54 = vld [vmem:[#allocation2 + $0x121] sm:$0xff] }
 0x567   :  { %v5598_v26 = vpop.f32.mrf.mxu0  ;;  %v5665_v2 = vadd.f32 %v5596_v38, %v5097_v49  ;;  %5870 = vadd.xlane.f32.xlu0 %v5832_v52  ;;  %5049 = vmatmul.bf16.gmra.mxu1 %v4813_v60  ;;  %v5284_v60 = vld [vmem:[#allocation2 + $0x11a] sm:$0xff] }
 0x568   :  { %5138 = vmatmul.bf16.gmra.mxu2 %v4814_v15 }
 0x569   :  { %5548 = vmatmul.bf16.gmra.mxu3 %v5311_v16  ;;  %v5765_v47 = vmul.f32 %v8605_v21, %v5665_v2  ;;  %v4753_v2 = vld [vmem:[#allocation2 + $0x10f] sm:$0xff] }
 0x56a   :  { %5637 = vmatmul.bf16.gmra.mxu0 %v5312_v57 }
 0x56b   :  { %v5099_v22 = vpop.f32.mrf.mxu2  ;;  %v5801_v55 = vadd.f32 %v8611_v39, %v5765_v47  ;;  %v4818_v47 = vpack.c.bf16 %v4658_v5, %v4657_v42 }
 0x56c   :  { %v5100_v12 = vadd.f32 %v5099_v22, %v5010_v11  ;;  %v5509_v3 = vpop.f32.mrf.mxu3  ;;  %v5012_v18 = vpop.f32.mrf.mxu1  ;;  %v4754_v11 = vld [vmem:[#allocation2 + $0x117] sm:$0xff] }
 0x56d   :  { %v5599_v45 = vadd.f32 %v5598_v26, %v5509_v3  ;;  %v5833_v40 = vmax.f32 %v5801_v55, 0.0  ;;  %v5252_v26 = vld [vmem:[#allocation2 + $0x119] sm:$0xff]  ;;  %v4817_v57 = vpack.c.bf16 %v4754_v11, %v4753_v2  ;;  %v5251_v22 = vld [vmem:[#allocation2 + $0x111] sm:$0xff] }
 0x56e   :  { %v5283_v55 = vld [vmem:[#allocation2 + $0x112] sm:$0xff]  ;;  %v5315_v3 = vpack.c.bf16 %v5252_v26, %v5251_v22 }
 0x56f   :  { %v5600_v8 = vpop.f32.mrf.mxu0  ;;  %v5666_v17 = vadd.f32 %v5599_v45, %v5100_v12  ;;  %5872 = vadd.xlane.f32.xlu2 %v5833_v40  ;;  %v5316_v45 = vpack.c.bf16 %v5284_v60, %v5283_v55 }
 0x571   :  { %v5766_v28 = vmul.f32 %v8605_v21, %v5666_v17 }
 0x573   :  { %v5101_v19 = vpop.f32.mrf.mxu2  ;;  %v5802_v36 = vadd.f32 %v8611_v39, %v5766_v28 }
 0x574   :  { %v5102_v41 = vadd.f32 %v5101_v19, %v5012_v18  ;;  %v5511_v24 = vpop.f32.mrf.mxu3  ;;  %v5015_v0 = vpop.f32.mrf.mxu1  ;;  %v5976_v18 = vld [vmem:[%s8914_s10 + $0x78] sm:$0xff] }
 0x575   :  { %v5601_v25 = vadd.f32 %v5600_v8, %v5511_v24  ;;  %v5834_v32 = vmax.f32 %v5802_v36, 0.0  ;;  %6110 = vmatpush.msra.mxu1 %v5976_v18 }
 0x577   :  { %v5603_v10 = vpop.f32.mrf.mxu0  ;;  %v5667_v62 = vadd.f32 %v5601_v25, %v5102_v41  ;;  %5874 = vadd.xlane.f32.xlu1 %v5834_v32  ;;  %5054 = vmatmul.bf16.gmra.mxu1 %v4815_v13  ;;  %v5254_v32 = vld [vmem:[#allocation2 + $0x129] sm:$0xff] }
 0x578   :  { %5143 = vmatmul.bf16.gmra.mxu2 %v4816_v43 }
 0x579   :  { %5553 = vmatmul.bf16.gmra.mxu3 %v5313_v58  ;;  %v5767_v4 = vmul.f32 %v8605_v21, %v5667_v62  ;;  %v4819_v58 = vpack.c.bf16 %v4756_v7, %v4755_v44 }
 0x57a   :  { %5642 = vmatmul.bf16.gmra.mxu0 %v5314_v29  ;;  %v4820_v29 = vpack.c.bf16 %v4660_v46, %v4659_v56 }
 0x57b   :  { %v5104_v35 = vpop.f32.mrf.mxu2  ;;  %v5803_v33 = vadd.f32 %v8611_v39, %v5767_v4 }
 0x57c   :  { %v5105_v63 = vadd.f32 %v5104_v35, %v5015_v0  ;;  %v5514_v20 = vpop.f32.mrf.mxu3  ;;  %v5017_v30 = vpop.f32.mrf.mxu1  ;;  %v5317_v35 = vpack.c.bf16 %v5254_v32, %v5253_v54 }
 0x57d   :  { %v5604_v49 = vadd.f32 %v5603_v10, %v5514_v20  ;;  %v5835_v31 = vmax.f32 %v5803_v33, 0.0  ;;  %v5286_v10 = vld [vmem:[#allocation2 + $0x12a] sm:$0xff] }
 0x57e   :  { %v5318_v33 = vpack.c.bf16 %v5286_v10, %v5285_v37 }
 0x57f   :  { %v5605_v61 = vpop.f32.mrf.mxu0  ;;  %v5668_v51 = vadd.f32 %v5604_v49, %v5105_v63  ;;  %5876 = vadd.xlane.f32.xlu0 %v5835_v31  ;;  %v5975_v63 = vld [vmem:[%s8914_s10 + $0x70] sm:$0xff] }
 0x580   :  { %6111 = vmatpush.msra.mxu1 %v5975_v63 }
 0x581   :  { %v5768_v59 = vmul.f32 %v8605_v21, %v5668_v51 }
 0x583   :  { %v5106_v27 = vpop.f32.mrf.mxu2  ;;  %v5804_v38 = vadd.f32 %v8611_v39, %v5768_v59 }
 0x584   :  { %v5107_v52 = vadd.f32 %v5106_v27, %v5017_v30  ;;  %v5516_v9 = vpop.f32.mrf.mxu3  ;;  %v5020_v34 = vpop.f32.mrf.mxu1 }
 0x585   :  { %v5606_v15 = vadd.f32 %v5605_v61, %v5516_v9  ;;  %v5836_v23 = vmax.f32 %v5804_v38, 0.0 }
 0x587   :  { %v5608_v16 = vpop.f32.mrf.mxu0  ;;  %v5669_v12 = vadd.f32 %v5606_v15, %v5107_v52  ;;  %5878 = vadd.xlane.f32.xlu2 %v5836_v23  ;;  %5059 = vmatmul.bf16.gmra.mxu1 %v4817_v57  ;;  %v5974_v23 = vld [vmem:[%s8914_s10 + $0x68] sm:$0xff] }
 0x588   :  { %5148 = vmatmul.bf16.gmra.mxu2 %v4818_v47  ;;  %6112 = vmatpush.msra.mxu1 %v5974_v23 }
 0x589   :  { %5558 = vmatmul.bf16.gmra.mxu3 %v5315_v3  ;;  %v5769_v40 = vmul.f32 %v8605_v21, %v5669_v12  ;;  %v7337_v3 = vmov 128.0  }
 0x58a   :  { %5647 = vmatmul.bf16.gmra.mxu0 %v5316_v45  ;;  %7329 = vrcp.f32 %v7337_v3 }
 0x58b   :  { %v5109_v53 = vpop.f32.mrf.mxu2  ;;  %v5805_v42 = vadd.f32 %v8611_v39, %v5769_v40 }
 0x58c   :  { %v5110_v50 = vadd.f32 %v5109_v53, %v5020_v34  ;;  %v5519_v5 = vpop.f32.mrf.mxu3  ;;  %v5022_v17 = vpop.f32.mrf.mxu1 }
 0x58d   :  { %v5609_v8 = vadd.f32 %v5608_v16, %v5519_v5  ;;  %v5837_v28 = vmax.f32 %v5805_v42, 0.0 }
 0x58f   :  { %v5610_v19 = vpop.f32.mrf.mxu0  ;;  %v5670_v36 = vadd.f32 %v5609_v8, %v5110_v50  ;;  %5880 = vadd.xlane.f32.xlu1 %v5837_v28 }
 0x590   :  { %v7330_v28 = vpop.eup %7329 }
 0x591   :  { %v5770_v6 = vmul.f32 %v8605_v21, %v5670_v36  ;;  %v5973_v36 = vld [vmem:[%s8914_s10 + $0x60] sm:$0xff]  ;;  %vm5927_vm1 = vweird.f32 %v7330_v28 }
 0x592   :  { %6113 = vmatpush.msra.mxu1 %v5973_v36 }
 0x593   :  { %v5111_v41 = vpop.f32.mrf.mxu2  ;;  %v5806_v24 = vadd.f32 %v8611_v39, %v5770_v6 }
 0x594   :  { %v5112_v25 = vadd.f32 %v5111_v41, %v5022_v17  ;;  %v5521_v0 = vpop.f32.mrf.mxu3  ;;  %v5025_v43 = vpop.f32.mrf.mxu1 }
 0x595   :  { %v5611_v13 = vadd.f32 %v5610_v19, %v5521_v0  ;;  %v5838_v48 = vmax.f32 %v5806_v24, 0.0  ;;  %v5923_v24 = vmul.f32 128.0, %v7330_v28 }
 0x597   :  { %v5613_v62 = vpop.f32.mrf.mxu0  ;;  %v5671_v4 = vadd.f32 %v5611_v13, %v5112_v25  ;;  %5882 = vadd.xlane.f32.xlu0 %v5838_v48  ;;  %5064 = vmatmul.bf16.gmra.mxu1 %v4819_v58  ;;  %v5924_v13 = vsub.f32 1.0, %v5923_v24 }
 0x598   :  { %5153 = vmatmul.bf16.gmra.mxu2 %v4820_v29 }
 0x599   :  { %5563 = vmatmul.bf16.gmra.mxu3 %v5317_v35  ;;  %v5771_v20 = vmul.f32 %v8605_v21, %v5671_v4 }
 0x59a   :  { %5652 = vmatmul.bf16.gmra.mxu0 %v5318_v33 }
 0x59b   :  { %v5114_v49 = vpop.f32.mrf.mxu2  ;;  %v5807_v1 = vadd.f32 %v8611_v39, %v5771_v20  ;;  %v6013_v20 = vlaneseq }
 0x59c   :  { %v5115_v14 = vadd.f32 %v5114_v49, %v5025_v43  ;;  %v5524_v56 = vpop.f32.mrf.mxu3  ;;  %v5027_v30 = vpop.f32.mrf.mxu1 }
 0x59d   :  { %v5614_v46 = vadd.f32 %v5613_v62, %v5524_v56  ;;  %v5839_v31 = vmax.f32 %v5807_v1, 0.0  ;;  %v5925_v62 = vmul.f32 %v7330_v28, %v5924_v13 }
 0x59f   :  { %v5615_v61 = vpop.f32.mrf.mxu0  ;;  %v5672_v51 = vadd.f32 %v5614_v46, %v5115_v14  ;;  %5884 = vadd.xlane.f32.xlu2 %v5839_v31  ;;  %v5926_v56 = vadd.f32 %v7330_v28, %v5925_v62  ;;  %v5972_v31 = vld [vmem:[%s8914_s10 + $0x58] sm:$0xff] }
 0x5a0   :  { %6114 = vmatpush.msra.mxu1 %v5972_v31 }
 0x5a1   :  { %v5772_v59 = vmul.f32 %v8605_v21, %v5672_v51 }
 0x5a3   :  { %v5116_v27 = vpop.f32.mrf.mxu2  ;;  %v5808_v38 = vadd.f32 %v8611_v39, %v5772_v59  ;;  %v8699_v59 = vsel %vm5927_vm1, %v7330_v28, %v5926_v56  ;;  %vm6107_vm1 = vcmask 1041409  }
 0x5a4   :  { %v5117_v11 = vadd.f32 %v5116_v27, %v5027_v30  ;;  %v5526_v52 = vpop.f32.mrf.mxu3  ;;  %v5030_v26 = vpop.f32.mrf.mxu1 }
 0x5a5   :  { %v5616_v9 = vadd.f32 %v5615_v61, %v5526_v52  ;;  %v5840_v60 = vmax.f32 %v5808_v38, 0.0  ;;  %v8696_v61 = vand.u32 127, %v6013_v20 }
 0x5a7   :  { %v5618_v15 = vpop.f32.mrf.mxu0  ;;  %v8679_v34 = vadd.f32 %v5616_v9, %v5117_v11  ;;  %5886 = vadd.xlane.f32.xlu1 %v5840_v60  ;;  %v8702_v38 = vadd.s32 4294967288, %v8696_v61  ;;  %v8707_v60 = vadd.s32 4294967280, %v8696_v61  ;;  %v8711_v23 = vadd.s32 4294967272, %v8696_v61 }
 0x5a8   :  { %v8716_v3 = vadd.s32 4294967264, %v8696_v61 }
 0x5aa   :  { %v5859_v6 = vpop.xlane.xlu0 %5858 }
 0x5ab   :  { %v5119_v2 = vpop.f32.mrf.mxu2 }
 0x5ac   :  { %v5120_v16 = vadd.f32 %v5119_v2, %v5030_v26  ;;  %v5529_v57 = vpop.f32.mrf.mxu3  ;;  %v5032_v22 = vpop.f32.mrf.mxu1 }
 0x5ad   :  { %v5619_v47 = vadd.f32 %v5618_v15, %v5529_v57  ;;  %v5929_v57 = vmul.f32 %v8699_v59, %v5859_v6 }
 0x5af   :  { %v5620_v55 = vpop.f32.mrf.mxu0  ;;  %v5674_v12 = vadd.f32 %v5619_v47, %v5120_v16 }
 0x5b1   :  { %v5774_v45 = vmul.f32 %v8605_v21, %v5674_v12 }
 0x5b2   :  { %v5861_v58 = vpop.xlane.xlu0 %5860 }
 0x5b3   :  { %v5121_v18 = vpop.f32.mrf.mxu2  ;;  %v5810_v40 = vadd.f32 %v8611_v39, %v5774_v45  ;;  %v5930_v11 = vmul.f32 %v8699_v59, %v5861_v58  ;;  %v5971_v58 = vld [vmem:[%s8914_s10 + $0x50] sm:$0xff] }
 0x5b4   :  { %v5122_v53 = vadd.f32 %v5121_v18, %v5032_v22  ;;  %v5531_v42 = vpop.f32.mrf.mxu3  ;;  %v5035_v5 = vpop.f32.mrf.mxu1  ;;  %6115 = vmatpush.msra.mxu1 %v5971_v58 }
 0x5b5   :  { %v5621_v50 = vadd.f32 %v5620_v55, %v5531_v42  ;;  %v5842_v8 = vmax.f32 %v5810_v40, 0.0  ;;  %v6017_v40 = vperm.slane %v5930_v11, %v8702_v38 }
 0x5b7   :  { %v5623_v17 = vpop.f32.mrf.mxu0  ;;  %v5675_v19 = vadd.f32 %v5621_v50, %v5122_v53  ;;  %5890 = vadd.xlane.f32.xlu1 %v5842_v8  ;;  %v6015_v50 = vperm.slane %v5929_v57, %v8696_v61  ;;  %v8724_v8 = vadd.s32 4294967256, %v8696_v61  ;;  %v8748_v57 = vadd.s32 4294967240, %v8696_v61 }
 0x5b9   :  { %v5775_v41 = vmul.f32 %v8605_v21, %v5675_v19  ;;  %v6019_v36 = vsel %vm6018_vm2, %v6017_v40, %v6015_v50 }
 0x5ba   :  { %v5863_v29 = vpop.xlane.xlu2 %5862 }
 0x5bb   :  { %v5124_v7 = vpop.f32.mrf.mxu2  ;;  %v5811_v54 = vadd.f32 %v8611_v39, %v5775_v41  ;;  %v5931_v15 = vmul.f32 %v8699_v59, %v5863_v29 }
 0x5bc   :  { %v5125_v25 = vadd.f32 %v5124_v7, %v5035_v5  ;;  %v5534_v0 = vpop.f32.mrf.mxu3  ;;  %v5037_v37 = vpop.f32.mrf.mxu1 }
 0x5bd   :  { %v5624_v32 = vadd.f32 %v5623_v17, %v5534_v0  ;;  %v5843_v10 = vmax.f32 %v5811_v54, 0.0  ;;  %v6021_v42 = vperm.slane %v5931_v15, %v8707_v60 }
 0x5bf   :  { %v5625_v43 = vpop.f32.mrf.mxu0  ;;  %v5676_v48 = vadd.f32 %v5624_v32, %v5125_v25  ;;  %5892 = vadd.xlane.f32.xlu1 %v5843_v10  ;;  %v6023_v7 = vsel %vm6022_vm3, %v6021_v42, %v6019_v36 }
 0x5c1   :  { %v5776_v44 = vmul.f32 %v8605_v21, %v5676_v48 }
 0x5c2   :  { %v5865_v27 = vpop.xlane.xlu0 %5864 }
 0x5c3   :  { %v5126_v4 = vpop.f32.mrf.mxu2  ;;  %v5812_v35 = vadd.f32 %v8611_v39, %v5776_v44  ;;  %v5932_v47 = vmul.f32 %v8699_v59, %v5865_v27 }
 0x5c4   :  { %v5127_v33 = vadd.f32 %v5126_v4, %v5037_v37  ;;  %v5536_v63 = vpop.f32.mrf.mxu3  ;;  %v5040_v1 = vpop.f32.mrf.mxu1 }
 0x5c5   :  { %v5626_v49 = vadd.f32 %v5625_v43, %v5536_v63  ;;  %v5844_v14 = vmax.f32 %v5812_v35, 0.0  ;;  %v6025_v5 = vperm.slane %v5932_v47, %v8711_v23 }
 0x5c7   :  { %v5628_v46 = vpop.f32.mrf.mxu0  ;;  %v5677_v30 = vadd.f32 %v5626_v49, %v5127_v33  ;;  %5894 = vadd.xlane.f32.xlu2 %v5844_v14  ;;  %v6027_v0 = vsel %vm6026_vm4, %v6025_v5, %v6023_v7 }
 0x5c9   :  { %v5777_v51 = vmul.f32 %v8605_v21, %v5677_v30 }
 0x5ca   :  { %v5867_v52 = vpop.xlane.xlu2 %5866 }
 0x5cb   :  { %v5129_v9 = vpop.f32.mrf.mxu2  ;;  %v5813_v26 = vadd.f32 %v8611_v39, %v5777_v51  ;;  %v5933_v45 = vmul.f32 %v8699_v59, %v5867_v52 }
 0x5cc   :  { %v5130_v2 = vadd.f32 %v5129_v9, %v5040_v1  ;;  %v5539_v16 = vpop.f32.mrf.mxu3  ;;  %v5042_v55 = vpop.f32.mrf.mxu1  ;;  %v8744_v9 = vadd.s32 4294967248, %v8696_v61 }
 0x5cd   :  { %v5629_v22 = vadd.f32 %v5628_v46, %v5539_v16  ;;  %v5845_v12 = vmax.f32 %v5813_v26, 0.0  ;;  %v6029_v28 = vperm.slane %v5933_v45, %v8716_v3 }
 0x5cf   :  { %v5630_v18 = vpop.f32.mrf.mxu0  ;;  %v5678_v53 = vadd.f32 %v5629_v22, %v5130_v2  ;;  %5896 = vadd.xlane.f32.xlu1 %v5845_v12  ;;  %v6031_v43 = vsel %vm6030_vm5, %v6029_v28, %v6027_v0  ;;  %v5970_v12 = vld [vmem:[%s8914_s10 + $0x48] sm:$0xff] }
 0x5d0   :  { %6116 = vmatpush.msra.mxu1 %v5970_v12 }
 0x5d1   :  { %v5778_v17 = vmul.f32 %v8605_v21, %v5678_v53 }
 0x5d2   :  { %v5869_v19 = vpop.xlane.xlu1 %5868 }
 0x5d3   :  { %v5934_v6 = vmul.f32 %v8699_v59, %v5869_v19  ;;  %v5131_v41 = vpop.f32.mrf.mxu2  ;;  %v5814_v24 = vadd.f32 %v8611_v39, %v5778_v17 }
 0x5d4   :  { %v5132_v54 = vadd.f32 %v5131_v41, %v5042_v55  ;;  %v5541_v25 = vpop.f32.mrf.mxu3  ;;  %v5045_v10 = vpop.f32.mrf.mxu1 }
 0x5d5   :  { %v6033_v32 = vperm.slane %v5934_v6, %v8724_v8  ;;  %v5631_v37 = vadd.f32 %v5630_v18, %v5541_v25  ;;  %v5846_v13 = vmax.f32 %v5814_v24, 0.0  ;;  %v8756_v18 = vadd.s32 4294967232, %v8696_v61 }
 0x5d7   :  { %v5633_v48 = vpop.f32.mrf.mxu0  ;;  %v6035_v44 = vsel %vm6034_vm6, %v6033_v32, %v6031_v43  ;;  %v5679_v62 = vadd.f32 %v5631_v37, %v5132_v54  ;;  %5898 = vadd.xlane.f32.xlu0 %v5846_v13 }
 0x5d9   :  { %v5779_v29 = vmul.f32 %v8605_v21, %v5679_v62 }
 0x5da   :  { %v5871_v30 = vpop.xlane.xlu0 %5870 }
 0x5db   :  { %v5134_v4 = vpop.f32.mrf.mxu2  ;;  %v5815_v35 = vadd.f32 %v8611_v39, %v5779_v29  ;;  %v5935_v26 = vmul.f32 %v8699_v59, %v5871_v30 }
 0x5dc   :  { %v5135_v33 = vadd.f32 %v5134_v4, %v5045_v10  ;;  %v5544_v63 = vpop.f32.mrf.mxu3  ;;  %v5047_v49 = vpop.f32.mrf.mxu1 }
 0x5dd   :  { %v5634_v20 = vadd.f32 %v5633_v48, %v5544_v63  ;;  %v5847_v1 = vmax.f32 %v5815_v35, 0.0  ;;  %v6037_v45 = vperm.slane %v5935_v26, %v8744_v9  ;;  %v5969_v35 = vld [vmem:[%s8914_s10 + $0x40] sm:$0xff] }
 0x5de   :  { %6117 = vmatpush.msra.mxu1 %v5969_v35  ;;  %v5773_v35 = vmul.f32 %v8605_v21, %v8679_v34 }
 0x5df   :  { %v5635_v14 = vpop.f32.mrf.mxu0  ;;  %v5680_v56 = vadd.f32 %v5634_v20, %v5135_v33  ;;  %5900 = vadd.xlane.f32.xlu2 %v5847_v1  ;;  %v6039_v36 = vsel %vm6038_vm7, %v6037_v45, %v6035_v44 }
 0x5e1   :  { %v5780_v46 = vmul.f32 %v8605_v21, %v5680_v56 }
 0x5e2   :  { %v5873_v31 = vpop.xlane.xlu2 %5872 }
 0x5e3   :  { %v5136_v51 = vpop.f32.mrf.mxu2  ;;  %v5816_v27 = vadd.f32 %v8611_v39, %v5780_v46  ;;  %v5936_v47 = vmul.f32 %v8699_v59, %v5873_v31 }
 0x5e4   :  { %v5137_v11 = vadd.f32 %v5136_v51, %v5047_v49  ;;  %v5546_v52 = vpop.f32.mrf.mxu3  ;;  %v5050_v2 = vpop.f32.mrf.mxu1 }
 0x5e5   :  { %v5636_v15 = vadd.f32 %v5635_v14, %v5546_v52  ;;  %v5848_v16 = vmax.f32 %v5816_v27, 0.0  ;;  %v6041_v53 = vperm.slane %v5936_v47, %v8748_v57 }
 0x5e7   :  { %v5638_v22 = vpop.f32.mrf.mxu0  ;;  %v5681_v55 = vadd.f32 %v5636_v15, %v5137_v11  ;;  %5902 = vadd.xlane.f32.xlu1 %v5848_v16  ;;  %v6043_v54 = vsel %vm6042_vm8, %v6041_v53, %v6039_v36 }
 0x5e9   :  { %v5781_v40 = vmul.f32 %v8605_v21, %v5681_v55  ;;  %v5968_v55 = vld [vmem:[%s8914_s10 + $0x38] sm:$0xff] }
 0x5ea   :  { %v5875_v42 = vpop.xlane.xlu1 %5874  ;;  %6118 = vmatpush.msra.mxu1 %v5968_v55 }
 0x5eb   :  { %v5937_v50 = vmul.f32 %v8699_v59, %v5875_v42  ;;  %v5139_v5 = vpop.f32.mrf.mxu2  ;;  %v5817_v17 = vadd.f32 %v8611_v39, %v5781_v40 }
 0x5ec   :  { %v5140_v28 = vadd.f32 %v5139_v5, %v5050_v2  ;;  %v5549_v19 = vpop.f32.mrf.mxu3  ;;  %v5052_v24 = vpop.f32.mrf.mxu1 }
 0x5ed   :  { %v6045_v6 = vperm.slane %v5937_v50, %v8756_v18  ;;  %v5639_v41 = vadd.f32 %v5638_v22, %v5549_v19  ;;  %v5849_v7 = vmax.f32 %v5817_v17, 0.0 }
 0x5ef   :  { %v5640_v25 = vpop.f32.mrf.mxu0  ;;  %v8766_v0 = vsel %vm6046_vm9, %v6045_v6, %v6043_v54  ;;  %v5682_v32 = vadd.f32 %v5639_v41, %v5140_v28  ;;  %5904 = vadd.xlane.f32.xlu0 %v5849_v7 }
 0x5f1   :  { %v5782_v37 = vmul.f32 %v8605_v21, %v5682_v32 }
 0x5f3   :  { %v5141_v10 = vpop.f32.mrf.mxu2  ;;  %v5818_v13 = vadd.f32 %v8611_v39, %v5782_v37  ;;  %v5967_v37 = vld [vmem:[%s8914_s10 + $0x30] sm:$0xff] }
 0x5f4   :  { %v5142_v43 = vadd.f32 %v5141_v10, %v5052_v24  ;;  %v5551_v48 = vpop.f32.mrf.mxu3  ;;  %v5055_v62 = vpop.f32.mrf.mxu1  ;;  %6119 = vmatpush.msra.mxu1 %v5967_v37 }
 0x5f5   :  { %v5641_v44 = vadd.f32 %v5640_v25, %v5551_v48  ;;  %v5850_v58 = vmax.f32 %v5818_v13, 0.0 }
 0x5f7   :  { %v5643_v29 = vpop.f32.mrf.mxu0  ;;  %v5683_v4 = vadd.f32 %v5641_v44, %v5142_v43  ;;  %5906 = vadd.xlane.f32.xlu2 %v5850_v58 }
 0x5f9   :  { %v5783_v33 = vmul.f32 %v8605_v21, %v5683_v4 }
 0x5fb   :  { %v5144_v63 = vpop.f32.mrf.mxu2  ;;  %v5819_v20 = vadd.f32 %v8611_v39, %v5783_v33 }
 0x5fc   :  { %v5145_v49 = vadd.f32 %v5144_v63, %v5055_v62  ;;  %v5554_v1 = vpop.f32.mrf.mxu3  ;;  %v5057_v56 = vpop.f32.mrf.mxu1  ;;  %v5809_v63 = vadd.f32 %v8611_v39, %v5773_v35  ;;  %v8836_v35 = vadd.s32 4294967208, %v8696_v61 }
 0x5fd   :  { %v5644_v14 = vadd.f32 %v5643_v29, %v5554_v1  ;;  %v5851_v46 = vmax.f32 %v5819_v20, 0.0  ;;  %v7334_v20 = vld [vmem:[%s8912_s8] ss:$0 sm:$0xff] }
 0x5fe   :  { %v5841_v34 = vmax.f32 %v5809_v63, 0.0 }
 0x5ff   :  { %v5645_v30 = vpop.f32.mrf.mxu0  ;;  %v5684_v31 = vadd.f32 %v5644_v14, %v5145_v49  ;;  %5908 = vadd.xlane.f32.xlu1 %v5851_v46 }
 0x601   :  { %v5784_v51 = vmul.f32 %v8605_v21, %v5684_v31 }
 0x603   :  { %v5146_v27 = vpop.f32.mrf.mxu2  ;;  %v5820_v11 = vadd.f32 %v8611_v39, %v5784_v51 }
 0x604   :  { %v5147_v52 = vadd.f32 %v5146_v27, %v5057_v56  ;;  %v5556_v26 = vpop.f32.mrf.mxu3  ;;  %v5060_v2 = vpop.f32.mrf.mxu1  ;;  %v7335_v56 = vld [vmem:[%s8913_s9] ss:$0 sm:$0xff] }
 0x605   :  { %v5646_v15 = vadd.f32 %v5645_v30, %v5556_v26  ;;  %v5852_v16 = vmax.f32 %v5820_v11, 0.0 }
 0x607   :  { %v5648_v47 = vpop.f32.mrf.mxu0  ;;  %v5685_v22 = vadd.f32 %v5646_v15, %v5147_v52  ;;  %5910 = vadd.xlane.f32.xlu0 %v5852_v16  ;;  %v5964_v16 = vld [vmem:[%s8914_s10 + $0x18] sm:$0xff] }
 0x609   :  { %v5785_v12 = vmul.f32 %v8605_v21, %v5685_v22  ;;  %v5881_v22 = vpop.xlane.xlu1 %5880 }
 0x60b   :  { %v5149_v45 = vpop.f32.mrf.mxu2  ;;  %v5821_v40 = vadd.f32 %v8611_v39, %v5785_v12  ;;  %v5962_v12 = vld [vmem:[%s8914_s10 + $0x8] sm:$0xff] }
 0x60c   :  { %v5150_v53 = vadd.f32 %v5149_v45, %v5060_v2  ;;  %v5559_v42 = vpop.f32.mrf.mxu3  ;;  %v5062_v28 = vpop.f32.mrf.mxu1  ;;  %v5965_v2 = vld [vmem:[%s8914_s10 + $0x20] sm:$0xff] }
 0x60d   :  { %v5649_v50 = vadd.f32 %v5648_v47, %v5559_v42  ;;  %v5853_v5 = vmax.f32 %v5821_v40, 0.0  ;;  %v5963_v47 = vld [vmem:[%s8914_s10 + $0x10] sm:$0xff]  ;;  %v5877_v45 = vpop.xlane.xlu0 %5876  ;;  %v5879_v40 = vpop.xlane.xlu2 %5878 }
 0x60f   :  { %v5686_v17 = vadd.f32 %v5649_v50, %v5150_v53  ;;  %5912 = vadd.xlane.f32.xlu2 %v5853_v5  ;;  %v5650_v19 = vpop.f32.mrf.mxu0  ;;  %v5961_v5 = vld [vmem:[%s8914_s10] sm:$0xff] }
 0x611   :  { %v5786_v36 = vmul.f32 %v8605_v21, %v5686_v17 }
 0x613   :  { %v5151_v6 = vpop.f32.mrf.mxu2  ;;  %v5822_v41 = vadd.f32 %v8611_v39, %v5786_v36 }
 0x614   :  { %v5152_v24 = vadd.f32 %v5151_v6, %v5062_v28  ;;  %v5561_v7 = vpop.f32.mrf.mxu3  ;;  %v5065_v10 = vpop.f32.mrf.mxu1 }
 0x615   :  { %v5651_v54 = vadd.f32 %v5650_v19, %v5561_v7  ;;  %v5854_v25 = vmax.f32 %v5822_v41, 0.0  ;;  %v5883_v42 = vpop.xlane.xlu0 %5882  ;;  %v8815_v50 = vpop.xlane.xlu2 %5884  ;;  %v17_v7 = vstv %s8915_s11 }
 0x616   :  { %18 = vst [vmem:[#allocation4] sm:$0x1] %v17_v7 }
 0x617   :  { %v5687_v32 = vadd.f32 %v5651_v54, %v5152_v24  ;;  %5914 = vadd.xlane.f32.xlu1 %v5854_v25  ;;  %v5653_v43 = vpop.f32.mrf.mxu0 }
 0x619   :  { %v5787_v13 = vmul.f32 %v8605_v21, %v5687_v32 }
 0x61a   :  { %v8810_v55 = vpop.xlane.xlu1 %5886 }
 0x61b   :  { %v5154_v48 = vpop.f32.mrf.mxu2  ;;  %v5823_v44 = vadd.f32 %v8611_v39, %v5787_v13  ;;  %v5966_v39 = vld [vmem:[%s8914_s10 + $0x28] sm:$0xff] }
 0x61c   :  { %v5155_v62 = vadd.f32 %v5154_v48, %v5065_v10  ;;  %v5564_v58 = vpop.f32.mrf.mxu3  ;;  %v5067_v1 = vpop.f32.mrf.mxu1  ;;  %6120 = vmatpush.msra.mxu1 %v5966_v39 }
 0x61d   :  { %v5654_v29 = vadd.f32 %v5653_v43, %v5564_v58  ;;  %v5855_v4 = vmax.f32 %v5823_v44, 0.0  ;;  %v5938_v58 = vmul.f32 %v8699_v59, %v5877_v45 }
 0x61e   :  { %6121 = vmatpush.msra.mxu1 %v5965_v2 }
 0x61f   :  { %v5688_v33 = vadd.f32 %v5654_v29, %v5155_v62  ;;  %5916 = vadd.xlane.f32.xlu0 %v5855_v4  ;;  %v5655_v30 = vpop.f32.mrf.mxu0  ;;  %v8828_v62 = vadd.s32 4294967224, %v8696_v61  ;;  %v8833_v4 = vadd.s32 4294967216, %v8696_v61 }
 0x620   :  { %6122 = vmatpush.msra.mxu1 %v5964_v16 }
 0x621   :  { %v5788_v49 = vmul.f32 %v7334_v20, %v5688_v33 }
 0x622   :  { %6123 = vmatpush.msra.mxu1 %v5963_v47 }
 0x623   :  { %v5156_v14 = vpop.f32.mrf.mxu2  ;;  %v5824_v46 = vadd.f32 %v7335_v56, %v5788_v49  ;;  %v8842_v49 = vadd.s32 4294967200, %v8696_v61 }
 0x624   :  { %v5157_v31 = vadd.f32 %v5156_v14, %v5067_v1  ;;  %v5566_v51 = vpop.f32.mrf.mxu3  ;;  %6124 = vmatpush.msra.mxu1 %v5962_v12  ;;  %v5941_v12 = vmul.f32 %v8699_v59, %v5883_v42 }
 0x625   :  { %v5656_v21 = vadd.f32 %v5655_v30, %v5566_v51  ;;  %v5856_v27 = vmax.f32 %v5824_v46, 0.0  ;;  %v6064_v51 = vadd.s32 4294967192, %v8696_v61 }
 0x626   :  { %6125 = vmatpush.msra.mxu1 %v5961_v5  ;;  %v5942_v5 = vmul.f32 %v8699_v59, %v8815_v50  ;;  %v6072_v50 = vadd.s32 4294967176, %v8696_v61 }
 0x627   :  { %v5689_v11 = vadd.f32 %v5656_v21, %v5157_v31  ;;  %5888 = vadd.xlane.f32.xlu0 %v5841_v34  ;;  %5918 = vadd.xlane.f32.xlu2 %v5856_v27  ;;  %v6049_v31 = vperm.slane %v5938_v58, %v8828_v62  ;;  %v6068_v34 = vadd.s32 4294967184, %v8696_v61 }
 0x629   :  { %v5789_v52 = vmul.f32 %v7334_v20, %v5689_v11  ;;  %v5939_v20 = vmul.f32 %v8699_v59, %v5879_v40  ;;  %v6051_v7 = vsel %vm6050_vm10, %v6049_v31, %v8766_v0 }
 0x62a   :  { %v5891_v53 = vpop.xlane.xlu1 %5890 }
 0x62b   :  { %v5825_v26 = vadd.f32 %v7335_v56, %v5789_v52  ;;  %v5945_v43 = vmul.f32 %v8699_v59, %v5891_v53  ;;  %v5940_v56 = vmul.f32 %v8699_v59, %v5881_v22  ;;  %v6053_v52 = vperm.slane %v5939_v20, %v8833_v4 }
 0x62d   :  { %v5857_v15 = vmax.f32 %v5825_v26, 0.0  ;;  %v6076_v46 = vperm.slane %v5945_v43, %v8696_v61  ;;  %v6057_v2 = vperm.slane %v5940_v56, %v8836_v35 }
 0x62f   :  { %5920 = vadd.xlane.f32.xlu1 %v5857_v15 }
 0x632   :  { %v5893_v17 = vpop.xlane.xlu1 %5892 }
 0x633   :  { %v5946_v32 = vmul.f32 %v8699_v59, %v5893_v17 }
 0x635   :  { %v6077_v33 = vperm.slane %v5946_v32, %v8702_v38  ;;  %v6065_v32 = vperm.slane %v5942_v5, %v6064_v51 }
 0x637   :  { %v6078_v27 = vsel %vm6018_vm2, %v6077_v33, %v6076_v46  ;;  %vm6130_vm2 = vcmask 1024  }
 0x63a   :  { %v5895_v19 = vpop.xlane.xlu2 %5894 }
 0x63b   :  { %v5947_v10 = vmul.f32 %v8699_v59, %v5895_v19  ;;  %v5943_v19 = vmul.f32 %v8699_v59, %v8810_v55 }
 0x63d   :  { %v6079_v1 = vperm.slane %v5947_v10, %v8707_v60  ;;  %v6069_v43 = vperm.slane %v5943_v19, %v6068_v34 }
 0x63f   :  { %v6080_v26 = vsel %vm6022_vm3, %v6079_v1, %v6078_v27 }
 0x642   :  { %v5897_v36 = vpop.xlane.xlu1 %5896 }
 0x643   :  { %v5948_v48 = vmul.f32 %v8699_v59, %v5897_v36 }
 0x645   :  { %v6081_v30 = vperm.slane %v5948_v48, %v8711_v23 }
 0x647   :  { %v6082_v16 = vsel %vm6026_vm4, %v6081_v30, %v6080_v26 }
 0x64a   :  { %v5899_v28 = vpop.xlane.xlu0 %5898 }
 0x64b   :  { %v5949_v29 = vmul.f32 %v8699_v59, %v5899_v28 }
 0x64d   :  { %v6083_v21 = vperm.slane %v5949_v29, %v8716_v3 }
 0x64f   :  { %v6084_v45 = vsel %vm6030_vm5, %v6083_v21, %v6082_v16 }
 0x652   :  { %v5901_v41 = vpop.xlane.xlu2 %5900 }
 0x653   :  { %v5950_v63 = vmul.f32 %v8699_v59, %v5901_v41 }
 0x655   :  { %v6085_v11 = vperm.slane %v5950_v63, %v8724_v8 }
 0x657   :  { %v6086_v17 = vsel %vm6034_vm6, %v6085_v11, %v6084_v45 }
 0x65a   :  { %v5903_v24 = vpop.xlane.xlu1 %5902 }
 0x65b   :  { %v5951_v14 = vmul.f32 %v8699_v59, %v5903_v24 }
 0x65d   :  { %v6087_v15 = vperm.slane %v5951_v14, %v8744_v9 }
 0x65f   :  { %v6088_v42 = vsel %vm6038_vm7, %v6087_v15, %v6086_v17 }
 0x662   :  { %v5905_v6 = vpop.xlane.xlu0 %5904 }
 0x663   :  { %v5952_v38 = vmul.f32 %v8699_v59, %v5905_v6 }
 0x665   :  { %v6089_v47 = vperm.slane %v5952_v38, %v8748_v57 }
 0x667   :  { %v6090_v6 = vsel %vm6042_vm8, %v6089_v47, %v6088_v42 }
 0x66a   :  { %v5907_v25 = vpop.xlane.xlu2 %5906 }
 0x66b   :  { %v5953_v60 = vmul.f32 %v8699_v59, %v5907_v25 }
 0x66d   :  { %v6091_v40 = vperm.slane %v5953_v60, %v8756_v18 }
 0x66f   :  { %v6092_v55 = vsel %vm6046_vm9, %v6091_v40, %v6090_v6 }
 0x672   :  { %v5909_v37 = vpop.xlane.xlu1 %5908 }
 0x673   :  { %v5954_v23 = vmul.f32 %v8699_v59, %v5909_v37 }
 0x675   :  { %v6093_v28 = vperm.slane %v5954_v23, %v8828_v62 }
 0x677   :  { %v6094_v37 = vsel %vm6050_vm10, %v6093_v28, %v6092_v55 }
 0x67a   :  { %v5911_v54 = vpop.xlane.xlu0 %5910 }
 0x67b   :  { %v5955_v3 = vmul.f32 %v8699_v59, %v5911_v54  ;;  %v6061_v54 = vperm.slane %v5941_v12, %v8842_v49 }
 0x67d   :  { %v6095_v36 = vperm.slane %v5955_v3, %v8833_v4 }
 0x67f   :  { %v6096_v61 = vsel %vm6054_vm11, %v6095_v36, %v6094_v37 }
 0x682   :  { %v5913_v44 = vpop.xlane.xlu2 %5912 }
 0x683   :  { %v5956_v8 = vmul.f32 %v8699_v59, %v5913_v44 }
 0x685   :  { %v6097_v41 = vperm.slane %v5956_v8, %v8836_v35 }
 0x687   :  { %v6098_v62 = vsel %vm6058_vm12, %v6097_v41, %v6096_v61 }
 0x68a   :  { %v5915_v39 = vpop.xlane.xlu1 %5914 }
 0x68b   :  { %v5957_v53 = vmul.f32 %v8699_v59, %v5915_v39 }
 0x68d   :  { %v6099_v25 = vperm.slane %v5957_v53, %v8842_v49 }
 0x68f   :  { %v6100_v35 = vsel %vm6062_vm13, %v6099_v25, %v6098_v62 }
 0x692   :  { %v5917_v13 = vpop.xlane.xlu0 %5916 }
 0x693   :  { %v5958_v57 = vmul.f32 %v8699_v59, %v5917_v13  ;;  %v6055_v13 = vsel %vm6054_vm11, %v6053_v52, %v6051_v7 }
 0x694   :  { %v6059_v0 = vsel %vm6058_vm12, %v6057_v2, %v6055_v13 }
 0x695   :  { %v6101_v10 = vperm.slane %v5958_v57, %v6064_v51  ;;  %v6063_v4 = vsel %vm6062_vm13, %v6061_v54, %v6059_v0 }
 0x696   :  { %v6067_v33 = vsel %vm6066_vm14, %v6065_v32, %v6063_v4 }
 0x697   :  { %v6102_v63 = vsel %vm6066_vm14, %v6101_v10, %v6100_v35  ;;  %v6071_v49 = vsel %vm6070_vm15, %v6069_v43, %v6067_v33 }
 0x69a   :  { %v5919_v22 = vpop.xlane.xlu2 %5918  ;;  %v5889_v9 = vpop.xlane.xlu0 %5888 }
 0x69b   :  { %v5959_v18 = vmul.f32 %v8699_v59, %v5919_v22  ;;  %v5944_v24 = vmul.f32 %v8699_v59, %v5889_v9 }
 0x69d   :  { %v6103_v48 = vperm.slane %v5959_v18, %v6068_v34  ;;  %v6073_v58 = vperm.slane %v5944_v24, %v6072_v50 }
 0x69f   :  { %v6104_v1 = vsel %vm6070_vm15, %v6103_v48, %v6102_v63  ;;  %v6075_v14 = vsel %vm6074_vm0, %v6073_v58, %v6071_v49 }
 0x6a2   :  { %v5921_v44 = vpop.xlane.xlu1 %5920 }
 0x6a3   :  { %v5960_v29 = vmul.f32 %v8699_v59, %v5921_v44  ;;  %v7328_v59 = vld [vmem:[#allocation4] ss:$0 sm:$0xff] }
 0x6a5   :  { %v6105_v20 = vperm.slane %v5960_v29, %v6072_v50 }
 0x6a7   :  { %v6106_v56 = vsel %vm6074_vm0, %v6105_v20, %v6104_v1 }
 0x6a8   :  { %v6108_v46 = vsel %vm6107_vm1, %v6106_v56, %v6075_v14 }
 0x6a9   :  { %6126 = vmatmul.f32.vlgmr.msra.gmra.mxu1 %v6108_v46 }
 0x726   :  { %v6127_v30 = vpop.f32.mrf.mxu1 }
 0x727   :  { %v6128_v38 = vadd.f32 %v7328_v59, %v6127_v30 }
 0x729   :  { %6131 = vst.msk [vmem:[%s8916_s12] sm:$0x3] %vm6130_vm2, %v6128_v38 }

</bundles_post_ra>
